<compile_context>
chip_gen: v6e
topology: v6e:2x2x1
jax: 0.10.0
libtpu: 0.0.40
codegen_flags: <defaults>
</compile_context>

<pallas_src>
import functools

import jax
import jax.numpy as jnp
import numpy as np
from jax import lax
from jax.experimental import pallas as pl
from jax.experimental.pallas import tpu as pltpu


def _convlstm_kernel(xh_ref, c_ref, w_ref, b_ref, ch_ref, cc_ref, *, K, CH, TH, W):
    """One (batch, row-block) tile per grid step.

    xh_ref : (1, 1, TH+2p, W+2p, CT) bf16  halo'ed x|h row block
    c_ref  : (1, TH, W, CH)          f32   previous cell state
    w_ref  : (K*K, CT, 4*CH)         bf16  per-tap packed weights [i|f|g|o]
    b_ref  : (1, 4*CH)               f32   fused bias (added post-matmul, f32)
    ch_ref : (1, TH, W, CH)          bf16  hidden-state output
    cc_ref : (1, TH, W, CH)          f32   cell-state output
    """
    CT = w_ref.shape[1]
    TM = TH * W

    xh = xh_ref[0, 0]                                   # (TH+2p, W+2p, CT)

    # In-kernel im2col: K*K static-shifted taps, each a bf16 MXU dot with f32
    # accumulation (kernel is HBM-bound; MXU K-underfill is irrelevant here).
    acc = jnp.zeros((TM, 4 * CH), jnp.float32)
    for t in range(K * K):
        dy, dx = t // K, t % K
        tap = xh[dy:dy + TH, dx:dx + W, :].reshape(TM, CT)
        acc = acc + jnp.dot(tap, w_ref[t], preferred_element_type=jnp.float32)
    acc = acc + b_ref[...]                              # exact f32 bias add

    # One 128-lane-dense tanh over the whole accumulator; a per-column affine
    # turns the i/f/o column groups into sigmoids: sigmoid(x)=0.5*tanh(0.5x)+0.5
    # and leaves the g group as tanh(x).  (Constant rows -> folded at compile.)
    col = lax.broadcasted_iota(jnp.int32, (1, 4 * CH), 1)
    is_g = jnp.logical_and(col >= 2 * CH, col < 3 * CH)
    scale = jnp.where(is_g, 1.0, 0.5).astype(jnp.float32)
    shift = jnp.where(is_g, 0.0, 0.5).astype(jnp.float32)
    gates = jnp.tanh(acc * scale) * scale + shift

    gi = gates[:, 0 * CH:1 * CH]
    gf = gates[:, 1 * CH:2 * CH]
    gg = gates[:, 2 * CH:3 * CH]
    go = gates[:, 3 * CH:4 * CH]

    c_prev = c_ref[0].reshape(TM, CH)
    cc = gf * c_prev + gi * gg
    ch = go * jnp.tanh(cc)

    cc_ref[0] = cc.reshape(TH, W, CH)
    ch_ref[0] = ch.reshape(TH, W, CH).astype(ch_ref.dtype)


def _pick_row_block(H, W, N, target_rows=1024):
    """Row-block height TH: divides H, TH*W <= target_rows, >=2 grid blocks."""
    divs = [d for d in range(1, H + 1) if H % d == 0]
    fitting = [d for d in divs if d * W <= target_rows]
    th = max(fitting) if fitting else 1
    if N * (H // th) < 2:          # v7x has 2 TensorCores: keep >=2 blocks
        smaller = [d for d in divs if d < th]
        if smaller:
            th = max(smaller)
    return th


def conv_lstm_cell_nhwc(x, h, c, wx_hwio, wh_hwio, bias):
    """NHWC ConvLSTM cell. x:(N,H,W,CIN); h,c:(N,H,W,CH).

    wx_hwio:(K,K,CIN,4*CH), wh_hwio:(K,K,CH,4*CH), bias:(4*CH,), gate order
    [i|f|g|o] on the last axis. Returns (ch bf16, cc f32) in NHWC.  Recurrent
    callers should use this entry point and keep h/c in NHWC across steps.
    """
    N, H, W, CIN = x.shape
    CH = h.shape[-1]
    K = wx_hwio.shape[0]
    assert K % 2 == 1, "kernel_size must be odd (PyTorch module uses K//2 pad)"
    p = K // 2
    CT = CIN + CH

    TH = _pick_row_block(H, W, N)
    nH = H // TH

    # bf16 cast BEFORE padding/blocking (halves the intermediate HBM traffic).
    xh = jnp.concatenate([x, h], axis=-1).astype(jnp.bfloat16)   # (N,H,W,CT)
    xh_p = jnp.pad(xh, ((0, 0), (p, p), (p, p), (0, 0)))
    # Halo-duplicated row blocks: only 2p rows per block are duplicated
    # (vs. the 9x-duplicated im2col patch matrix of the previous version).
    xh_blocks = jnp.stack(
        [xh_p[:, i * TH:i * TH + TH + 2 * p] for i in range(nH)], axis=1)
    # shape: (N, nH, TH+2p, W+2p, CT)

    # Per-tap packed weights: rows = [x-channels | h-channels], cols = [i|f|g|o].
    w_all = jnp.concatenate([wx_hwio, wh_hwio], axis=2)
    w_all = w_all.reshape(K * K, CT, 4 * CH).astype(jnp.bfloat16)
    b_all = bias.reshape(1, 4 * CH).astype(jnp.float32)
    c32 = c.astype(jnp.float32)

    kernel = functools.partial(_convlstm_kernel, K=K, CH=CH, TH=TH, W=W)

    ch, cc = pl.pallas_call(
        kernel,
        out_shape=(jax.ShapeDtypeStruct((N, H, W, CH), jnp.bfloat16),
                   jax.ShapeDtypeStruct((N, H, W, CH), jnp.float32)),
        grid=(N, nH),
        in_specs=[
            pl.BlockSpec((1, 1, TH + 2 * p, W + 2 * p, CT),
                         lambda n, i: (n, i, 0, 0, 0)),            # xh halo block
            pl.BlockSpec((1, TH, W, CH), lambda n, i: (n, i, 0, 0)),  # cell state
            pl.BlockSpec((K * K, CT, 4 * CH), lambda n, i: (0, 0, 0)),  # weights
            pl.BlockSpec((1, 4 * CH), lambda n, i: (0, 0)),            # bias
        ],
        out_specs=(pl.BlockSpec((1, TH, W, CH), lambda n, i: (n, i, 0, 0)),
                   pl.BlockSpec((1, TH, W, CH), lambda n, i: (n, i, 0, 0))),
        compiler_params=pltpu.CompilerParams(
            dimension_semantics=("parallel", "parallel"),
            vmem_limit_bytes=32 * 1024 * 1024),
    )(xh_blocks, c32, w_all, b_all)

    return ch, cc


@jax.jit
def conv_lstm_cell_pallas(x_nchw, h_nchw, c_nchw, wx_hwio, wh_hwio, bias):
    """NCHW adapter matching the PyTorch module's interface."""
    # TODO(synk): in a recurrent loop call conv_lstm_cell_nhwc directly and keep
    # h (bf16) / c (f32) in NHWC across timesteps; these transposes are glue.
    x = jnp.transpose(x_nchw, (0, 2, 3, 1)).astype(jnp.float32)
    h = jnp.transpose(h_nchw, (0, 2, 3, 1)).astype(jnp.float32)
    c = jnp.transpose(c_nchw, (0, 2, 3, 1)).astype(jnp.float32)
    ch, cc = conv_lstm_cell_nhwc(x, h, c, wx_hwio, wh_hwio, bias)
    ch = ch.astype(jnp.float32)
    return jnp.transpose(ch, (0, 3, 1, 2)), jnp.transpose(cc, (0, 3, 1, 2))


# ----------------------- pure-JAX reference (for checking) -----------------
def _conv_nhwc(x, w_hwio, b):
    y = lax.conv_general_dilated(
        x, w_hwio, window_strides=(1, 1), padding="SAME",
        dimension_numbers=("NHWC", "HWIO", "NHWC"),
        preferred_element_type=jnp.float32,
        precision=lax.Precision.HIGHEST)
    return y + b[None, None, None, :]


def conv_lstm_cell_ref(x_nchw, h_nchw, c_nchw, params, dtype=jnp.float32):
    """Faithful per-gate transcription of the PyTorch module (8 convs)."""
    cast = lambda a: a.astype(dtype)
    x = cast(jnp.transpose(x_nchw, (0, 2, 3, 1)))
    h = cast(jnp.transpose(h_nchw, (0, 2, 3, 1)))
    c = jnp.transpose(c_nchw, (0, 2, 3, 1)).astype(jnp.float32)

    def conv(a, w, b):
        return _conv_nhwc(a, cast(params[w]), params[b].astype(jnp.float32))

    ci = jax.nn.sigmoid(conv(x, "wxi", "bxi") + conv(h, "whi", "bhi"))
    cf = jax.nn.sigmoid(conv(x, "wxf", "bxf") + conv(h, "whf", "bhf"))
    cc = cf * c + ci * jnp.tanh(conv(x, "wxc", "bxc") + conv(h, "whc", "bhc"))
    co = jax.nn.sigmoid(conv(x, "wxo", "bxo") + conv(h, "who", "bho"))
    ch = co * jnp.tanh(cc)
    return (jnp.transpose(ch, (0, 3, 1, 2)), jnp.transpose(cc, (0, 3, 1, 2)))


if __name__ == "__main__":
    # Small shapes consistent with the module.
    N, CIN, CH, H, W, K = 2, 4, 32, 16, 16, 3

    key = jax.random.PRNGKey(0)
    keys = jax.random.split(key, 20)

    def w_x(k):  # HWIO, input_channels -> hidden_channels
        return 0.1 * jax.random.normal(k, (K, K, CIN, CH), jnp.float32)

    def w_h(k):  # HWIO, hidden_channels -> hidden_channels
        return 0.1 * jax.random.normal(k, (K, K, CH, CH), jnp.float32)

    def b(k):
        return 0.1 * jax.random.normal(k, (CH,), jnp.float32)

    params = {
        "wxi": w_x(keys[0]), "bxi": b(keys[1]),
        "whi": w_h(keys[2]), "bhi": b(keys[3]),
        "wxf": w_x(keys[4]), "bxf": b(keys[5]),
        "whf": w_h(keys[6]), "bhf": b(keys[7]),
        "wxc": w_x(keys[8]), "bxc": b(keys[9]),
        "whc": w_h(keys[10]), "bhc": b(keys[11]),
        "wxo": w_x(keys[12]), "bxo": b(keys[13]),
        "who": w_h(keys[14]), "bho": b(keys[15]),
    }

    # Fuse the 8 convs into two grouped convs, gate order [i, f, g(c), o].
    wx_all = jnp.concatenate(
        [params["wxi"], params["wxf"], params["wxc"], params["wxo"]], axis=-1)
    wh_all = jnp.concatenate(
        [params["whi"], params["whf"], params["whc"], params["who"]], axis=-1)
    b_all = jnp.concatenate([
        params["bxi"] + params["bhi"],
        params["bxf"] + params["bhf"],
        params["bxc"] + params["bhc"],
        params["bxo"] + params["bho"],
    ], axis=0)

    # Inputs (NCHW, like the PyTorch module).
    x = jax.random.normal(keys[16], (N, CIN, H, W), jnp.float32)
    h = jax.random.normal(keys[17], (N, CH, H, W), jnp.float32)
    c = jax.random.normal(keys[18], (N, CH, H, W), jnp.float32)

    ch_k, cc_k = conv_lstm_cell_pallas(x, h, c, wx_all, wh_all, b_all)
    jax.block_until_ready((ch_k, cc_k))

    # Tight check vs a reference run at the kernel's MXU precision
    # (bf16 operands, f32 accumulation; ch carries one extra bf16 rounding).
    ch_b, cc_b = conv_lstm_cell_ref(x, h, c, params, dtype=jnp.bfloat16)
    np.testing.assert_allclose(np.asarray(ch_k), np.asarray(ch_b),
                               rtol=1e-2, atol=1e-2)
    np.testing.assert_allclose(np.asarray(cc_k), np.asarray(cc_b),
                               rtol=1e-2, atol=1e-2)

    # Loose sanity check vs the full-f32 reference (bf16 rounding budget).
    ch_r, cc_r = conv_lstm_cell_ref(x, h, c, params, dtype=jnp.float32)
    np.testing.assert_allclose(np.asarray(ch_k), np.asarray(ch_r),
                               rtol=1e-1, atol=1e-1)
    np.testing.assert_allclose(np.asarray(cc_k), np.asarray(cc_r),
                               rtol=1e-1, atol=1e-1)

    print("KERNEL_OK")
</pallas_src>

<mosaic_0001>
module attributes {stable_mosaic.version = 11 : i64} {
  func.func @_convlstm_kernel(%arg0: i32, %arg1: i32, %arg2: memref<1x1x18x18x36xbf16, #tpu.memory_space<vmem>>, %arg3: memref<1x16x16x32xf32, #tpu.memory_space<vmem>>, %arg4: memref<9x36x128xbf16, #tpu.memory_space<vmem>>, %arg5: memref<1x128xf32, #tpu.memory_space<vmem>>, %arg6: memref<1x16x16x32xbf16, #tpu.memory_space<vmem>>, %arg7: memref<1x16x16x32xf32, #tpu.memory_space<vmem>>) attributes {dimension_semantics = [#tpu.dimension_semantics<parallel>, #tpu.dimension_semantics<parallel>], iteration_bounds = array<i64: 2, 1>, scalar_prefetch = 0 : i64, scratch_operands = 0 : i64, tpu.core_type = #tpu.core_type<tc>, window_params = [{transform_indices = @transform_0, window_bounds = array<i64: 1, 1, 18, 18, 36>}, {transform_indices = @transform_1, window_bounds = array<i64: 1, 16, 16, 32>}, {pipeline_mode = #tpu.pipeline_mode<synchronous>, transform_indices = @transform_2, window_bounds = array<i64: 9, 36, 128>}, {pipeline_mode = #tpu.pipeline_mode<synchronous>, transform_indices = @transform_3, window_bounds = array<i64: 1, 128>}, {transform_indices = @transform_4, window_bounds = array<i64: 1, 16, 16, 32>}, {transform_indices = @transform_5, window_bounds = array<i64: 1, 16, 16, 32>}]} {
    %c0 = arith.constant 0 : index
    %c0_0 = arith.constant 0 : index
    %c0_1 = arith.constant 0 : index
    %c0_2 = arith.constant 0 : index
    %c0_3 = arith.constant 0 : index
    %0 = vector.load %arg2[%c0, %c0_0, %c0_1, %c0_2, %c0_3] : memref<1x1x18x18x36xbf16, #tpu.memory_space<vmem>>, vector<1x1x18x18x36xbf16>
    %1 = vector.shape_cast %0 : vector<1x1x18x18x36xbf16> to vector<18x18x36xbf16>
    %cst = arith.constant 0.000000e+00 : f32
    %2 = vector.broadcast %cst : f32 to vector<256x128xf32>
    %3 = vector.extract_strided_slice %1 {offsets = [0, 0, 0], sizes = [16, 16, 36], strides = [1, 1, 1]} : vector<18x18x36xbf16> to vector<16x16x36xbf16>
    %4 = vector.shape_cast %3 : vector<16x16x36xbf16> to vector<256x36xbf16>
    %c0_4 = arith.constant 0 : index
    %c0_5 = arith.constant 0 : index
    %c0_6 = arith.constant 0 : index
    %5 = vector.load %arg4[%c0_4, %c0_5, %c0_6] : memref<9x36x128xbf16, #tpu.memory_space<vmem>>, vector<1x36x128xbf16>
    %6 = vector.shape_cast %5 : vector<1x36x128xbf16> to vector<36x128xbf16>
    %cst_7 = arith.constant dense<0.000000e+00> : vector<256x128xf32>
    %7 = tpu.matmul %4, %6, %cst_7 {dimension_numbers = #tpu.dot_dimension_numbers<[1], [0], [0], [1], [0, 0, 1, 1], [], []>} : vector<256x36xbf16>, vector<36x128xbf16>, vector<256x128xf32> -> vector<256x128xf32>
    %8 = arith.addf %2, %7 : vector<256x128xf32>
    %9 = vector.extract_strided_slice %1 {offsets = [0, 1, 0], sizes = [16, 16, 36], strides = [1, 1, 1]} : vector<18x18x36xbf16> to vector<16x16x36xbf16>
    %10 = vector.shape_cast %9 : vector<16x16x36xbf16> to vector<256x36xbf16>
    %c1 = arith.constant 1 : index
    %c0_8 = arith.constant 0 : index
    %c0_9 = arith.constant 0 : index
    %11 = vector.load %arg4[%c1, %c0_8, %c0_9] : memref<9x36x128xbf16, #tpu.memory_space<vmem>>, vector<1x36x128xbf16>
    %12 = vector.shape_cast %11 : vector<1x36x128xbf16> to vector<36x128xbf16>
    %cst_10 = arith.constant dense<0.000000e+00> : vector<256x128xf32>
    %13 = tpu.matmul %10, %12, %cst_10 {dimension_numbers = #tpu.dot_dimension_numbers<[1], [0], [0], [1], [0, 0, 1, 1], [], []>} : vector<256x36xbf16>, vector<36x128xbf16>, vector<256x128xf32> -> vector<256x128xf32>
    %14 = arith.addf %8, %13 : vector<256x128xf32>
    %15 = vector.extract_strided_slice %1 {offsets = [0, 2, 0], sizes = [16, 16, 36], strides = [1, 1, 1]} : vector<18x18x36xbf16> to vector<16x16x36xbf16>
    %16 = vector.shape_cast %15 : vector<16x16x36xbf16> to vector<256x36xbf16>
    %c2 = arith.constant 2 : index
    %c0_11 = arith.constant 0 : index
    %c0_12 = arith.constant 0 : index
    %17 = vector.load %arg4[%c2, %c0_11, %c0_12] : memref<9x36x128xbf16, #tpu.memory_space<vmem>>, vector<1x36x128xbf16>
    %18 = vector.shape_cast %17 : vector<1x36x128xbf16> to vector<36x128xbf16>
    %cst_13 = arith.constant dense<0.000000e+00> : vector<256x128xf32>
    %19 = tpu.matmul %16, %18, %cst_13 {dimension_numbers = #tpu.dot_dimension_numbers<[1], [0], [0], [1], [0, 0, 1, 1], [], []>} : vector<256x36xbf16>, vector<36x128xbf16>, vector<256x128xf32> -> vector<256x128xf32>
    %20 = arith.addf %14, %19 : vector<256x128xf32>
    %21 = vector.extract_strided_slice %1 {offsets = [1, 0, 0], sizes = [16, 16, 36], strides = [1, 1, 1]} : vector<18x18x36xbf16> to vector<16x16x36xbf16>
    %22 = vector.shape_cast %21 : vector<16x16x36xbf16> to vector<256x36xbf16>
    %c3 = arith.constant 3 : index
    %c0_14 = arith.constant 0 : index
    %c0_15 = arith.constant 0 : index
    %23 = vector.load %arg4[%c3, %c0_14, %c0_15] : memref<9x36x128xbf16, #tpu.memory_space<vmem>>, vector<1x36x128xbf16>
    %24 = vector.shape_cast %23 : vector<1x36x128xbf16> to vector<36x128xbf16>
    %cst_16 = arith.constant dense<0.000000e+00> : vector<256x128xf32>
    %25 = tpu.matmul %22, %24, %cst_16 {dimension_numbers = #tpu.dot_dimension_numbers<[1], [0], [0], [1], [0, 0, 1, 1], [], []>} : vector<256x36xbf16>, vector<36x128xbf16>, vector<256x128xf32> -> vector<256x128xf32>
    %26 = arith.addf %20, %25 : vector<256x128xf32>
    %27 = vector.extract_strided_slice %1 {offsets = [1, 1, 0], sizes = [16, 16, 36], strides = [1, 1, 1]} : vector<18x18x36xbf16> to vector<16x16x36xbf16>
    %28 = vector.shape_cast %27 : vector<16x16x36xbf16> to vector<256x36xbf16>
    %c4 = arith.constant 4 : index
    %c0_17 = arith.constant 0 : index
    %c0_18 = arith.constant 0 : index
    %29 = vector.load %arg4[%c4, %c0_17, %c0_18] : memref<9x36x128xbf16, #tpu.memory_space<vmem>>, vector<1x36x128xbf16>
    %30 = vector.shape_cast %29 : vector<1x36x128xbf16> to vector<36x128xbf16>
    %cst_19 = arith.constant dense<0.000000e+00> : vector<256x128xf32>
    %31 = tpu.matmul %28, %30, %cst_19 {dimension_numbers = #tpu.dot_dimension_numbers<[1], [0], [0], [1], [0, 0, 1, 1], [], []>} : vector<256x36xbf16>, vector<36x128xbf16>, vector<256x128xf32> -> vector<256x128xf32>
    %32 = arith.addf %26, %31 : vector<256x128xf32>
    %33 = vector.extract_strided_slice %1 {offsets = [1, 2, 0], sizes = [16, 16, 36], strides = [1, 1, 1]} : vector<18x18x36xbf16> to vector<16x16x36xbf16>
    %34 = vector.shape_cast %33 : vector<16x16x36xbf16> to vector<256x36xbf16>
    %c5 = arith.constant 5 : index
    %c0_20 = arith.constant 0 : index
    %c0_21 = arith.constant 0 : index
    %35 = vector.load %arg4[%c5, %c0_20, %c0_21] : memref<9x36x128xbf16, #tpu.memory_space<vmem>>, vector<1x36x128xbf16>
    %36 = vector.shape_cast %35 : vector<1x36x128xbf16> to vector<36x128xbf16>
    %cst_22 = arith.constant dense<0.000000e+00> : vector<256x128xf32>
    %37 = tpu.matmul %34, %36, %cst_22 {dimension_numbers = #tpu.dot_dimension_numbers<[1], [0], [0], [1], [0, 0, 1, 1], [], []>} : vector<256x36xbf16>, vector<36x128xbf16>, vector<256x128xf32> -> vector<256x128xf32>
    %38 = arith.addf %32, %37 : vector<256x128xf32>
    %39 = vector.extract_strided_slice %1 {offsets = [2, 0, 0], sizes = [16, 16, 36], strides = [1, 1, 1]} : vector<18x18x36xbf16> to vector<16x16x36xbf16>
    %40 = vector.shape_cast %39 : vector<16x16x36xbf16> to vector<256x36xbf16>
    %c6 = arith.constant 6 : index
    %c0_23 = arith.constant 0 : index
    %c0_24 = arith.constant 0 : index
    %41 = vector.load %arg4[%c6, %c0_23, %c0_24] : memref<9x36x128xbf16, #tpu.memory_space<vmem>>, vector<1x36x128xbf16>
    %42 = vector.shape_cast %41 : vector<1x36x128xbf16> to vector<36x128xbf16>
    %cst_25 = arith.constant dense<0.000000e+00> : vector<256x128xf32>
    %43 = tpu.matmul %40, %42, %cst_25 {dimension_numbers = #tpu.dot_dimension_numbers<[1], [0], [0], [1], [0, 0, 1, 1], [], []>} : vector<256x36xbf16>, vector<36x128xbf16>, vector<256x128xf32> -> vector<256x128xf32>
    %44 = arith.addf %38, %43 : vector<256x128xf32>
    %45 = vector.extract_strided_slice %1 {offsets = [2, 1, 0], sizes = [16, 16, 36], strides = [1, 1, 1]} : vector<18x18x36xbf16> to vector<16x16x36xbf16>
    %46 = vector.shape_cast %45 : vector<16x16x36xbf16> to vector<256x36xbf16>
    %c7 = arith.constant 7 : index
    %c0_26 = arith.constant 0 : index
    %c0_27 = arith.constant 0 : index
    %47 = vector.load %arg4[%c7, %c0_26, %c0_27] : memref<9x36x128xbf16, #tpu.memory_space<vmem>>, vector<1x36x128xbf16>
    %48 = vector.shape_cast %47 : vector<1x36x128xbf16> to vector<36x128xbf16>
    %cst_28 = arith.constant dense<0.000000e+00> : vector<256x128xf32>
    %49 = tpu.matmul %46, %48, %cst_28 {dimension_numbers = #tpu.dot_dimension_numbers<[1], [0], [0], [1], [0, 0, 1, 1], [], []>} : vector<256x36xbf16>, vector<36x128xbf16>, vector<256x128xf32> -> vector<256x128xf32>
    %50 = arith.addf %44, %49 : vector<256x128xf32>
    %51 = vector.extract_strided_slice %1 {offsets = [2, 2, 0], sizes = [16, 16, 36], strides = [1, 1, 1]} : vector<18x18x36xbf16> to vector<16x16x36xbf16>
    %52 = vector.shape_cast %51 : vector<16x16x36xbf16> to vector<256x36xbf16>
    %c8 = arith.constant 8 : index
    %c0_29 = arith.constant 0 : index
    %c0_30 = arith.constant 0 : index
    %53 = vector.load %arg4[%c8, %c0_29, %c0_30] : memref<9x36x128xbf16, #tpu.memory_space<vmem>>, vector<1x36x128xbf16>
    %54 = vector.shape_cast %53 : vector<1x36x128xbf16> to vector<36x128xbf16>
    %cst_31 = arith.constant dense<0.000000e+00> : vector<256x128xf32>
    %55 = tpu.matmul %52, %54, %cst_31 {dimension_numbers = #tpu.dot_dimension_numbers<[1], [0], [0], [1], [0, 0, 1, 1], [], []>} : vector<256x36xbf16>, vector<36x128xbf16>, vector<256x128xf32> -> vector<256x128xf32>
    %56 = arith.addf %50, %55 : vector<256x128xf32>
    %c0_32 = arith.constant 0 : index
    %c0_33 = arith.constant 0 : index
    %57 = vector.load %arg5[%c0_32, %c0_33] : memref<1x128xf32, #tpu.memory_space<vmem>>, vector<1x128xf32>
    %58 = vector.broadcast %57 : vector<1x128xf32> to vector<256x128xf32>
    %59 = arith.addf %56, %58 : vector<256x128xf32>
    %60 = tpu.iota {dimensions = array<i32: 1>} : vector<1x128xi32>
    %c64_i32 = arith.constant 64 : i32
    %61 = vector.broadcast %c64_i32 : i32 to vector<1x128xi32>
    %62 = arith.cmpi sge, %60, %61 : vector<1x128xi32>
    %c96_i32 = arith.constant 96 : i32
    %63 = vector.broadcast %c96_i32 : i32 to vector<1x128xi32>
    %64 = arith.cmpi slt, %60, %63 : vector<1x128xi32>
    %65 = arith.andi %62, %64 : vector<1x128xi1>
    %cst_34 = arith.constant 1.000000e+00 : f32
    %cst_35 = arith.constant 5.000000e-01 : f32
    %66 = vector.broadcast %cst_34 : f32 to vector<1x128xf32>
    %67 = vector.broadcast %cst_35 : f32 to vector<1x128xf32>
    %68 = arith.select %65, %66, %67 : vector<1x128xi1>, vector<1x128xf32>
    %cst_36 = arith.constant 0.000000e+00 : f32
    %cst_37 = arith.constant 5.000000e-01 : f32
    %69 = vector.broadcast %cst_36 : f32 to vector<1x128xf32>
    %70 = vector.broadcast %cst_37 : f32 to vector<1x128xf32>
    %71 = arith.select %65, %69, %70 : vector<1x128xi1>, vector<1x128xf32>
    %72 = vector.broadcast %68 : vector<1x128xf32> to vector<256x128xf32>
    %73 = arith.mulf %59, %72 : vector<256x128xf32>
    %74 = math.tanh %73 : vector<256x128xf32>
    %75 = vector.broadcast %68 : vector<1x128xf32> to vector<256x128xf32>
    %76 = arith.mulf %74, %75 : vector<256x128xf32>
    %77 = vector.broadcast %71 : vector<1x128xf32> to vector<256x128xf32>
    %78 = arith.addf %76, %77 : vector<256x128xf32>
    %79 = vector.extract_strided_slice %78 {offsets = [0, 0], sizes = [256, 32], strides = [1, 1]} : vector<256x128xf32> to vector<256x32xf32>
    %80 = vector.extract_strided_slice %78 {offsets = [0, 32], sizes = [256, 32], strides = [1, 1]} : vector<256x128xf32> to vector<256x32xf32>
    %81 = vector.extract_strided_slice %78 {offsets = [0, 64], sizes = [256, 32], strides = [1, 1]} : vector<256x128xf32> to vector<256x32xf32>
    %82 = vector.extract_strided_slice %78 {offsets = [0, 96], sizes = [256, 32], strides = [1, 1]} : vector<256x128xf32> to vector<256x32xf32>
    %c0_38 = arith.constant 0 : index
    %c0_39 = arith.constant 0 : index
    %c0_40 = arith.constant 0 : index
    %c0_41 = arith.constant 0 : index
    %83 = vector.load %arg3[%c0_38, %c0_39, %c0_40, %c0_41] : memref<1x16x16x32xf32, #tpu.memory_space<vmem>>, vector<1x16x16x32xf32>
    %84 = vector.shape_cast %83 : vector<1x16x16x32xf32> to vector<16x16x32xf32>
    %85 = vector.shape_cast %84 : vector<16x16x32xf32> to vector<256x32xf32>
    %86 = arith.mulf %80, %85 : vector<256x32xf32>
    %87 = arith.mulf %79, %81 : vector<256x32xf32>
    %88 = arith.addf %86, %87 : vector<256x32xf32>
    %89 = math.tanh %88 : vector<256x32xf32>
    %90 = arith.mulf %82, %89 : vector<256x32xf32>
    %91 = vector.shape_cast %88 : vector<256x32xf32> to vector<16x16x32xf32>
    %c0_42 = arith.constant 0 : index
    %c0_43 = arith.constant 0 : index
    %c0_44 = arith.constant 0 : index
    %c0_45 = arith.constant 0 : index
    %92 = vector.load %arg7[%c0_42, %c0_43, %c0_44, %c0_45] : memref<1x16x16x32xf32, #tpu.memory_space<vmem>>, vector<1x16x16x32xf32>
    %93 = vector.shape_cast %92 : vector<1x16x16x32xf32> to vector<16x16x32xf32>
    %94 = vector.shape_cast %91 : vector<16x16x32xf32> to vector<1x16x16x32xf32>
    tpu.vector_store %arg7[%c0_42, %c0_43, %c0_44, %c0_45], %94 {strides = array<i32>} : memref<1x16x16x32xf32, #tpu.memory_space<vmem>>, vector<1x16x16x32xf32>,
    %95 = vector.shape_cast %90 : vector<256x32xf32> to vector<16x16x32xf32>
    %96 = arith.truncf %95 : vector<16x16x32xf32> to vector<16x16x32xbf16>
    %c0_46 = arith.constant 0 : index
    %c0_47 = arith.constant 0 : index
    %c0_48 = arith.constant 0 : index
    %c0_49 = arith.constant 0 : index
    %97 = vector.load %arg6[%c0_46, %c0_47, %c0_48, %c0_49] : memref<1x16x16x32xbf16, #tpu.memory_space<vmem>>, vector<1x16x16x32xbf16>
    %98 = vector.shape_cast %97 : vector<1x16x16x32xbf16> to vector<16x16x32xbf16>
    %99 = vector.shape_cast %96 : vector<16x16x32xbf16> to vector<1x16x16x32xbf16>
    tpu.vector_store %arg6[%c0_46, %c0_47, %c0_48, %c0_49], %99 {strides = array<i32>} : memref<1x16x16x32xbf16, #tpu.memory_space<vmem>>, vector<1x16x16x32xbf16>,
    return
  }
  func.func @transform_0(%arg0: i32, %arg1: i32) -> (i32, i32, i32, i32, i32) {
    %c0_i32 = arith.constant 0 : i32
    %c0_i32_0 = arith.constant 0 : i32
    %c0_i32_1 = arith.constant 0 : i32
    %c0_i32_2 = arith.constant 0 : i32
    return %arg0, %arg1, %c0_i32, %c0_i32_0, %c0_i32_1 : i32, i32, i32, i32, i32
  }
  func.func @transform_1(%arg0: i32, %arg1: i32) -> (i32, i32, i32, i32) {
    %c0_i32 = arith.constant 0 : i32
    %c0_i32_0 = arith.constant 0 : i32
    %c0_i32_1 = arith.constant 0 : i32
    return %arg0, %arg1, %c0_i32, %c0_i32_0 : i32, i32, i32, i32
  }
  func.func @transform_2(%arg0: i32, %arg1: i32) -> (i32, i32, i32) {
    %c0_i32 = arith.constant 0 : i32
    %c0_i32_0 = arith.constant 0 : i32
    %c0_i32_1 = arith.constant 0 : i32
    %c0_i32_2 = arith.constant 0 : i32
    return %c0_i32, %c0_i32_0, %c0_i32_1 : i32, i32, i32
  }
  func.func @transform_3(%arg0: i32, %arg1: i32) -> (i32, i32) {
    %c0_i32 = arith.constant 0 : i32
    %c0_i32_0 = arith.constant 0 : i32
    %c0_i32_1 = arith.constant 0 : i32
    return %c0_i32, %c0_i32_0 : i32, i32
  }
  func.func @transform_4(%arg0: i32, %arg1: i32) -> (i32, i32, i32, i32) {
    %c0_i32 = arith.constant 0 : i32
    %c0_i32_0 = arith.constant 0 : i32
    %c0_i32_1 = arith.constant 0 : i32
    return %arg0, %arg1, %c0_i32, %c0_i32_0 : i32, i32, i32, i32
  }
  func.func @transform_5(%arg0: i32, %arg1: i32) -> (i32, i32, i32, i32) {
    %c0_i32 = arith.constant 0 : i32
    %c0_i32_0 = arith.constant 0 : i32
    %c0_i32_1 = arith.constant 0 : i32
    return %arg0, %arg1, %c0_i32, %c0_i32_0 : i32, i32, i32, i32
  }
}

</mosaic_0001>

<bundles_post_ra>
// kernel: conv_lstm_cell_pallas.1
= control target key start
LH: loop header
LB: loop body
LE: loop exit
PB: predicated region body
PF: predicated region fallthrough
CT: control target
= control target key end

     0   :  { %11 = vsyncpa [#allocation3], 0  ;;  %s8288_s0 = inlined_call_operand.vmem [shape: bf16[2,1,18,18,36], index: 0, kind: input, shape index: {}]   ;;  %s8289_s1 = inlined_call_operand.vmem [shape: f32[2,16,16,32], index: 1, kind: input, shape index: {}]   ;;  %s8290_s2 = inlined_call_operand.vmem [shape: bf16[9,36,128], index: 2, kind: input, shape index: {}]   ;;  %s8291_s3 = inlined_call_operand.vmem [shape: f32[1,128], index: 3, kind: input, shape index: {}]   ;;  %s8292_s4 = inlined_call_operand.vmem [shape: bf16[2,16,16,32], index: 4, kind: output, shape index: {0}]   ;;  %s8293_s5 = inlined_call_operand.hbm [shape: f32[2,16,16,32], index: 5, kind: output, shape index: {1}]  }
   0x1   :  { %13 = vsyncpa [#allocation3 + $0x1], 0  ;;  %s5892_s18 = smov 0   ;;  %s5894_s19 = smov 0  }
   0x2   :  { %s5896_s20 = smov 0   ;;  %s5898_s21 = smov 0  }
   0x3   :  { %s5900_s22 = smov 0   ;;  %s5902_s23 = smov 0  }
   0x4 LB: > { %s4644_s24 = sadd.s32 4294967295, %s5853_s23   ;;  %s4645_s25 = sadd.s32 4294967294, %s5853_s23   ;;  %s5853_s23 = sphi %s5902_s23, %s19_s23   ;;  %s5849_s22 = sphi %s5900_s22, %s8501_s22   ;;  %s5845_s21 = sphi %s5898_s21, %s8500_s21   ;;  %s5841_s20 = sphi %s5896_s20, %s8499_s20   ;;  %s5837_s19 = sphi %s5894_s19, %s8498_s19   ;;  %s5833_s18 = sphi %s5892_s18, %s8497_s18  }
   0x5   : > { %s31_s26 = sadd.s32 1, %s5849_s22  ;;  %s166_s27 = sadd.s32 1, %s5841_s20 }
   0x6   : > { %p33_p0 = scmp.ge.s32.totalorder %s31_s26, 2  ;;  %p176_p1 = scmp.ne.s32.totalorder %s5841_s20, %s5837_s19 }
   0x7   : > { %p177_p2 = scmp.eq.s32.totalorder %s4644_s24, 1  ;;  %p182_p3 = scmp.ne.s32.totalorder %s5837_s19, %s5833_s18 }
   0x8   : > { %s8503_s26 = smov (%p33_p0, %s31_s26), 0  ;;  %p183_p5 = scmp.eq.s32.totalorder %s4645_s25, 1 }
   0x9   : > { %p5932_p4 = por %p177_p2, %p176_p1  ;;  %s161_s29 = ssub.s32 %s5849_s22, %s8503_s26 }
   0xa   : > { %p4648_p6 = scmp.ge.s32.totalorder %s5853_s23, 1  ;;  %p164_p7 = scmp.eq.s32.totalorder %s161_s29, 0 }
   0xb   : > { %p5939_p8 = por %p183_p5, %p182_p3  ;;  %p233_p9 = scmp.lt.s32.totalorder %s5853_s23, 3 }
   0xc   : > { %s5945_s6 = scalar_select %p164_p7, %s5841_s20, %s166_s27  }
   0xd   : > { %p234_p10 = pnand %p4648_p6, %p233_p9 }
   0xf   : > { %237 = sbr.rel (%p234_p10) target bundleno = 1133 (0x46d), region = 36 }
  0x14   : > { %v5602_v0 = vld [vmem:[%s8290_s2 + $0x24] ss:$0 sps:$4 sm:$0x33]   ;;  %vm882_vm0 = vcmask 1041408   ;;  %v5603_v1 = vld [vmem:[%s8290_s2 + $0x1c] sm:$0xff]   ;;  %p285_p11 = scmp.lt.s32.totalorder %s5845_s21, 1 }
  0x15   : > { %5531 = vmatprep.subr.msk.bf16.mxu1 %vm882_vm0, %v5602_v0  ;;  %5530 = vmatprep.subr.msk.bf16.mxu0 %vm882_vm0, %v5602_v0  ;;  %v884_v2 = vsel %vm882_vm0, %v5602_v0, 0  ;;  %vm377_vm1 = vsmask.f32 3328  ;;  %v5604_v3 = vld [vmem:[%s8290_s2 + $0x14] sm:$0xff]   ;;  %vm378_vm2 = vsmask.f32 7440 }
  0x16   : > { %5527 = vmatpush3.bf16.msra.mxu1 %v884_v2  ;;  %5183 = vmatpush3.bf16.msra.mxu0 %v884_v2  ;;  %s5958_s11 = scalar_select %p285_p11, %s5845_s21, 1  ;;  %v5605_v4 = vld [vmem:[%s8290_s2 + $0x10] ss:$0 sps:$4 sm:$0x33]   ;;  %vm833_vm3 = vcmask 293888   ;;  %vm6019_vm4 = vmor %vm377_vm1, %vm378_vm2  ;;  %v8339_v33 = vmov 0 }
  0x17   : > { %5525 = vmatprep.subr.bf16.mxu1 %v5603_v1  ;;  %5184 = vmatprep.subr.bf16.mxu0 %v5603_v1  ;;  %v5606_v5 = vld [vmem:[%s8290_s2 + $0x38] ss:$0 sps:$4 sm:$0x33]   ;;  %v5976_v6 = vsel %vm882_vm0, %v5605_v4, 0  ;;  %v8340_v33 = vsel %vm6019_vm4, 4294967295, %v8339_v33  ;;  %vm1370_vm5 = vcmask 1042432  }
  0x18   : > { %s5540_s16 = smul.u32 216, %s5958_s11  ;;  %v6002_v18 = vsel %vm882_vm0, %v5606_v5, 0  ;;  %8341 = vst [vmem:[#allocation5_spill] sm:$0xff] %v8340_v33  ;;  %vm1371_vm6 = vcmask 1046532   ;;  %s4976_s13 = sshll.u32 %s5958_s11, 8  ;;  %vm4210_vm11 = vcmask 261120  }
  0x19   : > { %vm6356_vm7 = vmor %vm1370_vm5, %vm1371_vm6  ;;  %s5855_s17 = smov 32   ;;  %s5857_s25 = smov 64  }
  0x1a   : > { %5528 = vmatpush3.bf16.msra.mxu1 %v5603_v1  ;;  %5185 = vmatpush3.bf16.msra.mxu0 %v5603_v1  ;;  %s5973_s29 = scalar_lea.vmem %s8288_s0, %s5540_s16  ;;  %s6892_s16 = scalar_lea.vmem %s8289_s1, %s4976_s13 }
  0x1b   : > { %5526 = vmatprep.subr.bf16.mxu1 %v5604_v3  ;;  %5186 = vmatprep.subr.bf16.mxu0 %v5604_v3  ;;  %v5979_v7 = vld [vmem:[%s5973_s29] sm:$0xf]  ;;  %v5982_v8 = vld [vmem:[%s5973_s29 + $0x4] sm:$0xf]  ;;  %v5985_v9 = vld [vmem:[%s5973_s29 + $0x8] sm:$0x1] }
  0x1c   : > { %v381_v10 = vshrl.u32 %v5979_v7, 16  ;;  %v384_v11 = vshll.u32 %v5979_v7, 16  ;;  %v390_v12 = vshll.u32 %v5982_v8, 16  ;;  %v394_v13 = vshrl.u32 %v5982_v8, 16  ;;  %v5992_v14 = vld [vmem:[%s5973_s29 + $0x60] sm:$0xf] }
  0x1d   : > { %v400_v15 = vshll.u32 %v5985_v9, 16  ;;  %v5996_v16 = vld [vmem:[%s5973_s29 + $0x64] sm:$0xf]  ;;  %v5999_v17 = vld [vmem:[%s5973_s29 + $0x68] sm:$0x1]  ;;  %v573_v24 = vshrl.u32 %v5992_v14, 16 }
  0x1e   : > { %5529 = vmatpush3.bf16.msra.mxu1 %v5604_v3  ;;  %5187 = vmatpush3.bf16.msra.mxu0 %v5604_v3  ;;  %v383_v19 = vrot.slane %v381_v10, 4  ;;  %v386_v20 = vrot.slane %v384_v11, 5  ;;  %v392_v21 = vrot.slane %v390_v12, 5  ;;  %v396_v22 = vrot.slane %v394_v13, 4  ;;  %v6012_v31 = vld [vmem:[%s5973_s29 + $0xc] sm:$0xf] }
  0x1f   : > { %v402_v23 = vrot.slane %v400_v15, 5  ;;  %v576_v25 = vshll.u32 %v5992_v14, 16  ;;  %v582_v26 = vshll.u32 %v5996_v16, 16  ;;  %5532 = vmatprep.subr.msk.bf16.mxu1 %vm882_vm0, %v5605_v4  ;;  %5533 = vmatprep.subr.msk.bf16.mxu0 %vm882_vm0, %v5606_v5  ;;  %v586_v29 = vshrl.u32 %v5996_v16, 16  ;;  %v6015_v32 = vld [vmem:[%s5973_s29 + $0x10] sm:$0xf] }
  0x20   : > { %v387_v27 = vor.u32 %v386_v20, %v383_v19  ;;  %v397_v28 = vor.u32 %v396_v22, %v392_v21  ;;  %v592_v30 = vshll.u32 %v5999_v17, 16  ;;  %v575_v35 = vrot.slane %v573_v24, 4  ;;  %v6025_v43 = vld [vmem:[%s5973_s29 + $0x14] sm:$0x1]  ;;  %v6036_v55 = vld [vmem:[%s5973_s29 + $0x6c] sm:$0xf] }
  0x21   : > { %v578_v36 = vrot.slane %v576_v25, 5  ;;  %v584_v37 = vrot.slane %v582_v26, 5  ;;  %v588_v40 = vrot.slane %v586_v29, 4  ;;  %v405_v44 = vshrl.u32 %v6012_v31, 16  ;;  %8342 = vst [vmem:[#allocation6_spill] sm:$0xff] %v6036_v55  ;;  %v3393_v33 = vld [vmem:[%s6892_s16 + $0x78] sm:$0xff] }
  0x22   : > { %v388_v38 = vrot.slane %v387_v27, 4  ;;  %v398_v39 = vrot.slane %v397_v28, 4  ;;  %v594_v41 = vrot.slane %v592_v30, 5  ;;  %v408_v45 = vshll.u32 %v6012_v31, 16  ;;  %v6040_v60 = vld [vmem:[%s5973_s29 + $0x70] sm:$0xf] }
  0x23   : > { %v579_v42 = vor.u32 %v578_v36, %v575_v35  ;;  %v414_v46 = vshll.u32 %v6015_v32, 16  ;;  %v589_v49 = vor.u32 %v588_v40, %v584_v37  ;;  %v418_v50 = vshrl.u32 %v6015_v32, 16  ;;  %v6048_v1 = vld [vmem:[%s5973_s29 + $0x74] sm:$0x1]  ;;  %v6054_v10 = vld [vmem:[%s5973_s29 + $0x18] sm:$0xf] }
  0x24   : > { %v393_v47 = vsel %vm6019_vm4, %v388_v38, %v392_v21  ;;  %v403_v48 = vsel %vm6019_vm4, %v398_v39, %v402_v23  ;;  %v407_v53 = vrot.slane %v405_v44, 4  ;;  %v410_v54 = vrot.slane %v408_v45, 5  ;;  %8343 = vst [vmem:[#allocation7_spill] sm:$0xff] %v6048_v1  ;;  %v6063_v23 = vld [vmem:[%s5973_s29 + $0x1c] sm:$0xf]  ;;  %s5858_s27 = smov 96  }
  0x25   : > { %v4660_v51 = vcombine.low %v393_v47, %v403_v48  ;;  %v580_v52 = vrot.slane %v579_v42, 4  ;;  %v590_v56 = vrot.slane %v589_v49, 4  ;;  %v416_v57 = vrot.slane %v414_v46, 5  ;;  %v6070_v27 = vld [vmem:[%s5973_s29 + $0x20] sm:$0x1]  ;;  %v5608_v42 = vld [vmem:[%s8290_s2 + $0x30] sm:$0xff]  }
  0x26   : > { %v420_v58 = vrot.slane %v418_v50, 4  ;;  %v424_v59 = vshll.u32 %v6025_v43, 16  ;;  %v411_v62 = vor.u32 %v410_v54, %v407_v53  ;;  %v597_v5 = vshrl.u32 %v6036_v55, 16  ;;  %v6088_v48 = vld [vmem:[%s5973_s29 + $0x7c] sm:$0xf]  ;;  %s282_s7 = sand.u32 1, %s5837_s19  }
  0x27   : > { %5188 = vmatprep.mubr.msk.bf16.mxu0 %vm833_vm3, %v4660_v51  ;;  %v585_v61 = vsel %vm6019_vm4, %v580_v52, %v584_v37  ;;  %v595_v2 = vsel %vm6019_vm4, %v590_v56, %v594_v41  ;;  %v600_v13 = vshll.u32 %v6036_v55, 16  ;;  %v606_v15 = vshll.u32 %v6040_v60, 16  ;;  %v6077_v37 = vld [vmem:[%s5973_s29 + $0x78] sm:$0xf]  ;;  %v6239_v34 = vld [vmem:[%s5973_s29 + $0xa0] sm:$0xf] }
  0x28   : > { %v421_v3 = vor.u32 %v420_v58, %v416_v57  ;;  %v426_v4 = vrot.slane %v424_v59, 5  ;;  %v6056_v11 = vcombine.low %v585_v61, %v595_v2  ;;  %v412_v12 = vrot.slane %v411_v62, 4  ;;  %8345 = vst [vmem:[#allocation9_spill] sm:$0xff] %v6077_v37  ;;  %v6096_v58 = vld [vmem:[%s5973_s29 + $0x80] sm:$0x1]  ;;  %s4649_s8 = sshll.u32 %s282_s7, 8 }
  0x29   : > { %v599_v20 = vrot.slane %v597_v5, 4  ;;  %v610_v21 = vshrl.u32 %v6040_v60, 16  ;;  %v616_v22 = vshll.u32 %v6048_v1, 16  ;;  %v602_v25 = vrot.slane %v600_v13, 5  ;;  %8347 = vst [vmem:[#allocation11_spill] sm:$0xff] %v6096_v58  ;;  %s8025_s9 = scalar_lea.vmem [#allocation2], %s4649_s8 }
  0x2a   : > { %8344 = vst [vmem:[#allocation8_spill] sm:$0xff] %v6056_v11  ;;  %v422_v19 = vrot.slane %v421_v3, 4  ;;  %5204 = vmatprep.mubr.msk.bf16.mxu1 %vm833_vm3, %v6056_v11  ;;  %v417_v24 = vsel %vm6019_vm4, %v412_v12, %v416_v57  ;;  %v608_v26 = vrot.slane %v606_v15, 5  ;;  %v429_v28 = vshrl.u32 %v6054_v10, 16  ;;  %v6102_v3 = vld [vmem:[%s5973_s29 + $0x24] sm:$0xf] }
  0x2b   : > { %v612_v30 = vrot.slane %v610_v21, 4  ;;  %v618_v35 = vrot.slane %v616_v22, 5  ;;  %v432_v36 = vshll.u32 %v6054_v10, 16  ;;  %v603_v39 = vor.u32 %v602_v25, %v599_v20  ;;  %v6111_v15 = vld [vmem:[%s5973_s29 + $0x28] sm:$0xf]  ;;  %s5010_s10 = sshll.u32 %s5845_s21, 12 }
  0x2c   : > { %v427_v29 = vsel %vm6019_vm4, %v422_v19, %v426_v4  ;;  %v431_v40 = vrot.slane %v429_v28, 4  ;;  %v438_v41 = vshll.u32 %v6063_v23, 16  ;;  %v442_v46 = vshrl.u32 %v6063_v23, 16  ;;  %v5607_v25 = vld [vmem:[%s8290_s2 + $0x8] sm:$0xff]   ;;  %s4499_s12 = sshll.u32 %s8025_s9, 4  ;;  %s8158_s15 = scalar_lea.hbm %s8293_s5, %s5010_s10  ;;  %s8161_s12 = int_to_ptr.vmem [resolvable:$true] %s4499_s12 }
  0x2d   : > { %v6079_v38 = vcombine.low %v417_v24, %v427_v29  ;;  %v613_v44 = vor.u32 %v612_v30, %v608_v26  ;;  %v434_v45 = vrot.slane %v432_v36, 5  ;;  %v448_v47 = vshll.u32 %v6070_v27, 16  ;;  %v6117_v24 = vld [vmem:[%s5973_s29 + $0x2c] sm:$0x1]  ;;  %s5777_s21 = scalar_lea.vmem %s8161_s12, 4096 }
  0x2e   : > { %v604_v49 = vrot.slane %v603_v39, 4  ;;  %v440_v50 = vrot.slane %v438_v41, 5  ;;  %v621_v51 = vshrl.u32 %v6077_v37, 16  ;;  %v624_v52 = vshll.u32 %v6077_v37, 16  ;;  %p5778_p12 = scmp.ne.s32.totalorder %s8161_s12, %s5777_s21 }
  0x2f   : > { %8346 = vst [vmem:[#allocation10_spill] sm:$0xff] %v6079_v38  ;;  %5189 = vmatmul.mubr.msk.bf16.vlgmr.msra.gmra.mxu0 %vm833_vm3, %v6079_v38  ;;  %v614_v53 = vrot.slane %v613_v44, 4  ;;  %v435_v54 = vor.u32 %v434_v45, %v431_v40  ;;  %v444_v56 = vrot.slane %v442_v46, 4  ;;  %v450_v57 = vrot.slane %v448_v47, 5  ;;  %v6137_v47 = vld [vmem:[%s5973_s29 + $0x88] sm:$0xf] }
  0x30   : > { %5259 = vmatpush3.bf16.msra.mxu0 %v6002_v18  ;;  %v609_v59 = vsel %vm6019_vm4, %v604_v49, %v608_v26  ;;  %v623_v61 = vrot.slane %v621_v51, 4  ;;  %v626_v62 = vrot.slane %v624_v52, 5  ;;  %v630_v2 = vshll.u32 %v6088_v48, 16  ;;  %v5610_v18 = vld [vmem:[%s8290_s2 + $0x28] sm:$0xff]   ;;  %p5779_p13 = pnand %p5778_p12, %p5932_p4 }
  0x31   : > { %5260 = vmatprep.subr.bf16.mxu0 %v5608_v42  ;;  %v619_v4 = vsel %vm6019_vm4, %v614_v53, %v618_v35  ;;  %v436_v5 = vrot.slane %v435_v54, 4  ;;  %v445_v12 = vor.u32 %v444_v56, %v440_v50  ;;  %v634_v13 = vshrl.u32 %v6088_v48, 16  ;;  %v6126_v35 = vld [vmem:[%s5973_s29 + $0x84] sm:$0xf] }
  0x32   : > { %v6113_v19 = vcombine.low %v609_v59, %v619_v4  ;;  %v627_v20 = vor.u32 %v626_v62, %v623_v61  ;;  %v632_v21 = vrot.slane %v630_v2, 5  ;;  %v640_v22 = vshll.u32 %v6096_v58, 16  ;;  %p5780_p0 = pneg %p5779_p13 }
  0x33   : > { %v441_v26 = vsel %vm6019_vm4, %v436_v5, %v440_v50  ;;  %v446_v28 = vrot.slane %v445_v12, 4  ;;  %v636_v29 = vrot.slane %v634_v13, 4  ;;  %v453_v30 = vshrl.u32 %v6102_v3, 16  ;;  %v6157_v5 = vld [vmem:[%s5973_s29 + $0x30] sm:$0xf] }
  0x34   : > { %8348 = vst [vmem:[#allocation12_spill] sm:$0xff] %v6113_v19  ;;  %5261 = vmatpush3.bf16.msra.mxu0 %v5608_v42  ;;  %5205 = vmatmul.mubr.msk.bf16.vlgmr.msra.gmra.mxu1 %vm833_vm3, %v6113_v19  ;;  %v628_v36 = vrot.slane %v627_v20, 4  ;;  %v642_v39 = vrot.slane %v640_v22, 5  ;;  %v456_v40 = vshll.u32 %v6102_v3, 16  ;;  %v462_v41 = vshll.u32 %v6111_v15, 16 }
  0x35   : > { %5262 = vmatprep.subr.bf16.mxu0 %v5610_v18  ;;  %5221 = vmatpush3.bf16.msra.mxu1 %v5976_v6  ;;  %v451_v44 = vsel %vm6019_vm4, %v446_v28, %v450_v57  ;;  %v637_v45 = vor.u32 %v636_v29, %v632_v21  ;;  %v455_v46 = vrot.slane %v453_v30, 4  ;;  %v466_v42 = vshrl.u32 %v6111_v15, 16  ;;  %v5609_v6 = vld [vmem:[%s8290_s2] sm:$0xff]   ;;  %v6148_v57 = vld [vmem:[%s5973_s29 + $0x8c] sm:$0x1] }
  0x36   : > { %v6139_v49 = vcombine.low %v441_v26, %v451_v44  ;;  %v633_v50 = vsel %vm6019_vm4, %v628_v36, %v632_v21  ;;  %v458_v51 = vrot.slane %v456_v40, 5  ;;  %v464_v52 = vrot.slane %v462_v41, 5  ;;  %5222 = vmatprep.subr.bf16.mxu1 %v5607_v25  ;;  %v6173_v44 = vld [vmem:[%s5973_s29 + $0x38] sm:$0x1] }
  0x37   : > { %v638_v53 = vrot.slane %v637_v45, 4  ;;  %v468_v54 = vrot.slane %v466_v42, 4  ;;  %v472_v56 = vshll.u32 %v6117_v24, 16  ;;  %v645_v59 = vshrl.u32 %v6126_v35, 16  ;;  %v6178_v42 = vld [vmem:[%s5973_s29 + $0x90] sm:$0xf] }
  0x38   : > { %8349 = vst [vmem:[#allocation13_spill] sm:$0xff] %v6139_v49  ;;  %5263 = vmatpush3.bf16.msra.mxu0 %v5610_v18  ;;  %5192 = vmatprep.mubr.msk.bf16.mxu0 %vm833_vm3, %v6139_v49  ;;  %v459_v61 = vor.u32 %v458_v51, %v455_v46  ;;  %v648_v62 = vshll.u32 %v6126_v35, 16  ;;  %v654_v2 = vshll.u32 %v6137_v47, 16  ;;  %v658_v4 = vshrl.u32 %v6137_v47, 16  ;;  %v6162_v18 = vld [vmem:[%s5973_s29 + $0x34] sm:$0xf] }
  0x39   : > { %v643_v12 = vsel %vm6019_vm4, %v638_v53, %v642_v39  ;;  %v469_v13 = vor.u32 %v468_v54, %v464_v52  ;;  %v474_v20 = vrot.slane %v472_v56, 5  ;;  %v647_v21 = vrot.slane %v645_v59, 4  ;;  %5223 = vmatpush3.bf16.msra.mxu1 %v5607_v25  ;;  %v6183_v56 = vld [vmem:[%s5973_s29 + $0x94] sm:$0xf] }
  0x3a   : > { %v6164_v22 = vcombine.low %v633_v50, %v643_v12  ;;  %v460_v26 = vrot.slane %v459_v61, 4  ;;  %v650_v28 = vrot.slane %v648_v62, 5  ;;  %v656_v29 = vrot.slane %v654_v2, 5  ;;  %5224 = vmatprep.subr.bf16.mxu1 %v5609_v6  ;;  %v6188_v2 = vld [vmem:[%s5973_s29 + $0x98] sm:$0x1] }
  0x3b   : > { %v470_v30 = vrot.slane %v469_v13, 4  ;;  %v660_v36 = vrot.slane %v658_v4, 4  ;;  %v664_v40 = vshll.u32 %v6148_v57, 16  ;;  %v477_v39 = vshrl.u32 %v6157_v5, 16  ;;  %v6191_v4 = vld [vmem:[%s5973_s29 + $0x3c] sm:$0xf] }
  0x3c   : > { %8350 = vst [vmem:[#allocation14_spill] sm:$0xff] %v6164_v22  ;;  %5208 = vmatprep.mubr.msk.bf16.mxu1 %vm833_vm3, %v6164_v22  ;;  %v465_v25 = vsel %vm6019_vm4, %v460_v26, %v464_v52  ;;  %v651_v41 = vor.u32 %v650_v28, %v647_v21  ;;  %v480_v45 = vshll.u32 %v6157_v5, 16  ;;  %v486_v46 = vshll.u32 %v6162_v18, 16  ;;  %v6197_v26 = vld [vmem:[%s5973_s29 + $0x40] sm:$0xf] }
  0x3d   : > { %v475_v50 = vsel %vm6019_vm4, %v470_v30, %v474_v20  ;;  %v661_v51 = vor.u32 %v660_v36, %v656_v29  ;;  %v666_v53 = vrot.slane %v664_v40, 5  ;;  %v479_v54 = vrot.slane %v477_v39, 4  ;;  %5225 = vmatpush3.bf16.msra.mxu1 %v5609_v6  ;;  %v6208_v40 = vld [vmem:[%s8290_s2 + $0x4c] ss:$0 sps:$4 sm:$0x33]  }
  0x3e   : > { %v6185_v52 = vcombine.low %v465_v25, %v475_v50  ;;  %v652_v59 = vrot.slane %v651_v41, 4  ;;  %v482_v61 = vrot.slane %v480_v45, 5  ;;  %v488_v62 = vrot.slane %v486_v46, 5  ;;  %5534 = vmatprep.subr.msk.bf16.mxu1 %vm882_vm0, %v6208_v40 }
  0x3f   : > { %v662_v12 = vrot.slane %v661_v51, 4  ;;  %v490_v13 = vshrl.u32 %v6162_v18, 16  ;;  %v496_v20 = vshll.u32 %v6173_v44, 16  ;;  %v669_v21 = vshrl.u32 %v6178_v42, 16 }
  0x40   : > { %8351 = vst [vmem:[#allocation15_spill] sm:$0xff] %v6185_v52  ;;  %5193 = vmatmul.mubr.msk.bf16.gmra.mxu0 %vm833_vm3, %v6185_v52  ;;  %v657_v6 = vsel %vm6019_vm4, %v652_v59, %v656_v29  ;;  %v483_v28 = vor.u32 %v482_v61, %v479_v54  ;;  %v672_v30 = vshll.u32 %v6178_v42, 16  ;;  %v678_v36 = vshll.u32 %v6183_v56, 16  ;;  %v6215_v54 = vld [vmem:[%s5973_s29 + $0x44] sm:$0x1] }
  0x41   : > { %v667_v39 = vsel %vm6019_vm4, %v662_v12, %v666_v53  ;;  %v492_v25 = vrot.slane %v490_v13, 4  ;;  %v498_v41 = vrot.slane %v496_v20, 5  ;;  %v671_v45 = vrot.slane %v669_v21, 4  ;;  %v6218_v59 = vld [vmem:[%s5973_s29 + $0x9c] sm:$0xf] }
  0x42   : > { %v6212_v46 = vcombine.low %v657_v6, %v667_v39  ;;  %v484_v50 = vrot.slane %v483_v28, 4  ;;  %v674_v29 = vrot.slane %v672_v30, 5  ;;  %v680_v51 = vrot.slane %v678_v36, 5  ;;  %8353 = vst [vmem:[#allocation17_spill] sm:$0xff] %v6218_v59 }
  0x43   : > { %v6225_v53 = vld [vmem:[%s8290_s2 + $0x60] ss:$0 sps:$4 sm:$0x33]   ;;  %v493_v61 = vor.u32 %v492_v25, %v488_v62  ;;  %v682_v12 = vshrl.u32 %v6183_v56, 16  ;;  %v688_v13 = vshll.u32 %v6188_v2, 16  ;;  %v501_v20 = vshrl.u32 %v6191_v4, 16 }
  0x44   : > { %8352 = vst [vmem:[#allocation16_spill] sm:$0xff] %v6212_v46  ;;  %5209 = vmatmul.mubr.msk.bf16.gmra.mxu1 %vm833_vm3, %v6212_v46  ;;  %v489_v21 = vsel %vm6019_vm4, %v484_v50, %v488_v62  ;;  %v675_v6 = vor.u32 %v674_v29, %v671_v45  ;;  %v504_v28 = vshll.u32 %v6191_v4, 16  ;;  %v510_v30 = vshll.u32 %v6197_v26, 16  ;;  %5535 = vmatprep.subr.msk.bf16.mxu0 %vm882_vm0, %v6225_v53  ;;  %v6243_v45 = vld [vmem:[%s5973_s29 + $0xa4] sm:$0x1] }
  0x45   : > { %v494_v36 = vrot.slane %v493_v61, 4  ;;  %v684_v39 = vrot.slane %v682_v12, 4  ;;  %v690_v25 = vrot.slane %v688_v13, 5  ;;  %v503_v0 = vrot.slane %v501_v20, 4  ;;  %8354 = vst [vmem:[#allocation18_spill] sm:$0xff] %v6243_v45 }
  0x46   : > { %v676_v63 = vrot.slane %v675_v6, 4  ;;  %v506_v46 = vrot.slane %v504_v28, 5  ;;  %v512_v22 = vrot.slane %v510_v30, 5  ;;  %v514_v62 = vshrl.u32 %v6197_v26, 16  ;;  %v6246_v50 = vld [vmem:[%s5973_s29 + $0x48] sm:$0xf] }
  0x47   : > { %v499_v29 = vsel %vm6019_vm4, %v494_v36, %v498_v41  ;;  %v685_v19 = vor.u32 %v684_v39, %v680_v51  ;;  %v520_v61 = vshll.u32 %v6215_v54, 16  ;;  %v693_v12 = vshrl.u32 %v6218_v59, 16  ;;  %v6258_v41 = vld [vmem:[%s5973_s29 + $0x4c] sm:$0xf] }
  0x48   : > { %v6252_v13 = vcombine.low %v489_v21, %v499_v29  ;;  %v681_v20 = vsel %vm6019_vm4, %v676_v63, %v680_v51  ;;  %v507_v6 = vor.u32 %v506_v46, %v503_v0  ;;  %v516_v28 = vrot.slane %v514_v62, 4  ;;  %v6265_v0 = vld [vmem:[%s5973_s29 + $0x50] sm:$0x1]  ;;  %v6272_v29 = vld [vmem:[%s5973_s29 + $0xa8] sm:$0xf] }
  0x49   : > { %v686_v30 = vrot.slane %v685_v19, 4  ;;  %v522_v11 = vrot.slane %v520_v61, 5  ;;  %v695_v52 = vrot.slane %v693_v12, 4  ;;  %v696_v49 = vshll.u32 %v6218_v59, 16  ;;  %8356 = vst [vmem:[#allocation20_spill] sm:$0xff] %v6272_v29 }
  0x4a   : > { %8355 = vst [vmem:[#allocation19_spill] sm:$0xff] %v6252_v13  ;;  %5196 = vmatprep.mubr.msk.bf16.mxu0 %vm833_vm3, %v6252_v13  ;;  %v508_v36 = vrot.slane %v507_v6, 4  ;;  %v517_v39 = vor.u32 %v516_v28, %v512_v22  ;;  %v702_v21 = vshll.u32 %v6239_v34, 16  ;;  %v706_v63 = vshrl.u32 %v6239_v34, 16 }
  0x4b   : > { %v691_v19 = vsel %vm6019_vm4, %v686_v30, %v690_v25  ;;  %v698_v46 = vrot.slane %v696_v49, 5  ;;  %v712_v51 = vshll.u32 %v6243_v45, 16  ;;  %v525_v62 = vshrl.u32 %v6246_v50, 16  ;;  %v6279_v49 = vld [vmem:[%s5973_s29 + $0xac] sm:$0xf] }
  0x4c   : > { %v6274_v61 = vcombine.low %v681_v20, %v691_v19  ;;  %v513_v12 = vsel %vm6019_vm4, %v508_v36, %v512_v22  ;;  %v518_v6 = vrot.slane %v517_v39, 4  ;;  %v704_v28 = vrot.slane %v702_v21, 5  ;;  %8358 = vst [vmem:[#allocation22_spill] sm:$0xff] %v6279_v49 }
  0x4d   : > { %v699_v13 = vor.u32 %v698_v46, %v695_v52  ;;  %v708_v38 = vrot.slane %v706_v63, 4  ;;  %v714_v58 = vrot.slane %v712_v51, 5  ;;  %v527_v37 = vrot.slane %v525_v62, 4  ;;  %v6289_v52 = vld [vmem:[%s5973_s29 + $0xb0] sm:$0x1] }
  0x4e   : > { %8357 = vst [vmem:[#allocation21_spill] sm:$0xff] %v6274_v61  ;;  %5212 = vmatprep.mubr.msk.bf16.mxu1 %vm833_vm3, %v6274_v61  ;;  %v523_v25 = vsel %vm6019_vm4, %v518_v6, %v522_v11  ;;  %v528_v20 = vshll.u32 %v6246_v50, 16  ;;  %v534_v30 = vshll.u32 %v6258_v41, 16  ;;  %v538_v22 = vshrl.u32 %v6258_v41, 16  ;;  %8359 = vst [vmem:[#allocation23_spill] sm:$0xff] %v6289_v52 }
  0x4f   : > { %v6291_v36 = vcombine.low %v513_v12, %v523_v25  ;;  %v700_v39 = vrot.slane %v699_v13, 4  ;;  %v709_v21 = vor.u32 %v708_v38, %v704_v28  ;;  %v544_v63 = vshll.u32 %v6265_v0, 16  ;;  %v6296_v62 = vld [vmem:[%s5973_s29 + $0x54] sm:$0xf]  ;;  %v6304_v13 = vld [vmem:[%s5973_s29 + $0x58] sm:$0xf] }
  0x50   : > { %v530_v19 = vrot.slane %v528_v20, 5  ;;  %v536_v46 = vrot.slane %v534_v30, 5  ;;  %v540_v51 = vrot.slane %v538_v22, 4  ;;  %v717_v11 = vshrl.u32 %v6272_v29, 16 }
  0x51   : > { %8360 = vst [vmem:[#allocation24_spill] sm:$0xff] %v6291_v36  ;;  %5197 = vmatmul.mubr.msk.bf16.gmra.mxu0 %vm833_vm3, %v6291_v36  ;;  %v705_v6 = vsel %vm6019_vm4, %v700_v39, %v704_v28  ;;  %v710_v12 = vrot.slane %v709_v21, 4  ;;  %v546_v25 = vrot.slane %v544_v63, 5  ;;  %v720_v38 = vshll.u32 %v6272_v29, 16  ;;  %v6312_v39 = vld [vmem:[%s5973_s29 + $0x5c] sm:$0x1] }
  0x52   : > { %v531_v20 = vor.u32 %v530_v19, %v527_v37  ;;  %v541_v30 = vor.u32 %v540_v51, %v536_v46  ;;  %v719_v22 = vrot.slane %v717_v11, 4  ;;  %v726_v61 = vshll.u32 %v6279_v49, 16  ;;  %v6317_v51 = vld [vmem:[%s5973_s29 + $0xb4] sm:$0xf] }
  0x53   : > { %v715_v1 = vsel %vm6019_vm4, %v710_v12, %v714_v58  ;;  %v722_v55 = vrot.slane %v720_v38, 5  ;;  %v730_v36 = vshrl.u32 %v6279_v49, 16  ;;  %v736_v28 = vshll.u32 %v6289_v52, 16  ;;  %8362 = vst [vmem:[#allocation26_spill] sm:$0xff] %v6317_v51  ;;  %v6329_v38 = vld [vmem:[%s5973_s29 + $0xb8] sm:$0xf] }
  0x54   : > { %v6314_v21 = vcombine.low %v705_v6, %v715_v1  ;;  %v532_v63 = vrot.slane %v531_v20, 4  ;;  %v542_v37 = vrot.slane %v541_v30, 4  ;;  %v728_v19 = vrot.slane %v726_v61, 5 }
  0x55   : > { %v723_v11 = vor.u32 %v722_v55, %v719_v22  ;;  %v732_v29 = vrot.slane %v730_v36, 4  ;;  %v738_v45 = vrot.slane %v736_v28, 5  ;;  %v549_v58 = vshrl.u32 %v6296_v62, 16 }
  0x56   : > { %8361 = vst [vmem:[#allocation25_spill] sm:$0xff] %v6314_v21  ;;  %5213 = vmatmul.mubr.msk.bf16.gmra.mxu1 %vm833_vm3, %v6314_v21  ;;  %v537_v12 = vsel %vm6019_vm4, %v532_v63, %v536_v46  ;;  %v547_v1 = vsel %vm6019_vm4, %v542_v37, %v546_v25  ;;  %v552_v6 = vshll.u32 %v6296_v62, 16  ;;  %v558_v61 = vshll.u32 %v6304_v13, 16 }
  0x57   : > { %v6331_v55 = vcombine.low %v537_v12, %v547_v1  ;;  %v724_v36 = vrot.slane %v723_v11, 4  ;;  %v733_v20 = vor.u32 %v732_v29, %v728_v19  ;;  %v551_v30 = vrot.slane %v549_v58, 4  ;;  %v6342_v1 = vld [vmem:[%s5973_s29 + $0xbc] sm:$0x1] }
  0x58   : > { %v554_v22 = vrot.slane %v552_v6, 5  ;;  %v560_v28 = vrot.slane %v558_v61, 5  ;;  %v562_v21 = vshrl.u32 %v6304_v13, 16  ;;  %v568_v46 = vshll.u32 %v6312_v39, 16 }
  0x59   : > { %8363 = vst [vmem:[#allocation27_spill] sm:$0xff] %v6331_v55  ;;  %5200 = vmatprep.mubr.msk.bf16.mxu0 %vm833_vm3, %v6331_v55  ;;  %v729_v25 = vsel %vm6019_vm4, %v724_v36, %v728_v19  ;;  %v734_v63 = vrot.slane %v733_v20, 4  ;;  %v741_v37 = vshrl.u32 %v6317_v51, 16  ;;  %v744_v12 = vshll.u32 %v6317_v51, 16 }
  0x5a   : > { %v555_v11 = vor.u32 %v554_v22, %v551_v30  ;;  %v564_v29 = vrot.slane %v562_v21, 4  ;;  %v570_v58 = vrot.slane %v568_v46, 5  ;;  %v750_v6 = vshll.u32 %v6329_v38, 16 }
  0x5b   : > { %v739_v61 = vsel %vm6019_vm4, %v734_v63, %v738_v45  ;;  %v743_v52 = vrot.slane %v741_v37, 4  ;;  %v746_v55 = vrot.slane %v744_v12, 5  ;;  %v754_v49 = vshrl.u32 %v6329_v38, 16 }
  0x5c   : > { %v6348_v19 = vcombine.low %v729_v25, %v739_v61  ;;  %v556_v36 = vrot.slane %v555_v11, 4  ;;  %v565_v20 = vor.u32 %v564_v29, %v560_v28  ;;  %v752_v59 = vrot.slane %v750_v6, 5 }
  0x5d   : > { %v747_v51 = vor.u32 %v746_v55, %v743_v52  ;;  %v756_v30 = vrot.slane %v754_v49, 4  ;;  %v760_v21 = vshll.u32 %v6342_v1, 16  ;;  %v4730_v25 = vrot.slane %v5979_v7, 9 }
  0x5e   : > { %5216 = vmatprep.mubr.msk.bf16.mxu1 %vm833_vm3, %v6348_v19  ;;  %v561_v45 = vsel %vm6019_vm4, %v556_v36, %v560_v28  ;;  %v566_v22 = vrot.slane %v565_v20, 4  ;;  %v1375_v52 = vrot.slane %v5982_v8, 5  ;;  %v6364_v37 = vcombine.low %v6012_v31, %v6015_v32 }
  0x5f   : > { %v748_v49 = vrot.slane %v747_v51, 4  ;;  %v757_v55 = vor.u32 %v756_v30, %v752_v59  ;;  %v762_v63 = vrot.slane %v760_v21, 5  ;;  %v4731_v29 = vrot.slane %v6012_v31, 9 }
  0x60   : > { %v571_v28 = vsel %vm6019_vm4, %v566_v22, %v570_v58  ;;  %v1376_v12 = vsel %vm6356_vm7, %v4730_v25, %v1375_v52  ;;  %v1377_v11 = vrot.slane %v1375_v52, 4  ;;  %v8366_v36 = vrot.slane %v6015_v32, 5 }
  0x61   : > { %v6371_v6 = vcombine.low %v561_v45, %v571_v28  ;;  %v753_v51 = vsel %vm6019_vm4, %v748_v49, %v752_v59  ;;  %v758_v61 = vrot.slane %v757_v55, 4  ;;  %v4695_v30 = vcombine.low %v5979_v7, %v5982_v8 }
  0x62   : > { %v1384_v20 = vrot.slane %v8366_v36, 4  ;;  %v8367_v58 = vrot.slane %v5985_v9, 5  ;;  %v8368_v22 = vmov %v8366_v36  ;;  %v8369_v25 = vrot.slane %v6025_v43, 5 }
  0x63   : > { %v1383_v31 = vsel %vm6356_vm7, %v4731_v29, %v8368_v22  ;;  %5201 = vmatmul.mubr.msk.bf16.gmra.mxu0 %vm833_vm3, %v6371_v6  ;;  %v763_v59 = vsel %vm6019_vm4, %v758_v61, %v762_v63  ;;  %v6397_v8 = vcombine.low %v6054_v10, %v6063_v23  ;;  %v4732_v52 = vrot.slane %v6054_v10, 9 }
  0x64   : > { %v1379_v21 = vsel %vm6356_vm7, %v1377_v11, %v8367_v58  ;;  %v1386_v7 = vsel %vm6356_vm7, %v1384_v20, %v8369_v25  ;;  %v6399_v9 = vcombine.low %v753_v51, %v763_v59  ;;  %v1389_v49 = vrot.slane %v6063_v23, 5 }
  0x65   : > { %v4751_v45 = vcombine.low %v1376_v12, %v1379_v21  ;;  %v6401_v32 = vcombine.low %v1383_v31, %v1386_v7  ;;  %v1392_v55 = vrot.slane %v6070_v27, 5  ;;  %v1396_v43 = vrot.slane %v6111_v15, 5 }
  0x66   : > { %8370 = vst [vmem:[#allocation28_spill] sm:$0xff] %v6399_v9  ;;  %5217 = vmatmul.mubr.msk.bf16.gmra.mxu1 %vm833_vm3, %v6399_v9  ;;  %v1390_v63 = vsel %vm6356_vm7, %v4732_v52, %v1389_v49  ;;  %v1391_v28 = vrot.slane %v1389_v49, 4  ;;  %v4733_v12 = vrot.slane %v6102_v3, 9  ;;  %v1403_v10 = vrot.slane %v6162_v18, 5  ;;  %v5628_v52 = vld [vmem:[%s8290_s2 + $0x50] sm:$0xff]  }
  0x67   : > { %5264 = vmatprep.mubr.msk.bf16.mxu0 %vm833_vm3, %v4751_v45  ;;  %5226 = vmatprep.mubr.msk.bf16.mxu1 %vm833_vm3, %v4695_v30  ;;  %v2075_v23 = vsel %vm882_vm0, %v6225_v53, 0  ;;  %v1398_v11 = vrot.slane %v1396_v43, 4  ;;  %v1399_v29 = vrot.slane %v6117_v24, 5  ;;  %v4734_v61 = vrot.slane %v6157_v5, 9  ;;  %v5621_v30 = vld [vmem:[%s8290_s2 + $0x58] sm:$0xff]  }
  0x68   : > { %v1393_v27 = vsel %vm6356_vm7, %v1391_v28, %v1392_v55  ;;  %v1405_v36 = vrot.slane %v1403_v10, 4  ;;  %v1406_v20 = vrot.slane %v6173_v44, 5  ;;  %v1410_v58 = vrot.slane %v6197_v26, 5 }
  0x69   : > { %v6420_v51 = vcombine.low %v1390_v63, %v1393_v27  ;;  %v1828_v53 = vsel %vm882_vm0, %v6208_v40, 0  ;;  %v1397_v24 = vsel %vm6356_vm7, %v4733_v12, %v1396_v43  ;;  %v1417_v21 = vrot.slane %v6258_v41, 5  ;;  %v5619_v40 = vld [vmem:[%s8290_s2 + $0x44] sm:$0xff]  }
  0x6a   : > { %v1400_v44 = vsel %vm6356_vm7, %v1398_v11, %v1399_v29  ;;  %v4735_v22 = vrot.slane %v6191_v4, 9  ;;  %v1412_v31 = vrot.slane %v1410_v58, 4  ;;  %v1413_v59 = vrot.slane %v6215_v54, 5 }
  0x6b   : > { %5265 = vmatmul.mubr.msk.bf16.vlgmr.msra.gmra.mxu0 %vm833_vm3, %v6401_v32  ;;  %v1404_v45 = vsel %vm6356_vm7, %v4734_v61, %v1403_v10  ;;  %v1407_v25 = vsel %vm6356_vm7, %v1405_v36, %v1406_v20  ;;  %v1424_v7 = vrot.slane %v6304_v13, 5  ;;  %v4736_v54 = vrot.slane %v6246_v50, 9 }
  0x6c   : > { %5335 = vmatpush3.bf16.msra.mxu0 %v2075_v23  ;;  %5268 = vmatprep.mubr.msk.bf16.mxu0 %vm833_vm3, %v6420_v51  ;;  %v1419_v49 = vrot.slane %v1417_v21, 4  ;;  %v1420_v55 = vrot.slane %v6265_v0, 5  ;;  %v6458_v43 = vcombine.low %v1397_v24, %v1400_v44  ;;  %v6460_v63 = vcombine.low %v1404_v45, %v1407_v25  ;;  %v5627_v0 = vld [vmem:[%s8290_s2 + $0x3c] sm:$0xff]  }
  0x6d   : > { %5336 = vmatprep.subr.bf16.mxu0 %v5621_v30  ;;  %v1411_v28 = vsel %vm6356_vm7, %v4735_v22, %v1410_v58  ;;  %v1414_v12 = vsel %vm6356_vm7, %v1412_v31, %v1413_v59  ;;  %v1431_v10 = vrot.slane %v5996_v16, 5  ;;  %v6472_v23 = vcombine.low %v6102_v3, %v6111_v15  ;;  %v6488_v3 = vld [vmem:[%s8290_s2 + $0x88] ss:$0 sps:$4 sm:$0x33]   ;;  %v8371_v25 = vld [vmem:[#allocation17_spill] sm:$0xff] }
  0x6e   : > { %5227 = vmatmul.mubr.msk.bf16.vlgmr.msra.gmra.mxu1 %vm833_vm3, %v6364_v37  ;;  %v4737_v27 = vrot.slane %v6296_v62, 9  ;;  %v1426_v11 = vrot.slane %v1424_v7, 4  ;;  %v1427_v29 = vrot.slane %v6312_v39, 5  ;;  %v6478_v61 = vcombine.low %v6157_v5, %v6162_v18 }
  0x6f   : > { %5297 = vmatpush3.bf16.msra.mxu1 %v1828_v53  ;;  %5230 = vmatprep.mubr.msk.bf16.mxu1 %vm833_vm3, %v6397_v8  ;;  %v1418_v16 = vsel %vm6356_vm7, %v4736_v54, %v1417_v21  ;;  %v1421_v36 = vsel %vm6356_vm7, %v1419_v49, %v1420_v55  ;;  %v4738_v20 = vrot.slane %v5992_v14, 9  ;;  %v1434_v15 = vrot.slane %v5999_v17, 5  ;;  %v8372_v55 = vld [vmem:[#allocation18_spill] sm:$0xff] }
  0x70   : > { %5298 = vmatprep.subr.bf16.mxu1 %v5619_v40  ;;  %5337 = vmatpush3.bf16.msra.mxu0 %v5621_v30  ;;  %v6495_v5 = vcombine.low %v6191_v4, %v6197_v26  ;;  %v6497_v18 = vcombine.low %v1411_v28, %v1414_v12  ;;  %v6501_v14 = vcombine.low %v6246_v50, %v6258_v41  ;;  %v1433_v39 = vrot.slane %v1431_v10, 4  ;;  %v6514_v26 = vld [vmem:[%s8290_s2 + $0x74] ss:$0 sps:$4 sm:$0x33]   ;;  %v8374_v12 = vld [vmem:[#allocation20_spill] sm:$0xff] }
  0x71   : > { %5338 = vmatprep.subr.bf16.mxu0 %v5628_v52  ;;  %v6507_v17 = vcombine.low %v6126_v35, %v6137_v47  ;;  %v4741_v30 = vrot.slane %v6126_v35, 9  ;;  %v1452_v4 = vrot.slane %v6137_v47, 5  ;;  %v6516_v50 = vcombine.low %v1418_v16, %v1421_v36 }
  0x72   : > { %v1425_v41 = vsel %vm6356_vm7, %v4737_v27, %v1424_v7  ;;  %v1428_v58 = vsel %vm6356_vm7, %v1426_v11, %v1427_v29  ;;  %v1438_v53 = vrot.slane %v6040_v60, 5  ;;  %v1432_v35 = vsel %vm6356_vm7, %v4738_v20, %v1431_v10  ;;  %v8375_v29 = vld [vmem:[#allocation23_spill] sm:$0xff] }
  0x73   : > { %5269 = vmatmul.mubr.msk.bf16.gmra.mxu0 %vm833_vm3, %v6458_v43  ;;  %5299 = vmatpush3.bf16.msra.mxu1 %v5619_v40  ;;  %v1453_v47 = vsel %vm6356_vm7, %v4741_v30, %v1452_v4  ;;  %v1454_v24 = vrot.slane %v1452_v4, 4  ;;  %v1455_v21 = vrot.slane %v6148_v57, 5  ;;  %v1445_v44 = vrot.slane %v6088_v48, 5 }
  0x74   : > { %5272 = vmatprep.mubr.msk.bf16.mxu0 %vm833_vm3, %v6460_v63  ;;  %5300 = vmatprep.subr.bf16.mxu1 %v5627_v0  ;;  %v6537_v22 = vcombine.low %v6178_v42, %v6183_v56  ;;  %v4742_v31 = vrot.slane %v6178_v42, 9  ;;  %v1459_v59 = vrot.slane %v6183_v56, 5  ;;  %v1435_v57 = vsel %vm6356_vm7, %v1433_v39, %v1434_v15 }
  0x75   : > { %5339 = vmatpush3.bf16.msra.mxu0 %v5628_v52  ;;  %v1456_v40 = vsel %vm6356_vm7, %v1454_v24, %v1455_v21  ;;  %v1462_v45 = vrot.slane %v6188_v2, 5  ;;  %v6548_v7 = vcombine.low %v8371_v25, %v6239_v34  ;;  %v4743_v54 = vrot.slane %v8371_v25, 9  ;;  %v8373_v2 = vld [vmem:[#allocation22_spill] sm:$0xff] }
  0x76   : > { %5231 = vmatmul.mubr.msk.bf16.gmra.mxu1 %vm833_vm3, %v6472_v23  ;;  %5537 = vmatprep.subr.msk.bf16.mxu0 %vm882_vm0, %v6488_v3  ;;  %v6552_v52 = vcombine.low %v1453_v47, %v1456_v40  ;;  %v1460_v42 = vsel %vm6356_vm7, %v4742_v31, %v1459_v59  ;;  %v1461_v56 = vrot.slane %v1459_v59, 4  ;;  %v1466_v49 = vrot.slane %v6239_v34, 5  ;;  %v8376_v34 = vld [vmem:[#allocation26_spill] sm:$0xff] }
  0x77   : > { %5234 = vmatprep.mubr.msk.bf16.mxu1 %vm833_vm3, %v6478_v61  ;;  %5301 = vmatpush3.bf16.msra.mxu1 %v5627_v0  ;;  %v1469_v28 = vrot.slane %v8372_v55, 5  ;;  %v6561_v10 = vcombine.low %v8374_v12, %v8373_v2  ;;  %v4744_v0 = vrot.slane %v8374_v12, 9  ;;  %v1473_v11 = vrot.slane %v8373_v2, 5  ;;  %v8377_v59 = vld [vmem:[#allocation6_spill] sm:$0xff]  ;;  %v8379_v55 = vld [vmem:[#allocation9_spill] sm:$0xff]  ;;  %v8380_v12 = vld [vmem:[#allocation11_spill] sm:$0xff] }
  0x78   : > { %5536 = vmatprep.subr.msk.bf16.mxu1 %vm882_vm0, %v6514_v26  ;;  %v1463_v27 = vsel %vm6356_vm7, %v1461_v56, %v1462_v45  ;;  %v1476_v16 = vrot.slane %v8375_v29, 5  ;;  %v6572_v36 = vcombine.low %v8376_v34, %v6329_v38  ;;  %v1467_v15 = vsel %vm6356_vm7, %v4743_v54, %v1466_v49  ;;  %v8378_v56 = vld [vmem:[#allocation7_spill] sm:$0xff]  ;;  %v5776_v29 = vld [vmem:[%s5973_s29 + $0x64] sm:$0xf] }
  0x79   : > { %v6576_v20 = vcombine.low %v1460_v42, %v1463_v27  ;;  %v1468_v39 = vrot.slane %v1466_v49, 4  ;;  %v4745_v30 = vrot.slane %v8376_v34, 9  ;;  %v1474_v4 = vsel %vm6356_vm7, %v4744_v0, %v1473_v11 }
  0x7a   : > { %v1475_v47 = vrot.slane %v1473_v11, 4  ;;  %v1480_v24 = vrot.slane %v6329_v38, 5  ;;  %v1483_v21 = vrot.slane %v6342_v1, 5  ;;  %v6587_v31 = vcombine.low %v1425_v41, %v1428_v58 }
  0x7b   : > { %5273 = vmatmul.mubr.msk.bf16.gmra.mxu0 %vm833_vm3, %v6497_v18  ;;  %v4739_v40 = vrot.slane %v8377_v59, 9  ;;  %v1470_v45 = vsel %vm6356_vm7, %v1468_v39, %v1469_v28  ;;  %v6600_v58 = vcombine.low %v1432_v35, %v1435_v57  ;;  %v1440_v42 = vrot.slane %v1438_v53, 4  ;;  %v5775_v57 = vld [vmem:[%s5973_s29 + $0x60] sm:$0xf] }
  0x7c   : > { %5276 = vmatprep.mubr.msk.bf16.mxu0 %vm833_vm3, %v6516_v50  ;;  %v6594_v25 = vcombine.low %v1467_v15, %v1470_v45  ;;  %v1477_v38 = vsel %vm6356_vm7, %v1475_v47, %v1476_v16  ;;  %v1481_v1 = vsel %vm6356_vm7, %v4745_v30, %v1480_v24  ;;  %v1482_v41 = vrot.slane %v1480_v24, 4  ;;  %v6683_v47 = vld [vmem:[%s5973_s29 + $0xc8] sm:$0x1] }
  0x7d   : > { %v1441_v54 = vrot.slane %v8378_v56, 5  ;;  %v6605_v49 = vcombine.low %v1474_v4, %v1477_v38  ;;  %v4740_v28 = vrot.slane %v8379_v55, 9  ;;  %v1447_v2 = vrot.slane %v1445_v44, 4  ;;  %v6680_v4 = vld [vmem:[%s5973_s29 + $0xc0] sm:$0xf]  ;;  %v8381_v38 = vld [vmem:[#allocation10_spill] sm:$0xff] }
  0x7e   : > { %5235 = vmatmul.mubr.msk.bf16.gmra.mxu1 %vm833_vm3, %v6495_v5  ;;  %v1448_v0 = vrot.slane %v8380_v12, 5  ;;  %v1484_v27 = vsel %vm6356_vm7, %v1482_v41, %v1483_v21  ;;  %v6613_v11 = vcombine.low %v6296_v62, %v6304_v13  ;;  %v6621_v16 = vcombine.low %v5775_v57, %v5776_v29  ;;  %v8382_v56 = vld [vmem:[#allocation13_spill] sm:$0xff]  ;;  %v8385_v12 = vld [vmem:[#allocation24_spill] sm:$0xff] }
  0x7f   : > { %5238 = vmatprep.mubr.msk.bf16.mxu1 %vm833_vm3, %v6501_v14  ;;  %v6615_v35 = vcombine.low %v1481_v1, %v1484_v27  ;;  %v1439_v34 = vsel %vm6356_vm7, %v4739_v40, %v1438_v53  ;;  %v1442_v62 = vsel %vm6356_vm7, %v1440_v42, %v1441_v54  ;;  %v1446_v13 = vsel %vm6356_vm7, %v4740_v28, %v1445_v44  ;;  %v5636_v42 = vld [vmem:[%s8290_s2 + $0x80] sm:$0xff]   ;;  %v5641_v28 = vld [vmem:[%s8290_s2 + $0xb0] ss:$0 sps:$4 sm:$0x33]   ;;  %v8387_v57 = vld [vmem:[#allocation8_spill] sm:$0xff] }
  0x80   : > { %v1449_v15 = vsel %vm6356_vm7, %v1447_v2, %v1448_v0  ;;  %v6639_v39 = vcombine.low %v1439_v34, %v1442_v62  ;;  %v6645_v53 = vcombine.low %v8377_v59, %v6040_v60  ;;  %v6651_v44 = vcombine.low %v8379_v55, %v6088_v48  ;;  %v6674_v60 = vld [vmem:[%s5973_s29 + $0xc4] sm:$0xf]  ;;  %v8383_v55 = vld [vmem:[#allocation15_spill] sm:$0xff]  ;;  %v5640_v0 = vld [vmem:[%s8290_s2 + $0x9c] ss:$0 sps:$4 sm:$0x33]  }
  0x81   : > { %v6641_v30 = vcombine.low %v1446_v13, %v1449_v15  ;;  %v2273_v48 = vrot.slane %v6674_v60, 5  ;;  %v4836_v24 = vrot.slane %v6680_v4, 9  ;;  %v2276_v59 = vrot.slane %v6683_v47, 5  ;;  %v8384_v2 = vld [vmem:[#allocation19_spill] sm:$0xff]  ;;  %v8388_v29 = vld [vmem:[#allocation12_spill] sm:$0xff]  ;;  %v8389_v34 = vld [vmem:[#allocation14_spill] sm:$0xff] }
  0x82   : > { %v2531_v41 = vsel %vm882_vm0, %v6488_v3, 0  ;;  %v2306_v54 = vsel %vm882_vm0, %v6514_v26, 0  ;;  %v5638_v3 = vld [vmem:[%s8290_s2 + $0x78] sm:$0xff]   ;;  %v5637_v26 = vld [vmem:[%s8290_s2 + $0x64] sm:$0xff]   ;;  %v8386_v27 = vld [vmem:[#allocation27_spill] sm:$0xff]  ;;  %v2024_v13 = vshrl.u32 %v6680_v4, 16 }
  0x83   : > { %5277 = vmatmul.mubr.msk.bf16.gmra.mxu0 %vm833_vm3, %v6587_v31  ;;  %v2275_v21 = vrot.slane %v2273_v48, 4  ;;  %v2274_v40 = vsel %vm6356_vm7, %v4836_v24, %v2273_v48  ;;  %v8390_v62 = vld [vmem:[#allocation16_spill] sm:$0xff]  ;;  %v2027_v15 = vshll.u32 %v6680_v4, 16  ;;  %v2037_v48 = vshrl.u32 %v6674_v60, 16 }
  0x84   : > { %5280 = vmatprep.mubr.msk.bf16.mxu0 %vm833_vm3, %v6600_v58  ;;  %v2033_v24 = vshll.u32 %v6674_v60, 16 }
  0x85   : > { %v2277_v45 = vsel %vm6356_vm7, %v2275_v21, %v2276_v59  ;;  %v2026_v21 = vrot.slane %v2024_v13, 4  ;;  %v2029_v59 = vrot.slane %v2027_v15, 5 }
  0x86   : > { %5239 = vmatmul.mubr.msk.bf16.gmra.mxu1 %vm833_vm3, %v6613_v11  ;;  %v6695_v1 = vcombine.low %v2274_v40, %v2277_v45  ;;  %v2035_v40 = vrot.slane %v2033_v24, 5  ;;  %v2039_v45 = vrot.slane %v2037_v48, 4  ;;  %v6794_v24 = vcombine.low %v6680_v4, %v6674_v60 }
  0x87   : > { %5242 = vmatprep.mubr.msk.bf16.mxu1 %vm833_vm3, %v6621_v16  ;;  %v2778_v60 = vsel %vm882_vm0, %v5640_v0, 0 }
  0x8b   : > { %5281 = vmatmul.mubr.msk.bf16.gmra.mxu0 %vm833_vm3, %v6639_v39 }
  0x8c   : > { %5284 = vmatprep.mubr.msk.bf16.mxu0 %vm833_vm3, %v6641_v30 }
  0x8e   : > { %5243 = vmatmul.mubr.msk.bf16.gmra.mxu1 %vm833_vm3, %v6645_v53 }
  0x8f   : > { %5246 = vmatprep.mubr.msk.bf16.mxu1 %vm833_vm3, %v6651_v44 }
  0x93   : > { %5285 = vmatmul.mubr.msk.bf16.gmra.mxu0 %vm833_vm3, %v6552_v52 }
  0x94   : > { %5288 = vmatprep.mubr.msk.bf16.mxu0 %vm833_vm3, %v6576_v20 }
  0x96   : > { %5247 = vmatmul.mubr.msk.bf16.gmra.mxu1 %vm833_vm3, %v6507_v17 }
  0x97   : > { %5250 = vmatprep.mubr.msk.bf16.mxu1 %vm833_vm3, %v6537_v22 }
  0x9b   : > { %5289 = vmatmul.mubr.msk.bf16.gmra.mxu0 %vm833_vm3, %v6594_v25 }
  0x9c   : > { %5292 = vmatprep.mubr.msk.bf16.mxu0 %vm833_vm3, %v6605_v49 }
  0x9e   : > { %5251 = vmatmul.mubr.msk.bf16.gmra.mxu1 %vm833_vm3, %v6548_v7 }
  0x9f   : > { %5254 = vmatprep.mubr.msk.bf16.mxu1 %vm833_vm3, %v6561_v10 }
  0xa3   : > { %5293 = vmatmul.mubr.msk.bf16.gmra.mxu0 %vm833_vm3, %v6615_v35 }
  0xa4   : > { %5340 = vmatprep.mubr.msk.bf16.mxu0 %vm833_vm3, %v8381_v38  ;;  %v8391_v38 = vld [vmem:[#allocation21_spill] sm:$0xff] }
  0xa6   : > { %5255 = vmatmul.mubr.msk.bf16.gmra.mxu1 %vm833_vm3, %v6572_v36 }
  0xa7   : > { %5302 = vmatprep.mubr.msk.bf16.mxu1 %vm833_vm3, %v6364_v37  ;;  %v5635_v37 = vld [vmem:[%s8290_s2 + $0x6c] sm:$0xff]  }
  0xab   : > { %5341 = vmatmul.mubr.msk.bf16.vlgmr.msra.gmra.mxu0 %vm833_vm3, %v8382_v56 }
  0xac   : > { %5411 = vmatpush3.bf16.msra.mxu0 %v2531_v41  ;;  %5344 = vmatprep.mubr.msk.bf16.mxu0 %vm833_vm3, %v8383_v55  ;;  %v8392_v41 = vld [vmem:[#allocation25_spill] sm:$0xff] }
  0xad   : > { %5412 = vmatprep.subr.bf16.mxu0 %v5636_v42 }
  0xae   : > { %5303 = vmatmul.mubr.msk.bf16.vlgmr.msra.gmra.mxu1 %vm833_vm3, %v6397_v8 }
  0xaf   : > { %5373 = vmatpush3.bf16.msra.mxu1 %v2306_v54  ;;  %5306 = vmatprep.mubr.msk.bf16.mxu1 %vm833_vm3, %v6472_v23  ;;  %v2040_v54 = vor.u32 %v2039_v45, %v2035_v40 }
  0xb0   : > { %5374 = vmatprep.subr.bf16.mxu1 %v5635_v37  ;;  %5413 = vmatpush3.bf16.msra.mxu0 %v5636_v42  ;;  %v2030_v42 = vor.u32 %v2029_v59, %v2026_v21  ;;  %v3009_v21 = vsel %vm882_vm0, %v5641_v28, 0  ;;  %v5643_v59 = vld [vmem:[%s8290_s2 + $0xa8] sm:$0xff]  }
  0xb1   : > { %5414 = vmatprep.subr.bf16.mxu0 %v5638_v3 }
  0xb3   : > { %5345 = vmatmul.mubr.msk.bf16.gmra.mxu0 %vm833_vm3, %v8384_v2  ;;  %5375 = vmatpush3.bf16.msra.mxu1 %v5635_v37  ;;  %v2043_v37 = vshll.u32 %v6683_v47, 16 }
  0xb4   : > { %5348 = vmatprep.mubr.msk.bf16.mxu0 %vm833_vm3, %v8385_v12  ;;  %5376 = vmatprep.subr.bf16.mxu1 %v5637_v26 }
  0xb5   : > { %5415 = vmatpush3.bf16.msra.mxu0 %v5638_v3  ;;  %v2031_v3 = vrot.slane %v2030_v42, 4  ;;  %v2045_v13 = vrot.slane %v2043_v37, 5 }
  0xb6   : > { %5307 = vmatmul.mubr.msk.bf16.gmra.mxu1 %vm833_vm3, %v6478_v61  ;;  %5539 = vmatprep.subr.msk.bf16.mxu0 %vm882_vm0, %v5641_v28 }
  0xb7   : > { %5310 = vmatprep.mubr.msk.bf16.mxu1 %vm833_vm3, %v6495_v5  ;;  %5377 = vmatpush3.bf16.msra.mxu1 %v5637_v26  ;;  %v2041_v26 = vrot.slane %v2040_v54, 4  ;;  %v2036_v15 = vsel %vm6019_vm4, %v2031_v3, %v2035_v40 }
  0xb8   : > { %5538 = vmatprep.subr.msk.bf16.mxu1 %vm882_vm0, %v5640_v0 }
  0xb9   : > { %v2046_v47 = vsel %vm6019_vm4, %v2041_v26, %v2045_v13  ;;  %v3380_v26 = vld [vmem:[%s6892_s16 + $0x10] sm:$0xff]  ;;  %v3379_v13 = vld [vmem:[%s6892_s16 + $0x8] sm:$0xff] }
  0xba   : > { %v6790_v48 = vcombine.low %v2036_v15, %v2046_v47  ;;  %3446 = vrot.lane.b32.xlu1 %v3380_v26, %s5855_s17  ;;  %v3382_v47 = vld [vmem:[%s6892_s16 + $0x20] sm:$0xff]  ;;  %v3385_v26 = vld [vmem:[%s6892_s16 + $0x38] sm:$0xff] }
  0xbb   : > { %5349 = vmatmul.mubr.msk.bf16.gmra.mxu0 %vm833_vm3, %v8386_v27 }
  0xbc   : > { %5352 = vmatprep.mubr.msk.bf16.mxu0 %vm833_vm3, %v6371_v6  ;;  %8393 = vst [vmem:[#allocation17_spill] sm:$0xff] %v6790_v48 }
  0xbe   : > { %5311 = vmatmul.mubr.msk.bf16.gmra.mxu1 %vm833_vm3, %v6501_v14 }
  0xbf   : > { %5314 = vmatprep.mubr.msk.bf16.mxu1 %vm833_vm3, %v6613_v11 }
  0xc3   : > { %5353 = vmatmul.mubr.msk.bf16.gmra.mxu0 %vm833_vm3, %v8387_v57 }
  0xc4   : > { %5356 = vmatprep.mubr.msk.bf16.mxu0 %vm833_vm3, %v8388_v29 }
  0xc6   : > { %5315 = vmatmul.mubr.msk.bf16.gmra.mxu1 %vm833_vm3, %v6621_v16 }
  0xc7   : > { %5318 = vmatprep.mubr.msk.bf16.mxu1 %vm833_vm3, %v6645_v53 }
  0xcb   : > { %5357 = vmatmul.mubr.msk.bf16.gmra.mxu0 %vm833_vm3, %v8389_v34 }
  0xcc   : > { %5360 = vmatprep.mubr.msk.bf16.mxu0 %vm833_vm3, %v8390_v62 }
  0xce   : > { %5319 = vmatmul.mubr.msk.bf16.gmra.mxu1 %vm833_vm3, %v6651_v44 }
  0xcf   : > { %5322 = vmatprep.mubr.msk.bf16.mxu1 %vm833_vm3, %v6507_v17 }
  0xd3   : > { %5361 = vmatmul.mubr.msk.bf16.gmra.mxu0 %vm833_vm3, %v8391_v38 }
  0xd4   : > { %5364 = vmatprep.mubr.msk.bf16.mxu0 %vm833_vm3, %v8392_v41 }
  0xd6   : > { %5323 = vmatmul.mubr.msk.bf16.gmra.mxu1 %vm833_vm3, %v6537_v22 }
  0xd7   : > { %5326 = vmatprep.mubr.msk.bf16.mxu1 %vm833_vm3, %v6548_v7 }
  0xdb   : > { %5365 = vmatmul.mubr.msk.bf16.gmra.mxu0 %vm833_vm3, %v6348_v19 }
  0xdc   : > { %5368 = vmatprep.mubr.msk.bf16.mxu0 %vm833_vm3, %v6399_v9 }
  0xde   : > { %5327 = vmatmul.mubr.msk.bf16.gmra.mxu1 %vm833_vm3, %v6561_v10 }
  0xdf   : > { %5330 = vmatprep.mubr.msk.bf16.mxu1 %vm833_vm3, %v6572_v36 }
  0xe3   : > { %5369 = vmatmul.mubr.msk.bf16.gmra.mxu0 %vm833_vm3, %v6790_v48 }
  0xe4   : > { %5416 = vmatprep.mubr.msk.bf16.mxu0 %vm833_vm3, %v6397_v8  ;;  %v5642_v8 = vld [vmem:[%s8290_s2 + $0x94] sm:$0xff]  }
  0xe6   : > { %5331 = vmatmul.mubr.msk.bf16.gmra.mxu1 %vm833_vm3, %v6794_v24 }
  0xe7   : > { %5378 = vmatprep.mubr.msk.bf16.mxu1 %vm833_vm3, %v6401_v32  ;;  %v5645_v32 = vld [vmem:[%s8290_s2 + $0xa0] sm:$0xff]  }
  0xeb   : > { %5417 = vmatmul.mubr.msk.bf16.vlgmr.msra.gmra.mxu0 %vm833_vm3, %v6472_v23  ;;  %v5644_v23 = vld [vmem:[%s8290_s2 + $0x8c] sm:$0xff]  }
  0xec   : > { %5487 = vmatpush3.bf16.msra.mxu0 %v3009_v21  ;;  %5420 = vmatprep.mubr.msk.bf16.mxu0 %vm833_vm3, %v6478_v61 }
  0xed   : > { %5488 = vmatprep.subr.bf16.mxu0 %v5643_v59 }
  0xee   : > { %5379 = vmatmul.mubr.msk.bf16.vlgmr.msra.gmra.mxu1 %vm833_vm3, %v6420_v51 }
  0xef   : > { %5449 = vmatpush3.bf16.msra.mxu1 %v2778_v60  ;;  %5382 = vmatprep.mubr.msk.bf16.mxu1 %vm833_vm3, %v6458_v43  ;;  %v6828_v61 = vpop.f32.mrf.mxu0  ;;  %v6929_v60 = vld [vmem:[%s5973_s29 + $0xcc] sm:$0xf] }
  0xf0   : > { %5450 = vmatprep.subr.bf16.mxu1 %v5642_v8  ;;  %5489 = vmatpush3.bf16.msra.mxu0 %v5643_v59 }
  0xf1   : > { %5490 = vmatprep.subr.bf16.mxu0 %v5645_v32  ;;  %v6838_v28 = vpop.f32.mrf.mxu0 }
  0xf3   : > { %5421 = vmatmul.mubr.msk.bf16.gmra.mxu0 %vm833_vm3, %v6495_v5  ;;  %5451 = vmatpush3.bf16.msra.mxu1 %v5642_v8  ;;  %v6844_v0 = vpop.f32.mrf.mxu0  ;;  %v6932_v8 = vld [vmem:[%s5973_s29 + $0xd0] sm:$0xf] }
  0xf4   : > { %5424 = vmatprep.mubr.msk.bf16.mxu0 %vm833_vm3, %v6501_v14  ;;  %5452 = vmatprep.subr.bf16.mxu1 %v5644_v23  ;;  %v6834_v4 = vpop.f32.mrf.mxu1 }
  0xf5   : > { %5491 = vmatpush3.bf16.msra.mxu0 %v5645_v32  ;;  %v6854_v40 = vpop.f32.mrf.mxu0  ;;  %v3383_v32 = vld [vmem:[%s6892_s16 + $0x28] sm:$0xff] }
  0xf6   : > { %5383 = vmatmul.mubr.msk.bf16.gmra.mxu1 %vm833_vm3, %v6460_v63  ;;  %v6840_v5 = vpop.f32.mrf.mxu1 }
  0xf7   : > { %5386 = vmatprep.mubr.msk.bf16.mxu1 %vm833_vm3, %v6497_v18  ;;  %5453 = vmatpush3.bf16.msra.mxu1 %v5644_v23  ;;  %v3384_v23 = vld [vmem:[%s6892_s16 + $0x30] sm:$0xff] }
  0xf8   : > { %v6850_v14 = vpop.f32.mrf.mxu1 }
  0xfa   : > { %v6856_v45 = vpop.f32.mrf.mxu1 }
  0xfb   : > { %5425 = vmatmul.mubr.msk.bf16.gmra.mxu0 %vm833_vm3, %v6613_v11 }
  0xfc   : > { %5428 = vmatprep.mubr.msk.bf16.mxu0 %vm833_vm3, %v6621_v16 }
  0xfe   : > { %5387 = vmatmul.mubr.msk.bf16.gmra.mxu1 %vm833_vm3, %v6516_v50 }
  0xff   : > { %5390 = vmatprep.mubr.msk.bf16.mxu1 %vm833_vm3, %v6587_v31 }
 0x100   : > { %v6860_v11 = vpop.f32.mrf.mxu0 }
 0x102   : > { %v6870_v42 = vpop.f32.mrf.mxu0 }
 0x103   : > { %5429 = vmatmul.mubr.msk.bf16.gmra.mxu0 %vm833_vm3, %v6645_v53 }
 0x104   : > { %5432 = vmatprep.mubr.msk.bf16.mxu0 %vm833_vm3, %v6651_v44  ;;  %v6866_v16 = vpop.f32.mrf.mxu1  ;;  %v6876_v53 = vpop.f32.mrf.mxu0 }
 0x106   : > { %5391 = vmatmul.mubr.msk.bf16.gmra.mxu1 %vm833_vm3, %v6600_v58  ;;  %v6872_v54 = vpop.f32.mrf.mxu1  ;;  %v6886_v37 = vpop.f32.mrf.mxu0 }
 0x107   : > { %5394 = vmatprep.mubr.msk.bf16.mxu1 %vm833_vm3, %v6639_v39 }
 0x108   : > { %v6882_v44 = vpop.f32.mrf.mxu1 }
 0x10b   : > { %5433 = vmatmul.mubr.msk.bf16.gmra.mxu0 %vm833_vm3, %v6507_v17  ;;  %v3378_v17 = vld [vmem:[%s6892_s16] sm:$0xff] }
 0x10c   : > { %5436 = vmatprep.mubr.msk.bf16.mxu0 %vm833_vm3, %v6537_v22  ;;  %v6895_v22 = vpop.f32.mrf.mxu1  ;;  %3442 = vrot.lane.b32.xlu0 %v3378_v17, %s5855_s17 }
 0x10e   : > { %5395 = vmatmul.mubr.msk.bf16.gmra.mxu1 %vm833_vm3, %v6641_v30 }
 0x10f   : > { %5398 = vmatprep.mubr.msk.bf16.mxu1 %vm833_vm3, %v6552_v52 }
 0x110   : > { %3444 = vrot.lane.b32.xlu0 %v3379_v13, %s5855_s17  ;;  %v3386_v13 = vld [vmem:[%s6892_s16 + $0x40] sm:$0xff] }
 0x111   : > { %v6900_v3 = vpop.f32.mrf.mxu0 }
 0x113   : > { %5437 = vmatmul.mubr.msk.bf16.gmra.mxu0 %vm833_vm3, %v6548_v7  ;;  %v6913_v7 = vpop.f32.mrf.mxu0 }
 0x114   : > { %5440 = vmatprep.mubr.msk.bf16.mxu0 %vm833_vm3, %v6561_v10  ;;  %v3381_v10 = vld [vmem:[%s6892_s16 + $0x18] sm:$0xff]  ;;  %3450 = vrot.lane.b32.xlu0 %v3382_v47, %s5855_s17 }
 0x115   : > { %3448 = vrot.lane.b32.xlu1 %v3381_v10, %s5855_s17  ;;  %v6923_v59 = vpop.f32.mrf.mxu0 }
 0x116   : > { %5399 = vmatmul.mubr.msk.bf16.gmra.mxu1 %vm833_vm3, %v6576_v20  ;;  %v6908_v15 = vpop.f32.mrf.mxu1 }
 0x117   : > { %8394 = vst [vmem:[#allocation18_spill] sm:$0xff] %v6908_v15  ;;  %5402 = vmatprep.mubr.msk.bf16.mxu1 %vm833_vm3, %v6594_v25 }
 0x118   : > { %v6918_v21 = vpop.f32.mrf.mxu1  ;;  %3454 = vrot.lane.b32.xlu0 %v3384_v23, %s5855_s17  ;;  %v3387_v23 = vld [vmem:[%s6892_s16 + $0x48] sm:$0xff] }
 0x119   : > { %8395 = vst [vmem:[#allocation22_spill] sm:$0xff] %v6918_v21  ;;  %3452 = vrot.lane.b32.xlu1 %v3383_v32, %s5855_s17 }
 0x11a   : > { %v6938_v17 = vpop.f32.mrf.mxu1 }
 0x11b   : > { %5441 = vmatmul.mubr.msk.bf16.gmra.mxu0 %vm833_vm3, %v6572_v36  ;;  %8396 = vst [vmem:[#allocation20_spill] sm:$0xff] %v6938_v17  ;;  %v6941_v36 = vpop.f32.mrf.mxu0  ;;  %v3388_v17 = vld [vmem:[%s6892_s16 + $0x50] sm:$0xff] }
 0x11c   : > { %5444 = vmatprep.mubr.msk.bf16.mxu0 %vm833_vm3, %v6794_v24  ;;  %v4867_v24 = vcombine.low %v6929_v60, %v6932_v8  ;;  %v6950_v10 = vpop.f32.mrf.mxu1  ;;  %3458 = vrot.lane.b32.xlu0 %v3386_v13, %s5855_s17  ;;  %v3389_v13 = vld [vmem:[%s6892_s16 + $0x58] sm:$0xff] }
 0x11d   : > { %8397 = vst [vmem:[#allocation23_spill] sm:$0xff] %v6950_v10  ;;  %3456 = vrot.lane.b32.xlu1 %v3385_v26, %s5855_s17 }
 0x11e   : > { %5403 = vmatmul.mubr.msk.bf16.gmra.mxu1 %vm833_vm3, %v6605_v49 }
 0x11f   : > { %5406 = vmatprep.mubr.msk.bf16.mxu1 %vm833_vm3, %v6615_v35 }
 0x120   : > { %3462 = vrot.lane.b32.xlu0 %v3388_v17, %s5855_s17  ;;  %v3391_v17 = vld [vmem:[%s6892_s16 + $0x68] sm:$0xff] }
 0x121   : > { %3460 = vrot.lane.b32.xlu1 %v3387_v23, %s5855_s17 }
 0x123   : > { %v6953_v47 = vpop.f32.mrf.mxu0  ;;  %5445 = vmatmul.mubr.msk.bf16.gmra.mxu0 %vm833_vm3, %v4867_v24 }
 0x124   : > { %5492 = vmatprep.mubr.msk.bf16.mxu0 %vm833_vm3, %v6420_v51 }
 0x125   : > { %v6959_v32 = vpop.f32.mrf.mxu0  ;;  %3464 = vrot.lane.b32.xlu1 %v3389_v13, %s5855_s17 }
 0x126   : > { %v6963_v21 = vpop.f32.mrf.mxu1  ;;  %5407 = vmatmul.mubr.msk.bf16.gmra.mxu1 %vm833_vm3, %v6695_v1 }
 0x127   : > { %8398 = vst [vmem:[#allocation26_spill] sm:$0xff] %v6963_v21  ;;  %v6968_v26 = vpop.f32.mrf.mxu0  ;;  %5454 = vmatprep.mubr.msk.bf16.mxu1 %vm833_vm3, %v8382_v56  ;;  %v3390_v21 = vld [vmem:[%s6892_s16 + $0x60] sm:$0xff] }
 0x128   : > { %v6973_v51 = vpop.f32.mrf.mxu1  ;;  %3466 = vrot.lane.b32.xlu0 %v3390_v21, %s5855_s17 }
 0x129   : > { %8399 = vst [vmem:[#allocation6_spill] sm:$0xff] %v6973_v51  ;;  %v6975_v24 = vpop.f32.mrf.mxu0  ;;  %v3392_v51 = vld [vmem:[%s6892_s16 + $0x70] sm:$0xff]  ;;  %3468 = vrot.lane.b32.xlu1 %v3391_v17, %s5855_s17 }
 0x12a   : > { %v6979_v10 = vpop.f32.mrf.mxu1 }
 0x12b   : > { %8400 = vst [vmem:[#allocation7_spill] sm:$0xff] %v6979_v10  ;;  %v5266_v23 = vpop.f32.mrf.mxu0  ;;  %5493 = vmatmul.mubr.msk.bf16.vlgmr.msra.gmra.mxu0 %vm833_vm3, %v6458_v43 }
 0x12c   : > { %v6985_v48 = vpop.f32.mrf.mxu1  ;;  %5496 = vmatprep.mubr.msk.bf16.mxu0 %vm833_vm3, %v6460_v63  ;;  %3470 = vrot.lane.b32.xlu0 %v3392_v51, %s5855_s17 }
 0x12d   : > { %8401 = vst [vmem:[#allocation9_spill] sm:$0xff] %v6985_v48  ;;  %v1639_v56 = vpop.f32.mrf.mxu0  ;;  %3472 = vrot.lane.b32.xlu1 %v3393_v33, %s5855_s17 }
 0x12e   : > { %v5228_v15 = vpop.f32.mrf.mxu1  ;;  %5455 = vmatmul.mubr.msk.bf16.vlgmr.msra.gmra.mxu1 %vm833_vm3, %v8383_v55  ;;  %v3394_v55 = vld [vmem:[%s6892_s16 + $0x80] sm:$0xff] }
 0x12f   : > { %v1236_v43 = vadd.f32 %v5228_v15, %v6828_v61  ;;  %v5267_v13 = vpop.f32.mrf.mxu0  ;;  %5458 = vmatprep.mubr.msk.bf16.mxu1 %vm833_vm3, %v8384_v2 }
 0x130   : > { %v1227_v21 = vpop.f32.mrf.mxu1  ;;  %3474 = vrot.lane.b32.xlu0 %v3394_v55, %s5855_s17 }
 0x131   : > { %v6998_v63 = vadd.f32 %v5266_v23, %v1236_v43  ;;  %v1228_v48 = vadd.f32 %v1227_v21, %v6838_v28  ;;  %v1642_v10 = vpop.f32.mrf.mxu0  ;;  %v3398_v21 = vld [vmem:[%s6892_s16 + $0xa0] sm:$0xff] }
 0x132   : > { %v5229_v9 = vpop.f32.mrf.mxu1 }
 0x133   : > { %v7004_v61 = vadd.f32 %v1639_v56, %v1228_v48  ;;  %v1239_v15 = vadd.f32 %v5229_v9, %v6844_v0  ;;  %v5270_v2 = vpop.f32.mrf.mxu0  ;;  %5497 = vmatmul.mubr.msk.bf16.gmra.mxu0 %vm833_vm3, %v6497_v18  ;;  %v3395_v48 = vld [vmem:[%s6892_s16 + $0x88] sm:$0xff]  ;;  %v3396_v56 = vld [vmem:[%s6892_s16 + $0x90] sm:$0xff] }
 0x134   : > { %v1230_v51 = vpop.f32.mrf.mxu1  ;;  %5500 = vmatprep.mubr.msk.bf16.mxu0 %vm833_vm3, %v6516_v50  ;;  %3476 = vrot.lane.b32.xlu1 %v3395_v48, %s5855_s17 }
 0x135   : > { %v7012_v28 = vadd.f32 %v5267_v13, %v1239_v15  ;;  %v1231_v23 = vadd.f32 %v1230_v51, %v6854_v40  ;;  %v1655_v33 = vpop.f32.mrf.mxu0  ;;  %3478 = vrot.lane.b32.xlu0 %v3396_v56, %s5855_s17 }
 0x136   : > { %v5232_v9 = vpop.f32.mrf.mxu1  ;;  %5459 = vmatmul.mubr.msk.bf16.gmra.mxu1 %vm833_vm3, %v8385_v12  ;;  %v3397_v12 = vld [vmem:[%s6892_s16 + $0x98] sm:$0xff] }
 0x137   : > { %v7020_v18 = vadd.f32 %v1642_v10, %v1231_v23  ;;  %v1252_v0 = vadd.f32 %v5232_v9, %v6860_v11  ;;  %v5271_v50 = vpop.f32.mrf.mxu0  ;;  %5462 = vmatprep.mubr.msk.bf16.mxu1 %vm833_vm3, %v8386_v27  ;;  %v3399_v23 = vld [vmem:[%s6892_s16 + $0xa8] sm:$0xff] }
 0x138   : > { %v1243_v40 = vpop.f32.mrf.mxu1  ;;  %3480 = vrot.lane.b32.xlu1 %v3397_v12, %s5855_s17 }
 0x139   : > { %v7026_v17 = vadd.f32 %v5270_v2, %v1252_v0  ;;  %v1244_v43 = vadd.f32 %v1243_v40, %v6870_v42  ;;  %v1658_v13 = vpop.f32.mrf.mxu0  ;;  %3482 = vrot.lane.b32.xlu0 %v3398_v21, %s5855_s17 }
 0x13a   : > { %v5233_v10 = vpop.f32.mrf.mxu1 }
 0x13b   : > { %v7032_v11 = vadd.f32 %v1655_v33, %v1244_v43  ;;  %v1255_v55 = vadd.f32 %v5233_v10, %v6876_v53  ;;  %v5274_v27 = vpop.f32.mrf.mxu0  ;;  %5501 = vmatmul.mubr.msk.bf16.gmra.mxu0 %vm833_vm3, %v6587_v31  ;;  %v3400_v33 = vld [vmem:[%s6892_s16 + $0xb0] sm:$0xff]  ;;  %v3403_v10 = vld [vmem:[%s6892_s16 + $0xc8] sm:$0xff] }
 0x13c   : > { %v1246_v15 = vpop.f32.mrf.mxu1  ;;  %5504 = vmatprep.mubr.msk.bf16.mxu0 %vm833_vm3, %v6600_v58  ;;  %3484 = vrot.lane.b32.xlu1 %v3399_v23, %s5855_s17  ;;  %v3406_v23 = vld [vmem:[%s6892_s16 + $0xe0] sm:$0xff] }
 0x13d   : > { %v7040_v42 = vadd.f32 %v5271_v50, %v1255_v55  ;;  %v1247_v2 = vadd.f32 %v1246_v15, %v6886_v37  ;;  %v1671_v51 = vpop.f32.mrf.mxu0  ;;  %3486 = vrot.lane.b32.xlu0 %v3400_v33, %s5855_s17  ;;  %v3402_v50 = vld [vmem:[%s6892_s16 + $0xc0] sm:$0xff]  ;;  %v3404_v55 = vld [vmem:[%s6892_s16 + $0xd0] sm:$0xff] }
 0x13e   : > { %v5236_v53 = vpop.f32.mrf.mxu1  ;;  %5463 = vmatmul.mubr.msk.bf16.gmra.mxu1 %vm833_vm3, %v6371_v6  ;;  %v3401_v6 = vld [vmem:[%s6892_s16 + $0xb8] sm:$0xff] }
 0x13f   : > { %v7048_v31 = vadd.f32 %v1658_v13, %v1247_v2  ;;  %v1268_v48 = vadd.f32 %v5236_v53, %v6900_v3  ;;  %v5275_v58 = vpop.f32.mrf.mxu0  ;;  %5466 = vmatprep.mubr.msk.bf16.mxu1 %vm833_vm3, %v8387_v57 }
 0x140   : > { %v1259_v37 = vpop.f32.mrf.mxu1  ;;  %3488 = vrot.lane.b32.xlu1 %v3401_v6, %s5855_s17  ;;  %v2727_v6 = vshrl.u32 %v6929_v60, 16 }
 0x141   : > { %v7054_v56 = vadd.f32 %v5274_v27, %v1268_v48  ;;  %v1260_v9 = vadd.f32 %v1259_v37, %v6913_v7  ;;  %v1674_v0 = vpop.f32.mrf.mxu0  ;;  %3490 = vrot.lane.b32.xlu0 %v3402_v50, %s5855_s17 }
 0x142   : > { %v5237_v40 = vpop.f32.mrf.mxu1 }
 0x143   : > { %v7060_v3 = vadd.f32 %v1671_v51, %v1260_v9  ;;  %v1271_v43 = vadd.f32 %v5237_v40, %v6923_v59  ;;  %v5278_v57 = vpop.f32.mrf.mxu0  ;;  %5505 = vmatmul.mubr.msk.bf16.gmra.mxu0 %vm833_vm3, %v6639_v39  ;;  %v3407_v9 = vld [vmem:[%s6892_s16 + $0xe8] sm:$0xff] }
 0x144   : > { %v1262_v13 = vpop.f32.mrf.mxu1  ;;  %5508 = vmatprep.mubr.msk.bf16.mxu0 %vm833_vm3, %v6641_v30  ;;  %3492 = vrot.lane.b32.xlu1 %v3403_v10, %s5855_s17  ;;  %v2729_v10 = vrot.slane %v2727_v6, 4 }
 0x145   : > { %v7068_v7 = vadd.f32 %v5275_v58, %v1271_v43  ;;  %v1263_v12 = vadd.f32 %v1262_v13, %v6941_v36  ;;  %v1687_v21 = vpop.f32.mrf.mxu0  ;;  %3494 = vrot.lane.b32.xlu0 %v3404_v55, %s5855_s17 }
 0x146   : > { %v5240_v59 = vpop.f32.mrf.mxu1  ;;  %5467 = vmatmul.mubr.msk.bf16.gmra.mxu1 %vm833_vm3, %v8388_v29  ;;  %v3405_v29 = vld [vmem:[%s6892_s16 + $0xd8] sm:$0xff] }
 0x147   : > { %v7076_v39 = vadd.f32 %v1674_v0, %v1263_v12  ;;  %v1284_v27 = vadd.f32 %v5240_v59, %v6953_v47  ;;  %v5279_v30 = vpop.f32.mrf.mxu0  ;;  %5470 = vmatprep.mubr.msk.bf16.mxu1 %vm833_vm3, %v8389_v34  ;;  %v3408_v0 = vld [vmem:[%s6892_s16 + $0xf0] sm:$0xff] }
 0x148   : > { %v1275_v36 = vpop.f32.mrf.mxu1  ;;  %3496 = vrot.lane.b32.xlu1 %v3405_v29, %s5855_s17 }
 0x149   : > { %v7082_v15 = vadd.f32 %v5278_v57, %v1284_v27  ;;  %v1276_v2 = vadd.f32 %v1275_v36, %v6959_v32  ;;  %v1690_v51 = vpop.f32.mrf.mxu0  ;;  %3498 = vrot.lane.b32.xlu0 %v3406_v23, %s5855_s17 }
 0x14a   : > { %v5241_v33 = vpop.f32.mrf.mxu1 }
 0x14b   : > { %v7088_v47 = vadd.f32 %v1687_v21, %v1276_v2  ;;  %v1287_v53 = vadd.f32 %v5241_v33, %v6968_v26  ;;  %v5282_v34 = vpop.f32.mrf.mxu0  ;;  %5509 = vmatmul.mubr.msk.bf16.gmra.mxu0 %vm833_vm3, %v6552_v52  ;;  %v2730_v26 = vshll.u32 %v6929_v60, 16  ;;  %v2736_v52 = vshll.u32 %v6932_v8, 16  ;;  %v3409_v21 = vld [vmem:[%s6892_s16 + $0xf8] sm:$0xff]  ;;  %s8166_s16 = scalar_lea.sflag [#allocation3], %s282_s7 }
 0x14c   : > { %v1278_v48 = vpop.f32.mrf.mxu1  ;;  %5512 = vmatprep.mubr.msk.bf16.mxu0 %vm833_vm3, %v6576_v20  ;;  %3500 = vrot.lane.b32.xlu1 %v3407_v9, %s5855_s17  ;;  %v2740_v20 = vshrl.u32 %v6932_v8, 16 }
 0x14d   : > { %v7096_v32 = vadd.f32 %v5279_v30, %v1287_v53  ;;  %v1279_v58 = vadd.f32 %v1278_v48, %v6975_v24  ;;  %v1703_v37 = vpop.f32.mrf.mxu0  ;;  %3502 = vrot.lane.b32.xlu0 %v3408_v0, %s5855_s17  ;;  %v2732_v55 = vrot.slane %v2730_v26, 5 }
 0x14e   : > { %v5244_v50 = vpop.f32.mrf.mxu1  ;;  %5471 = vmatmul.mubr.msk.bf16.gmra.mxu1 %vm833_vm3, %v8390_v62  ;;  %v2742_v27 = vrot.slane %v2740_v20, 4 }
 0x14f   : > { %v7108_v40 = vadd.f32 %v1690_v51, %v1279_v58  ;;  %v1300_v24 = vadd.f32 %v5244_v50, %v6834_v4  ;;  %v5283_v43 = vpop.f32.mrf.mxu0  ;;  %5474 = vmatprep.mubr.msk.bf16.mxu1 %vm833_vm3, %v8391_v38  ;;  %v2738_v4 = vrot.slane %v2736_v52, 5  ;;  %v371_v51 = vld [vmem:[%s5973_s29 + $0xd4] sm:$0x1]  ;;  %v4912_v58 = vrot.slane %v6929_v60, 9  ;;  %s5859_s29 = smov [#allocation2]  }
 0x150   : > { %v1291_v57 = vpop.f32.mrf.mxu1  ;;  %3504 = vrot.lane.b32.xlu1 %v3409_v21, %s5855_s17  ;;  %v2746_v48 = vshll.u32 %v371_v51, 16  ;;  %v2979_v9 = vrot.slane %v371_v51, 5  ;;  %v8402_v21 = vld [vmem:[#allocation28_spill] sm:$0xff]  ;;  %s5781_s24 = sshll.u32 %s5859_s29, 4  ;;  %s5782_s24 = int_to_ptr.vmem [resolvable:$false] %s5781_s24 }
 0x151   : > { %v7114_v13 = vadd.f32 %v5282_v34, %v1300_v24  ;;  %v1292_v62 = vadd.f32 %v1291_v57, %v6840_v5  ;;  %v1706_v12 = vpop.f32.mrf.mxu0  ;;  %v2976_v5 = vrot.slane %v6932_v8, 5  ;;  %p5784_p1 = scmp.lt.s32.totalorder %s8161_s12, %s5782_s24 }
 0x152   : > { %v5245_v59 = vpop.f32.mrf.mxu1  ;;  %v2748_v60 = vrot.slane %v2746_v48, 5 }
 0x153   : > { %v7119_v30 = vadd.f32 %v1703_v37, %v1292_v62  ;;  %v1303_v38 = vadd.f32 %v5245_v59, %v6850_v14  ;;  %v5286_v36 = vpop.f32.mrf.mxu0  ;;  %5513 = vmatmul.mubr.msk.bf16.gmra.mxu0 %vm833_vm3, %v6594_v25  ;;  %v2733_v14 = vor.u32 %v2732_v55, %v2729_v10 }
 0x154   : > { %v1294_v2 = vpop.f32.mrf.mxu1  ;;  %5516 = vmatprep.mubr.msk.bf16.mxu0 %vm833_vm3, %v6605_v49  ;;  %v2743_v49 = vor.u32 %v2742_v27, %v2738_v4 }
 0x155   : > { %v7128_v29 = vadd.f32 %v5283_v43, %v1303_v38  ;;  %v1295_v23 = vadd.f32 %v1294_v2, %v6856_v45  ;;  %v1719_v33 = vpop.f32.mrf.mxu0  ;;  %v2978_v45 = vrot.slane %v2976_v5, 4  ;;  %v2734_v50 = vrot.slane %v2733_v14, 4  ;;  %v8405_v38 = vld [vmem:[#allocation17_spill] sm:$0xff]  ;;  %v8406_v2 = vld [vmem:[#allocation22_spill] sm:$0xff]  ;;  %v8407_v14 = vld [vmem:[#allocation20_spill] sm:$0xff] }
 0x156   : > { %v5248_v53 = vpop.f32.mrf.mxu1  ;;  %5475 = vmatmul.mubr.msk.bf16.gmra.mxu1 %vm833_vm3, %v8392_v41 }
 0x157   : > { %v7133_v34 = vadd.f32 %v1706_v12, %v1295_v23  ;;  %v1316_v25 = vadd.f32 %v5248_v53, %v6866_v16  ;;  %v5287_v8 = vpop.f32.mrf.mxu0  ;;  %5478 = vmatprep.mubr.msk.bf16.mxu1 %vm833_vm3, %v6348_v19  ;;  %v2744_v19 = vrot.slane %v2743_v49, 4  ;;  %v2980_v43 = vsel %vm6356_vm7, %v2978_v45, %v2979_v9 }
 0x158   : > { %v1307_v37 = vpop.f32.mrf.mxu1  ;;  %v2739_v10 = vsel %vm6019_vm4, %v2734_v50, %v2738_v4 }
 0x159   : > { %v7139_v0 = vadd.f32 %v5286_v36, %v1316_v25  ;;  %v1308_v41 = vadd.f32 %v1307_v37, %v6872_v54  ;;  %v1722_v6 = vpop.f32.mrf.mxu0  ;;  %v2977_v54 = vsel %vm6356_vm7, %v4912_v58, %v2976_v5  ;;  %v2749_v46 = vsel %vm6019_vm4, %v2744_v19, %v2748_v60  ;;  %v8408_v58 = vld [vmem:[#allocation23_spill] sm:$0xff]  ;;  %v8410_v19 = vld [vmem:[#allocation6_spill] sm:$0xff] }
 0x15a   : > { %v5249_v26 = vpop.f32.mrf.mxu1  ;;  %v4892_v4 = vcombine.low %v2739_v10, %v2749_v46  ;;  %v8412_v10 = vld [vmem:[#allocation9_spill] sm:$0xff] }
 0x15b   : > { %v7142_v52 = vadd.f32 %v1719_v33, %v1308_v41  ;;  %v1319_v16 = vadd.f32 %v5249_v26, %v6882_v44  ;;  %v5290_v20 = vpop.f32.mrf.mxu0  ;;  %5517 = vmatmul.mubr.msk.bf16.gmra.mxu0 %vm833_vm3, %v6615_v35 }
 0x15c   : > { %v1310_v24 = vpop.f32.mrf.mxu1  ;;  %5520 = vmatprep.mubr.msk.bf16.mxu0 %vm833_vm3, %v6695_v1  ;;  %v8404_v1 = vld [vmem:[#allocation18_spill] sm:$0xff] }
 0x15d   : > { %v7153_v57 = vadd.f32 %v5287_v8, %v1319_v16  ;;  %v1311_v44 = vadd.f32 %v1310_v24, %v6895_v22  ;;  %v1735_v62 = vpop.f32.mrf.mxu0  ;;  %v4918_v22 = vcombine.low %v2977_v54, %v2980_v43 }
 0x15e   : > { %v5252_v12 = vpop.f32.mrf.mxu1  ;;  %5479 = vmatmul.mubr.msk.bf16.gmra.mxu1 %vm833_vm3, %v8402_v21 }
 0x15f   : > { %v7160_v55 = vadd.f32 %v1722_v6, %v1311_v44  ;;  %v1332_v59 = vadd.f32 %v5252_v12, %v8404_v1  ;;  %v5291_v27 = vpop.f32.mrf.mxu0  ;;  %5482 = vmatprep.mubr.msk.bf16.mxu1 %vm833_vm3, %v8405_v38  ;;  %v8409_v6 = vld [vmem:[#allocation26_spill] sm:$0xff]  ;;  %v8411_v44 = vld [vmem:[#allocation7_spill] sm:$0xff] }
 0x160   : > { %v1323_v36 = vpop.f32.mrf.mxu1 }
 0x161   : > { %v7167_v5 = vadd.f32 %v5290_v20, %v1332_v59  ;;  %v1324_v51 = vadd.f32 %v1323_v36, %v8406_v2  ;;  %v1738_v23 = vpop.f32.mrf.mxu0 }
 0x162   : > { %v5253_v33 = vpop.f32.mrf.mxu1 }
 0x163   : > { %v7170_v53 = vadd.f32 %v1735_v62, %v1324_v51  ;;  %v1335_v25 = vadd.f32 %v5253_v33, %v8407_v14  ;;  %v5294_v8 = vpop.f32.mrf.mxu0  ;;  %5521 = vmatmul.mubr.msk.bf16.gmra.mxu0 %vm833_vm3, %v4918_v22 }
 0x164   : > { %v1326_v49 = vpop.f32.mrf.mxu1 }
 0x165   : > { %v7174_v48 = vadd.f32 %v5291_v27, %v1335_v25  ;;  %v1327_v37 = vadd.f32 %v1326_v49, %v8408_v58  ;;  %v1751_v45 = vpop.f32.mrf.mxu0 }
 0x166   : > { %v5256_v9 = vpop.f32.mrf.mxu1  ;;  %5483 = vmatmul.mubr.msk.bf16.gmra.mxu1 %vm833_vm3, %v4892_v4 }
 0x167   : > { %v7178_v41 = vadd.f32 %v1738_v23, %v1327_v37  ;;  %v1348_v26 = vadd.f32 %v5256_v9, %v8409_v6  ;;  %v5295_v50 = vpop.f32.mrf.mxu0 }
 0x168   : > { %v1339_v16 = vpop.f32.mrf.mxu1 }
 0x169   : > { %v7181_v20 = vadd.f32 %v5294_v8, %v1348_v26  ;;  %v1340_v60 = vadd.f32 %v1339_v16, %v8410_v19  ;;  %v1754_v24 = vpop.f32.mrf.mxu0 }
 0x16a   : > { %v5257_v54 = vpop.f32.mrf.mxu1 }
 0x16b   : > { %v7184_v43 = vadd.f32 %v1751_v45, %v1340_v60  ;;  %v1351_v62 = vadd.f32 %v5257_v54, %v8411_v44  ;;  %v5342_v12 = vpop.f32.mrf.mxu0 }
 0x16c   : > { %v1342_v21 = vpop.f32.mrf.mxu1 }
 0x16d   : > { %v7187_v35 = vadd.f32 %v5295_v50, %v1351_v62  ;;  %v1343_v1 = vadd.f32 %v1342_v21, %v8412_v10  ;;  %v2111_v59 = vpop.f32.mrf.mxu0 }
 0x16e   : > { %v5304_v27 = vpop.f32.mrf.mxu1 }
 0x16f   : > { %v7190_v38 = vadd.f32 %v1754_v24, %v1343_v1  ;;  %v1993_v46 = vadd.f32 %v5304_v27, %v6998_v63  ;;  %v5343_v22 = vpop.f32.mrf.mxu0 }
 0x170   : > { %v1864_v36 = vpop.f32.mrf.mxu1 }
 0x171   : > { %v7193_v2 = vadd.f32 %v5342_v12, %v1993_v46  ;;  %v1991_v51 = vadd.f32 %v1864_v36, %v7004_v61  ;;  %v2114_v23 = vpop.f32.mrf.mxu0 }
 0x172   : > { %v5305_v33 = vpop.f32.mrf.mxu1 }
 0x173   : > { %v7196_v4 = vadd.f32 %v2111_v59, %v1991_v51  ;;  %v1994_v14 = vadd.f32 %v5305_v33, %v7012_v28  ;;  %v5346_v25 = vpop.f32.mrf.mxu0 }
 0x174   : > { %v1867_v8 = vpop.f32.mrf.mxu1 }
 0x175   : > { %v7199_v49 = vadd.f32 %v5343_v22, %v1994_v14  ;;  %v1992_v58 = vadd.f32 %v1867_v8, %v7020_v18  ;;  %v2127_v37 = vpop.f32.mrf.mxu0 }
 0x176   : > { %v5308_v63 = vpop.f32.mrf.mxu1 }
 0x177   : > { %v7202_v45 = vadd.f32 %v2114_v23, %v1992_v58  ;;  %v1997_v9 = vadd.f32 %v5308_v63, %v7026_v17  ;;  %v5347_v6 = vpop.f32.mrf.mxu0 }
 0x178   : > { %v1880_v61 = vpop.f32.mrf.mxu1 }
 0x179   : > { %v7205_v26 = vadd.f32 %v5346_v25, %v1997_v9  ;;  %v1995_v50 = vadd.f32 %v1880_v61, %v7032_v11  ;;  %v2130_v16 = vpop.f32.mrf.mxu0 }
 0x17a   : > { %v5309_v28 = vpop.f32.mrf.mxu1 }
 0x17b   : > { %v7208_v19 = vadd.f32 %v2127_v37, %v1995_v50  ;;  %v1998_v60 = vadd.f32 %v5309_v28, %v7040_v42  ;;  %v5350_v24 = vpop.f32.mrf.mxu0 }
 0x17c   : > { %v1883_v18 = vpop.f32.mrf.mxu1 }
 0x17d   : > { %v7211_v54 = vadd.f32 %v5347_v6, %v1998_v60  ;;  %v1996_v44 = vadd.f32 %v1883_v18, %v7048_v31  ;;  %v2143_v62 = vpop.f32.mrf.mxu0 }
 0x17e   : > { %v5312_v17 = vpop.f32.mrf.mxu1 }
 0x17f   : > { %v7214_v12 = vadd.f32 %v2130_v16, %v1996_v44  ;;  %v2001_v21 = vadd.f32 %v5312_v17, %v7054_v56  ;;  %v5351_v10 = vpop.f32.mrf.mxu0 }
 0x180   : > { %v1896_v11 = vpop.f32.mrf.mxu1 }
 0x181   : > { %v7217_v1 = vadd.f32 %v5350_v24, %v2001_v21  ;;  %v1999_v59 = vadd.f32 %v1896_v11, %v7060_v3  ;;  %v2146_v27 = vpop.f32.mrf.mxu0 }
 0x182   : > { %v5313_v42 = vpop.f32.mrf.mxu1 }
 0x183   : > { %v7220_v46 = vadd.f32 %v2143_v62, %v1999_v59  ;;  %v2002_v22 = vadd.f32 %v5313_v42, %v7068_v7  ;;  %v5354_v36 = vpop.f32.mrf.mxu0 }
 0x184   : > { %v1899_v31 = vpop.f32.mrf.mxu1 }
 0x185   : > { %v7223_v51 = vadd.f32 %v5351_v10, %v2002_v22  ;;  %v2000_v23 = vadd.f32 %v1899_v31, %v7076_v39  ;;  %v2159_v33 = vpop.f32.mrf.mxu0 }
 0x186   : > { %v5316_v56 = vpop.f32.mrf.mxu1 }
 0x187   : > { %v7226_v14 = vadd.f32 %v2146_v27, %v2000_v23  ;;  %v2005_v25 = vadd.f32 %v5316_v56, %v7082_v15  ;;  %v5355_v8 = vpop.f32.mrf.mxu0 }
 0x188   : > { %v1912_v3 = vpop.f32.mrf.mxu1 }
 0x189   : > { %v7229_v58 = vadd.f32 %v5354_v36, %v2005_v25  ;;  %v2003_v37 = vadd.f32 %v1912_v3, %v7088_v47  ;;  %v2162_v63 = vpop.f32.mrf.mxu0 }
 0x18a   : > { %v5317_v7 = vpop.f32.mrf.mxu1 }
 0x18b   : > { %v7232_v9 = vadd.f32 %v2159_v33, %v2003_v37  ;;  %v2006_v6 = vadd.f32 %v5317_v7, %v7096_v32  ;;  %v5358_v61 = vpop.f32.mrf.mxu0 }
 0x18c   : > { %v1915_v39 = vpop.f32.mrf.mxu1 }
 0x18d   : > { %v7235_v50 = vadd.f32 %v5355_v8, %v2006_v6  ;;  %v2004_v16 = vadd.f32 %v1915_v39, %v7108_v40  ;;  %v2175_v28 = vpop.f32.mrf.mxu0 }
 0x18e   : > { %v5320_v15 = vpop.f32.mrf.mxu1 }
 0x18f   : > { %v7238_v60 = vadd.f32 %v2162_v63, %v2004_v16  ;;  %v2009_v24 = vadd.f32 %v5320_v15, %v7114_v13  ;;  %v5359_v18 = vpop.f32.mrf.mxu0 }
 0x190   : > { %v1928_v47 = vpop.f32.mrf.mxu1 }
 0x191   : > { %v7241_v44 = vadd.f32 %v5358_v61, %v2009_v24  ;;  %v2007_v62 = vadd.f32 %v1928_v47, %v7119_v30  ;;  %v2178_v17 = vpop.f32.mrf.mxu0 }
 0x192   : > { %v5321_v32 = vpop.f32.mrf.mxu1 }
 0x193   : > { %v7244_v21 = vadd.f32 %v2175_v28, %v2007_v62  ;;  %v2010_v10 = vadd.f32 %v5321_v32, %v7128_v29  ;;  %v5362_v11 = vpop.f32.mrf.mxu0 }
 0x194   : > { %v1931_v40 = vpop.f32.mrf.mxu1 }
 0x195   : > { %v7247_v59 = vadd.f32 %v5359_v18, %v2010_v10  ;;  %v2008_v27 = vadd.f32 %v1931_v40, %v7133_v34  ;;  %v2191_v42 = vpop.f32.mrf.mxu0 }
 0x196   : > { %v5324_v13 = vpop.f32.mrf.mxu1 }
 0x197   : > { %v7250_v22 = vadd.f32 %v2178_v17, %v2008_v27  ;;  %v2013_v36 = vadd.f32 %v5324_v13, %v7139_v0  ;;  %v5363_v31 = vpop.f32.mrf.mxu0 }
 0x198   : > { %v1944_v30 = vpop.f32.mrf.mxu1 }
 0x199   : > { %8413 = vst [vmem:[#allocation11_spill] sm:$0xff] %v7250_v22  ;;  %v7253_v23 = vadd.f32 %v5362_v11, %v2013_v36  ;;  %v2011_v33 = vadd.f32 %v1944_v30, %v7142_v52  ;;  %v2194_v56 = vpop.f32.mrf.mxu0 }
 0x19a   : > { %v5325_v29 = vpop.f32.mrf.mxu1 }
 0x19b   : > { %8414 = vst [vmem:[#allocation10_spill] sm:$0xff] %v7253_v23  ;;  %v7256_v25 = vadd.f32 %v2191_v42, %v2011_v33  ;;  %v2014_v8 = vadd.f32 %v5325_v29, %v7153_v57  ;;  %v5366_v3 = vpop.f32.mrf.mxu0 }
 0x19c   : > { %v1947_v34 = vpop.f32.mrf.mxu1 }
 0x19d   : > { %v7259_v37 = vadd.f32 %v5363_v31, %v2014_v8  ;;  %v2012_v63 = vadd.f32 %v1947_v34, %v7160_v55  ;;  %v2207_v7 = vpop.f32.mrf.mxu0 }
 0x19e   : > { %v5328_v0 = vpop.f32.mrf.mxu1 }
 0x19f   : > { %8415 = vst [vmem:[#allocation13_spill] sm:$0xff] %v7259_v37  ;;  %v7262_v6 = vadd.f32 %v2194_v56, %v2012_v63  ;;  %v2017_v61 = vadd.f32 %v5328_v0, %v7167_v5  ;;  %v5367_v39 = vpop.f32.mrf.mxu0 }
 0x1a0   : > { %v1960_v52 = vpop.f32.mrf.mxu1 }
 0x1a1   : > { %8416 = vst [vmem:[#allocation15_spill] sm:$0xff] %v7262_v6  ;;  %v7265_v16 = vadd.f32 %v5366_v3, %v2017_v61  ;;  %v2015_v28 = vadd.f32 %v1960_v52, %v7170_v53  ;;  %v2210_v15 = vpop.f32.mrf.mxu0 }
 0x1a2   : > { %v5329_v57 = vpop.f32.mrf.mxu1 }
 0x1a3   : > { %8417 = vst [vmem:[#allocation19_spill] sm:$0xff] %v7265_v16  ;;  %v7268_v24 = vadd.f32 %v2207_v7, %v2015_v28  ;;  %v2018_v18 = vadd.f32 %v5329_v57, %v7174_v48  ;;  %v5370_v47 = vpop.f32.mrf.mxu0 }
 0x1a4   : > { %v1963_v55 = vpop.f32.mrf.mxu1 }
 0x1a5   : > { %v7271_v62 = vadd.f32 %v5367_v39, %v2018_v18  ;;  %v2016_v17 = vadd.f32 %v1963_v55, %v7178_v41  ;;  %v2223_v32 = vpop.f32.mrf.mxu0 }
 0x1a6   : > { %v5332_v5 = vpop.f32.mrf.mxu1 }
 0x1a7   : > { %8418 = vst [vmem:[#allocation24_spill] sm:$0xff] %v7271_v62  ;;  %v7274_v10 = vadd.f32 %v2210_v15, %v2016_v17  ;;  %v2021_v11 = vadd.f32 %v5332_v5, %v7181_v20  ;;  %v5371_v40 = vpop.f32.mrf.mxu0 }
 0x1a8   : > { %v1976_v53 = vpop.f32.mrf.mxu1 }
 0x1a9   : > { %8419 = vst [vmem:[#allocation27_spill] sm:$0xff] %v7274_v10  ;;  %v7277_v27 = vadd.f32 %v5370_v47, %v2021_v11  ;;  %v2019_v42 = vadd.f32 %v1976_v53, %v7184_v43  ;;  %v2226_v13 = vpop.f32.mrf.mxu0 }
 0x1aa   : > { %v5333_v48 = vpop.f32.mrf.mxu1 }
 0x1ab   : > { %8420 = vst [vmem:[#allocation8_spill] sm:$0xff] %v7277_v27  ;;  %v7280_v36 = vadd.f32 %v2223_v32, %v2019_v42  ;;  %v2022_v31 = vadd.f32 %v5333_v48, %v7187_v35  ;;  %v7283_v30 = vpop.f32.mrf.mxu0 }
 0x1ac   : > { %v1979_v41 = vpop.f32.mrf.mxu1 }
 0x1ad   : > { %v7285_v33 = vadd.f32 %v5371_v40, %v2022_v31  ;;  %v2020_v56 = vadd.f32 %v1979_v41, %v7190_v38  ;;  %v7288_v20 = vpop.f32.mrf.mxu0 }
 0x1ae   : > { %v7290_v29 = vpop.f32.mrf.mxu1 }
 0x1af   : > { %8421 = vst [vmem:[#allocation12_spill] sm:$0xff] %v7285_v33  ;;  %v7292_v8 = vadd.f32 %v2226_v13, %v2020_v56  ;;  %v7294_v43 = vpop.f32.mrf.mxu0 }
 0x1b0   : > { %v7296_v3 = vpop.f32.mrf.mxu1 }
 0x1b1   : > { %8422 = vst [vmem:[#allocation14_spill] sm:$0xff] %v7292_v8  ;;  %v7298_v34 = vpop.f32.mrf.mxu0 }
 0x1b2   : > { %v7300_v35 = vpop.f32.mrf.mxu1 }
 0x1b3   : > { %v7302_v63 = vpop.f32.mrf.mxu0 }
 0x1b4   : > { %v7304_v7 = vpop.f32.mrf.mxu1 }
 0x1b5   : > { %v2583_v0 = vpop.f32.mrf.mxu0 }
 0x1b6   : > { %v7306_v38 = vpop.f32.mrf.mxu1 }
 0x1b7   : > { %v7308_v61 = vpop.f32.mrf.mxu0 }
 0x1b8   : > { %v2358_v39 = vpop.f32.mrf.mxu1 }
 0x1b9   : > { %v2473_v52 = vadd.f32 %v2358_v39, %v7208_v19  ;;  %v7311_v28 = vpop.f32.mrf.mxu0 }
 0x1ba   : > { %v7313_v15 = vpop.f32.mrf.mxu1 }
 0x1bb   : > { %v7315_v57 = vadd.f32 %v2583_v0, %v2473_v52  ;;  %v7317_v18 = vpop.f32.mrf.mxu0 }
 0x1bc   : > { %v7319_v47 = vpop.f32.mrf.mxu1 }
 0x1bd   : > { %v2599_v55 = vpop.f32.mrf.mxu0 }
 0x1be   : > { %v7321_v17 = vpop.f32.mrf.mxu1 }
 0x1bf   : > { %v7323_v32 = vpop.f32.mrf.mxu0 }
 0x1c0   : > { %v2374_v5 = vpop.f32.mrf.mxu1 }
 0x1c1   : > { %v2477_v11 = vadd.f32 %v2374_v5, %v7220_v46  ;;  %v7326_v40 = vpop.f32.mrf.mxu0 }
 0x1c2   : > { %v7328_v19 = vpop.f32.mrf.mxu1 }
 0x1c3   : > { %v7330_v53 = vadd.f32 %v2599_v55, %v2477_v11  ;;  %v7332_v42 = vpop.f32.mrf.mxu0 }
 0x1c4   : > { %v7334_v13 = vpop.f32.mrf.mxu1 }
 0x1c5   : > { %v2615_v48 = vpop.f32.mrf.mxu0 }
 0x1c6   : > { %v7336_v31 = vpop.f32.mrf.mxu1 }
 0x1c7   : > { %v7338_v41 = vpop.f32.mrf.mxu0 }
 0x1c8   : > { %v2390_v56 = vpop.f32.mrf.mxu1 }
 0x1c9   : > { %v2481_v0 = vadd.f32 %v2390_v56, %v7232_v9  ;;  %v7341_v39 = vpop.f32.mrf.mxu0 }
 0x1ca   : > { %v7343_v46 = vpop.f32.mrf.mxu1 }
 0x1cb   : > { %v7345_v52 = vadd.f32 %v2615_v48, %v2481_v0  ;;  %v7347_v55 = vpop.f32.mrf.mxu0 }
 0x1cc   : > { %v7349_v5 = vpop.f32.mrf.mxu1 }
 0x1cd   : > { %8423 = vst [vmem:[#allocation16_spill] sm:$0xff] %v7345_v52  ;;  %v2631_v11 = vpop.f32.mrf.mxu0 }
 0x1ce   : > { %v7351_v8 = vpop.f32.mrf.mxu1 }
 0x1cf   : > { %v7353_v33 = vpop.f32.mrf.mxu0 }
 0x1d0   : > { %v2406_v27 = vpop.f32.mrf.mxu1 }
 0x1d1   : > { %v2485_v10 = vadd.f32 %v2406_v27, %v7244_v21  ;;  %v7356_v62 = vpop.f32.mrf.mxu0 }
 0x1d2   : > { %8424 = vst [vmem:[#allocation21_spill] sm:$0xff] %v7356_v62  ;;  %v7358_v9 = vpop.f32.mrf.mxu1 }
 0x1d3   : > { %v7360_v56 = vadd.f32 %v2631_v11, %v2485_v10  ;;  %v7362_v48 = vpop.f32.mrf.mxu0 }
 0x1d4   : > { %8426 = vst [vmem:[#allocation28_spill] sm:$0xff] %v7362_v48  ;;  %v7364_v0 = vpop.f32.mrf.mxu1 }
 0x1d5   : > { %8425 = vst [vmem:[#allocation25_spill] sm:$0xff] %v7360_v56  ;;  %8427 = vst [vmem:[#allocation5_spill] sm:$0xff] %v7364_v0  ;;  %v2647_v16 = vpop.f32.mrf.mxu0 }
 0x1d6   : > { %v7366_v6 = vpop.f32.mrf.mxu1 }
 0x1d7   : > { %8428 = vst [vmem:[#allocation18_spill] sm:$0xff] %v7366_v6  ;;  %v7368_v37 = vpop.f32.mrf.mxu0 }
 0x1d8   : > { %8429 = vst [vmem:[#allocation17_spill] sm:$0xff] %v7368_v37  ;;  %v2422_v52 = vpop.f32.mrf.mxu1 }
 0x1d9   : > { %v2489_v23 = vadd.f32 %v2422_v52, %v7256_v25  ;;  %v7371_v22 = vpop.f32.mrf.mxu0 }
 0x1da   : > { %8430 = vst [vmem:[#allocation22_spill] sm:$0xff] %v7371_v22  ;;  %v7373_v21 = vpop.f32.mrf.mxu1 }
 0x1db   : > { %v7375_v27 = vadd.f32 %v2647_v16, %v2489_v23  ;;  %v7377_v10 = vpop.f32.mrf.mxu0 }
 0x1dc   : > { %8432 = vst [vmem:[#allocation23_spill] sm:$0xff] %v7377_v10  ;;  %v7379_v11 = vpop.f32.mrf.mxu1 }
 0x1dd   : > { %8431 = vst [vmem:[#allocation20_spill] sm:$0xff] %v7375_v27  ;;  %8433 = vst [vmem:[#allocation26_spill] sm:$0xff] %v7379_v11  ;;  %v2663_v56 = vpop.f32.mrf.mxu0  ;;  %v3243_v27 = vlaneseq }
 0x1de   : > { %v7381_v48 = vpop.f32.mrf.mxu1 }
 0x1df   : > { %8434 = vst [vmem:[#allocation6_spill] sm:$0xff] %v7381_v48  ;;  %v7383_v62 = vpop.f32.mrf.mxu0  ;;  %v3244_v11 = vand.u32 127, %v3243_v27 }
 0x1e0   : > { %8435 = vst [vmem:[#allocation7_spill] sm:$0xff] %v7383_v62  ;;  %v2438_v6 = vpop.f32.mrf.mxu1 }
 0x1e1   : > { %v2493_v37 = vadd.f32 %v2438_v6, %v7268_v24  ;;  %v7386_v0 = vpop.f32.mrf.mxu0  ;;  %v2471_v6 = vadd.f32 %v7290_v29, %v7193_v2  ;;  %vm3245_vm8 = vcmp.ge.s32.totalorder %v3244_v11, 64  ;;  %vm3246_vm9 = vcmp.lt.s32.totalorder %v3244_v11, 96 }
 0x1e2   : > { %8436 = vst [vmem:[#allocation9_spill] sm:$0xff] %v7386_v0  ;;  %v7388_v25 = vpop.f32.mrf.mxu1  ;;  %v2472_v2 = vadd.f32 %v7300_v35, %v7199_v49  ;;  %vm7419_vm10 = vmand %vm3245_vm8, %vm3246_vm9 }
 0x1e3   : > { %v7390_v52 = vadd.f32 %v2663_v56, %v2493_v37  ;;  %v7392_v23 = vpop.f32.mrf.mxu0  ;;  %v2469_v56 = vadd.f32 %v7296_v3, %v7196_v4  ;;  %v2696_v27 = vadd.f32 %v7283_v30, %v2471_v6  ;;  %v7426_v30 = vld [vmem:[%s8291_s3] ss:$0 sm:$0xff] }
 0x1e4   : > { %8438 = vst [vmem:[#allocation30_spill] sm:$0xff] %v7392_v23  ;;  %v7394_v16 = vpop.f32.mrf.mxu1  ;;  %v2697_v49 = vadd.f32 %v7294_v43, %v2472_v2  ;;  %v2476_v43 = vadd.f32 %v7313_v15, %v7211_v54 }
 0x1e5   : > { %8437 = vst [vmem:[#allocation29_spill] sm:$0xff] %v7390_v52  ;;  %v2679_v10 = vpop.f32.mrf.mxu0  ;;  %v2694_v29 = vadd.f32 %v7288_v20, %v2469_v56 }
 0x1e6   : > { %v7396_v22 = vpop.f32.mrf.mxu1 }
 0x1e7   : > { %8439 = vst [vmem:[#allocation31_spill] sm:$0xff] %v7396_v22  ;;  %v7398_v48 = vpop.f32.mrf.mxu0 }
 0x1e8   : > { %8440 = vst [vmem:[#allocation32_spill] sm:$0xff] %v7398_v48  ;;  %v2454_v62 = vpop.f32.mrf.mxu1 }
 0x1e9   : > { %v2497_v24 = vadd.f32 %v2454_v62, %v7280_v36  ;;  %v7403_v0 = vpop.f32.mrf.mxu0 }
 0x1ea   : > { %8441 = vst [vmem:[#allocation33_spill] sm:$0xff] %v7403_v0  ;;  %v7405_v37 = vpop.f32.mrf.mxu1  ;;  %v2470_v0 = vadd.f32 %v7304_v7, %v7202_v45  ;;  %v2475_v45 = vadd.f32 %v7306_v38, %v7205_v26  ;;  %v5856_v7 = vmov 0.5  }
 0x1eb   : > { %v7409_v23 = vadd.f32 %v2679_v10, %v2497_v24  ;;  %v5494_v52 = vpop.f32.mrf.mxu0  ;;  %v7433_v24 = vsel %vm7419_vm10, 1.0, %v5856_v7 }
 0x1ec   : > { %v7411_v22 = vpop.f32.mrf.mxu1 }
 0x1ed   : > { %8442 = vst [vmem:[#allocation34_spill] sm:$0xff] %v7409_v23  ;;  %8443 = vst [vmem:[#allocation35_spill] sm:$0xff] %v7411_v22  ;;  %v3045_v62 = vpop.f32.mrf.mxu0 }
 0x1ee   : > { %v5456_v36 = vpop.f32.mrf.mxu1 }
 0x1ef   : > { %v2943_v4 = vadd.f32 %v5456_v36, %v2696_v27  ;;  %v5495_v10 = vpop.f32.mrf.mxu0  ;;  %v2695_v27 = vadd.f32 %v7298_v34, %v2470_v0  ;;  %v2474_v34 = vadd.f32 %v7319_v47, %v7214_v12 }
 0x1f0   : > { %v2814_v11 = vpop.f32.mrf.mxu1 }
 0x1f1   : > { %v3174_v35 = vadd.f32 %v5494_v52, %v2943_v4  ;;  %v2941_v6 = vadd.f32 %v2814_v11, %v2694_v29  ;;  %v3048_v20 = vpop.f32.mrf.mxu0  ;;  %v2700_v11 = vadd.f32 %v7302_v63, %v2475_v45  ;;  %v2699_v45 = vadd.f32 %v7311_v28, %v2474_v34 }
 0x1f2   : > { %v5457_v56 = vpop.f32.mrf.mxu1 }
 0x1f3   : > { %v3213_v36 = vadd.f32 %v7426_v30, %v3174_v35  ;;  %v3172_v23 = vadd.f32 %v3045_v62, %v2941_v6  ;;  %v2944_v48 = vadd.f32 %v5457_v56, %v2697_v49  ;;  %v5498_v22 = vpop.f32.mrf.mxu0  ;;  %v2701_v35 = vadd.f32 %v7308_v61, %v2476_v43 }
 0x1f4   : > { %v2817_v52 = vpop.f32.mrf.mxu1 }
 0x1f5   : > { %v3252_v2 = vmul.f32 %v7433_v24, %v3213_v36  ;;  %v3211_v26 = vadd.f32 %v7426_v30, %v3172_v23  ;;  %v3175_v38 = vadd.f32 %v5495_v10, %v2944_v48  ;;  %v2942_v29 = vadd.f32 %v2817_v52, %v2695_v27  ;;  %v3061_v4 = vpop.f32.mrf.mxu0 }
 0x1f6   : > { %v5460_v0 = vpop.f32.mrf.mxu1  ;;  %v2479_v48 = vadd.f32 %v7321_v17, %v7217_v1 }
 0x1f7   : > { %5647 = vtanh.f32 %v3252_v2  ;;  %v3250_v62 = vmul.f32 %v7433_v24, %v3211_v26  ;;  %v3214_v49 = vadd.f32 %v7426_v30, %v3175_v38  ;;  %v3173_v54 = vadd.f32 %v3048_v20, %v2942_v29  ;;  %v5499_v15 = vpop.f32.mrf.mxu0 }
 0x1f8   : > { %v2947_v23 = vadd.f32 %v5460_v0, %v2700_v11  ;;  %v2830_v10 = vpop.f32.mrf.mxu1  ;;  %v2480_v20 = vadd.f32 %v7328_v19, %v7223_v51  ;;  %v2704_v43 = vadd.f32 %v7317_v18, %v2479_v48  ;;  %v7465_v18 = vsel %vm7419_vm10, 0.0, %v5856_v7 }
 0x1f9   : > { %5649 = vtanh.f32 %v3250_v62  ;;  %v3253_v63 = vmul.f32 %v7433_v24, %v3214_v49  ;;  %v3212_v12 = vadd.f32 %v7426_v30, %v3173_v54  ;;  %v2945_v47 = vadd.f32 %v2830_v10, %v7315_v57  ;;  %v3064_v6 = vpop.f32.mrf.mxu0 }
 0x1fa   : > { %v3178_v56 = vadd.f32 %v5498_v22, %v2947_v23  ;;  %v5461_v61 = vpop.f32.mrf.mxu1  ;;  %v2705_v51 = vadd.f32 %v7323_v32, %v2480_v20  ;;  %v2478_v22 = vadd.f32 %v7334_v13, %v7226_v14  ;;  %v2483_v32 = vadd.f32 %v7336_v31, %v7229_v58 }
 0x1fb   : > { %5651 = vtanh.f32 %v3253_v63  ;;  %v3251_v1 = vmul.f32 %v7433_v24, %v3212_v12  ;;  %v3176_v17 = vadd.f32 %v3061_v4, %v2945_v47  ;;  %v2948_v27 = vadd.f32 %v5461_v61, %v2701_v35  ;;  %v5502_v36 = vpop.f32.mrf.mxu0 }
 0x1fc   : > { %v3217_v52 = vadd.f32 %v7426_v30, %v3178_v56  ;;  %v2833_v2 = vpop.f32.mrf.mxu1  ;;  %v2484_v14 = vadd.f32 %v7343_v46, %v7235_v50  ;;  %v2482_v13 = vadd.f32 %v7349_v5, %v7238_v60  ;;  %v2703_v35 = vadd.f32 %v7326_v40, %v2478_v22  ;;  %v8450_v22 = vld [vmem:[#allocation16_spill] sm:$0xff] }
 0x1fd   : > { %5653 = vtanh.f32 %v3251_v1  ;;  %v3215_v57 = vadd.f32 %v7426_v30, %v3176_v17  ;;  %v3179_v28 = vadd.f32 %v5499_v15, %v2948_v27  ;;  %v2946_v26 = vadd.f32 %v2833_v2, %v2699_v45  ;;  %v3077_v38 = vpop.f32.mrf.mxu0 }
 0x1fe   : > { %v3256_v19 = vmul.f32 %v7433_v24, %v3217_v52  ;;  %v5464_v29 = vpop.f32.mrf.mxu1  ;;  %v2487_v58 = vadd.f32 %v7351_v8, %v7241_v44  ;;  %v2488_v50 = vadd.f32 %v7358_v9, %v7247_v59  ;;  %v2709_v63 = vadd.f32 %v7338_v41, %v2484_v14  ;;  %v8447_v52 = vld [vmem:[#allocation5_spill] sm:$0xff] }
 0x1ff   : > { %v3254_v4 = vmul.f32 %v7433_v24, %v3215_v57  ;;  %v3218_v11 = vadd.f32 %v7426_v30, %v3179_v28  ;;  %v3177_v34 = vadd.f32 %v3064_v6, %v2946_v26  ;;  %v2951_v0 = vadd.f32 %v5464_v29, %v2704_v43  ;;  %v5503_v62 = vpop.f32.mrf.mxu0  ;;  %v8446_v43 = vld [vmem:[#allocation11_spill] sm:$0xff]  ;;  %v8448_v28 = vld [vmem:[#allocation10_spill] sm:$0xff] }
 0x200   : > { %5655 = vtanh.f32 %v3256_v19  ;;  %v2846_v3 = vpop.f32.mrf.mxu1  ;;  %v2707_v40 = vadd.f32 %v7341_v39, %v2482_v13  ;;  %v2712_v45 = vadd.f32 %v7347_v55, %v2487_v58  ;;  %v7491_v20 = vadd.f32 %v7353_v33, %v2488_v50  ;;  %v8449_v26 = vld [vmem:[#allocation18_spill] sm:$0xff] }
 0x201   : > { %5657 = vtanh.f32 %v3254_v4  ;;  %v3257_v7 = vmul.f32 %v7433_v24, %v3218_v11  ;;  %v3216_v49 = vadd.f32 %v7426_v30, %v3177_v34  ;;  %v2949_v54 = vadd.f32 %v2846_v3, %v7330_v53  ;;  %v3080_v15 = vpop.f32.mrf.mxu0  ;;  %v8451_v11 = vld [vmem:[#allocation13_spill] sm:$0xff] }
 0x202   : > { %v3182_v31 = vadd.f32 %v5502_v36, %v2951_v0  ;;  %v5465_v60 = vpop.f32.mrf.mxu1  ;;  %v2708_v53 = vadd.f32 %v7332_v42, %v2483_v32  ;;  %v2486_v55 = vadd.f32 %v8447_v52, %v8446_v43  ;;  %v2492_v34 = vadd.f32 %v7373_v21, %v8451_v11  ;;  %v8457_v52 = vld [vmem:[#allocation25_spill] sm:$0xff] }
 0x203   : > { %5659 = vtanh.f32 %v3257_v7  ;;  %v3255_v46 = vmul.f32 %v7433_v24, %v3216_v49  ;;  %v2952_v5 = vadd.f32 %v5465_v60, %v2705_v51  ;;  %v3180_v48 = vadd.f32 %v3077_v38, %v2949_v54  ;;  %v5506_v23 = vpop.f32.mrf.mxu0 }
 0x204   : > { %v5648_v10 = vpop.eup %5647  ;;  %v3221_v44 = vadd.f32 %v7426_v30, %v3182_v31  ;;  %v2849_v8 = vpop.f32.mrf.mxu1  ;;  %v2491_v38 = vadd.f32 %v8449_v26, %v8448_v28  ;;  %v8452_v31 = vld [vmem:[#allocation21_spill] sm:$0xff] }
 0x205   : > { %5661 = vtanh.f32 %v3255_v46  ;;  %v3219_v59 = vadd.f32 %v7426_v30, %v3180_v48  ;;  %v2950_v9 = vadd.f32 %v2849_v8, %v2703_v35  ;;  %v3183_v12 = vadd.f32 %v5503_v62, %v2952_v5  ;;  %v3093_v47 = vpop.f32.mrf.mxu0  ;;  %v8453_v46 = vld [vmem:[#allocation28_spill] sm:$0xff] }
 0x206   : > { %v5650_v6 = vpop.eup %5649  ;;  %v3260_v42 = vmul.f32 %v7433_v24, %v3221_v44  ;;  %v5468_v41 = vpop.f32.mrf.mxu1  ;;  %v3316_v39 = vmul.f32 %v5648_v10, %v7433_v24  ;;  %v2711_v60 = vadd.f32 %v8452_v31, %v2486_v55  ;;  %v7524_v5 = vadd.f32 %v8453_v46, %v2491_v38 }
 0x207   : > { %v3258_v56 = vmul.f32 %v7433_v24, %v3219_v59  ;;  %v3314_v61 = vmul.f32 %v5650_v6, %v7433_v24  ;;  %v3222_v1 = vadd.f32 %v7426_v30, %v3183_v12  ;;  %v2955_v17 = vadd.f32 %v5468_v41, %v2708_v53  ;;  %v5507_v27 = vpop.f32.mrf.mxu0  ;;  %v8455_v12 = vld [vmem:[#allocation15_spill] sm:$0xff] }
 0x208   : > { %v5652_v36 = vpop.eup %5651  ;;  %5663 = vtanh.f32 %v3260_v42  ;;  %v3181_v33 = vadd.f32 %v3080_v15, %v2950_v9  ;;  %v7501_v2 = vadd.f32 %v3316_v39, %v7465_v18  ;;  %v2862_v57 = vpop.f32.mrf.mxu1 }
 0x209   : > { %5665 = vtanh.f32 %v3258_v56  ;;  %v3261_v51 = vmul.f32 %v7433_v24, %v3222_v1  ;;  %v2953_v19 = vadd.f32 %v2862_v57, %v8450_v22  ;;  %v3096_v29 = vpop.f32.mrf.mxu0  ;;  %v3186_v62 = vadd.f32 %v5506_v23, %v2955_v17  ;;  %v8458_v22 = vld [vmem:[#allocation19_spill] sm:$0xff] }
 0x20a   : > { %v5654_v4 = vpop.eup %5653  ;;  %v3220_v0 = vadd.f32 %v7426_v30, %v3181_v33  ;;  %3606 = vrot.lane.b32.xlu0 %v7501_v2, %s5857_s25  ;;  %v5469_v32 = vpop.f32.mrf.mxu1  ;;  %v3317_v14 = vmul.f32 %v5652_v36, %v7433_v24  ;;  %v7514_v13 = vadd.f32 %v3314_v61, %v7465_v18 }
 0x20b   : > { %5667 = vtanh.f32 %v3261_v51  ;;  %v3315_v3 = vmul.f32 %v5654_v4, %v7433_v24  ;;  %v2956_v7 = vadd.f32 %v5469_v32, %v2709_v63  ;;  %v5510_v49 = vpop.f32.mrf.mxu0  ;;  %v3225_v54 = vadd.f32 %v7426_v30, %v3186_v62  ;;  %v8454_v63 = vld [vmem:[#allocation17_spill] sm:$0xff] }
 0x20c   : > { %v3259_v21 = vmul.f32 %v7433_v24, %v3220_v0  ;;  %v3184_v15 = vadd.f32 %v3093_v47, %v2953_v19  ;;  %v7520_v35 = vadd.f32 %v3317_v14, %v7465_v18  ;;  %v2865_v58 = vpop.f32.mrf.mxu1  ;;  %v7527_v44 = vadd.f32 %v8454_v63, %v2492_v34  ;;  %v8459_v19 = vld [vmem:[#allocation6_spill] sm:$0xff]  ;;  %v8462_v63 = vld [vmem:[#allocation24_spill] sm:$0xff] }
 0x20d   : > { %v5656_v50 = vpop.eup %5655  ;;  %v2954_v48 = vadd.f32 %v2865_v58, %v2707_v40  ;;  %v3187_v23 = vadd.f32 %v5507_v27, %v2956_v7  ;;  %v3109_v10 = vpop.f32.mrf.mxu0  ;;  %v3264_v8 = vmul.f32 %v7433_v24, %v3225_v54  ;;  %v8456_v40 = vld [vmem:[#allocation26_spill] sm:$0xff]  ;;  %v7538_v6 = vadd.f32 %v3315_v3, %v7465_v18 }
 0x20e   : > { %v5658_v53 = vpop.eup %5657  ;;  %5669 = vtanh.f32 %v3259_v21  ;;  %v3223_v59 = vadd.f32 %v7426_v30, %v3184_v15  ;;  %3602 = vrot.lane.b32.xlu0 %v7514_v13, %s5857_s25  ;;  %3608 = vrot.lane.b32.xlu1 %v7520_v35, %s5857_s25  ;;  %v5472_v9 = vpop.f32.mrf.mxu1  ;;  %v2490_v47 = vadd.f32 %v8456_v40, %v8455_v12  ;;  %v3320_v17 = vmul.f32 %v5656_v50, %v7433_v24  ;;  %v8460_v0 = vld [vmem:[#allocation22_spill] sm:$0xff] }
 0x20f   : > { %v3226_v42 = vadd.f32 %v7426_v30, %v3187_v23  ;;  %v2959_v41 = vadd.f32 %v5472_v9, %v2712_v45  ;;  %v5511_v39 = vpop.f32.mrf.mxu0  ;;  %5671 = vtanh.f32 %v3264_v8  ;;  %v3185_v1 = vadd.f32 %v3096_v29, %v2954_v48 }
 0x210   : > { %v5660_v56 = vpop.eup %5659  ;;  %v3262_v61 = vmul.f32 %v7433_v24, %v3223_v59  ;;  %v2878_v27 = vpop.f32.mrf.mxu1  ;;  %v3318_v36 = vmul.f32 %v5658_v53, %v7433_v24  ;;  %v7548_v26 = vadd.f32 %v3320_v17, %v7465_v18  ;;  %v2495_v29 = vadd.f32 %v8459_v19, %v8458_v22 }
 0x211   : > { %v3265_v43 = vmul.f32 %v7433_v24, %v3226_v42  ;;  %v2957_v55 = vadd.f32 %v2878_v27, %v8457_v52  ;;  %v3190_v33 = vadd.f32 %v5510_v49, %v2959_v41  ;;  %v3112_v57 = vpop.f32.mrf.mxu0  ;;  %v3224_v45 = vadd.f32 %v7426_v30, %v3185_v1 }
 0x212   : > { %v5662_v28 = vpop.eup %5661  ;;  %5673 = vtanh.f32 %v3262_v61  ;;  %3604 = vrot.lane.b32.xlu1 %v7538_v6, %s5857_s25  ;;  %v5473_v38 = vpop.f32.mrf.mxu1  ;;  %v3321_v51 = vmul.f32 %v5660_v56, %v7433_v24  ;;  %v2715_v62 = vadd.f32 %v8460_v0, %v2490_v47  ;;  %3614 = vrot.lane.b32.xlu0 %v7548_v26, %s5857_s25  ;;  %v7563_v21 = vadd.f32 %v3318_v36, %v7465_v18  ;;  %v8463_v56 = vld [vmem:[#allocation20_spill] sm:$0xff] }
 0x213   : > { %5675 = vtanh.f32 %v3265_v43  ;;  %v3319_v4 = vmul.f32 %v5662_v28, %v7433_v24  ;;  %v3229_v11 = vadd.f32 %v7426_v30, %v3190_v33  ;;  %v5514_v34 = vpop.f32.mrf.mxu0  ;;  %v3263_v32 = vmul.f32 %v7433_v24, %v3224_v45 }
 0x214   : > { %v2960_v14 = vadd.f32 %v5473_v38, %v7491_v20  ;;  %v3188_v3 = vadd.f32 %v3109_v10, %v2957_v55  ;;  %v2881_v7 = vpop.f32.mrf.mxu1  ;;  %v7567_v15 = vadd.f32 %v3321_v51, %v7465_v18  ;;  %v8461_v10 = vld [vmem:[#allocation23_spill] sm:$0xff]  ;;  %v2496_v8 = vadd.f32 %v7388_v25, %v8462_v63  ;;  %v8468_v63 = vld [vmem:[#allocation9_spill] sm:$0xff] }
 0x215   : > { %v5664_v49 = vpop.eup %5663  ;;  %v3268_v54 = vmul.f32 %v7433_v24, %v3229_v11  ;;  %v2958_v58 = vadd.f32 %v2881_v7, %v2711_v60  ;;  %v3125_v50 = vpop.f32.mrf.mxu0  ;;  %5677 = vtanh.f32 %v3263_v32  ;;  %v2720_v53 = vadd.f32 %v8461_v10, %v2495_v29  ;;  %v8464_v55 = vld [vmem:[#allocation7_spill] sm:$0xff] }
 0x216   : > { %v5666_v31 = vpop.eup %5665  ;;  %v3227_v46 = vadd.f32 %v7426_v30, %v3188_v3  ;;  %v3191_v48 = vadd.f32 %v5511_v39, %v2960_v14  ;;  %v5476_v23 = vpop.f32.mrf.mxu1  ;;  %v3324_v20 = vmul.f32 %v5664_v49, %v7433_v24  ;;  %v7575_v59 = vadd.f32 %v3319_v4, %v7465_v18  ;;  %3616 = vrot.lane.b32.xlu1 %v7567_v15, %s5857_s25 }
 0x217   : > { %5679 = vtanh.f32 %v3268_v54  ;;  %v5515_v60 = vpop.f32.mrf.mxu0  ;;  %3610 = vrot.lane.b32.xlu0 %v7563_v21, %s5857_s25  ;;  %v2963_v47 = vadd.f32 %v5476_v23, %v7524_v5  ;;  %v3189_v42 = vadd.f32 %v3112_v57, %v2958_v58  ;;  %v3322_v41 = vmul.f32 %v5666_v31, %v7433_v24  ;;  %v8465_v57 = vld [vmem:[#allocation27_spill] sm:$0xff]  ;;  %v7607_v14 = vpop.permute.xlu0 %3442 }
 0x218   : > { %v5668_v9 = vpop.eup %5667  ;;  %v3266_v12 = vmul.f32 %v7433_v24, %v3227_v46  ;;  %v3230_v40 = vadd.f32 %v7426_v30, %v3191_v48  ;;  %v2894_v25 = vpop.f32.mrf.mxu1  ;;  %v7586_v39 = vadd.f32 %v3324_v20, %v7465_v18  ;;  %v2721_v33 = vadd.f32 %v8464_v55, %v2496_v8  ;;  %v8467_v31 = vld [vmem:[#allocation31_spill] sm:$0xff] }
 0x219   : > { %v2961_v61 = vadd.f32 %v2894_v25, %v8463_v56  ;;  %v3325_v1 = vmul.f32 %v5668_v9, %v7433_v24  ;;  %v3128_v17 = vpop.f32.mrf.mxu0  ;;  %v3228_v36 = vadd.f32 %v7426_v30, %v3189_v42  ;;  %v3194_v43 = vadd.f32 %v5514_v34, %v2963_v47  ;;  %v7632_v56 = vpop.permute.xlu1 %3446 }
 0x21a   : > { %5681 = vtanh.f32 %v3266_v12  ;;  %v3269_v27 = vmul.f32 %v7433_v24, %v3230_v40  ;;  %v5477_v52 = vpop.f32.mrf.mxu1  ;;  %v2494_v28 = vadd.f32 %v7394_v16, %v8465_v57  ;;  %3612 = vrot.lane.b32.xlu1 %v7575_v59, %s5857_s25  ;;  %v7610_v3 = vadd.f32 %v3322_v41, %v7465_v18 }
 0x21b   : > { %v5670_v5 = vpop.eup %5669  ;;  %v2964_v45 = vadd.f32 %v5477_v52, %v7527_v44  ;;  %v3192_v38 = vadd.f32 %v3125_v50, %v2961_v61  ;;  %v5518_v51 = vpop.f32.mrf.mxu0  ;;  %v3267_v22 = vmul.f32 %v7433_v24, %v3228_v36  ;;  %v3233_v29 = vadd.f32 %v7426_v30, %v3194_v43  ;;  %3622 = vrot.lane.b32.xlu0 %v7586_v39, %s5857_s25  ;;  %v8466_v50 = vld [vmem:[#allocation8_spill] sm:$0xff]  ;;  %v8470_v43 = vld [vmem:[#allocation30_spill] sm:$0xff] }
 0x21c   : > { %5683 = vtanh.f32 %v3269_v27  ;;  %v3323_v19 = vmul.f32 %v5670_v5, %v7433_v24  ;;  %v2897_v4 = vpop.f32.mrf.mxu1  ;;  %v5672_v11 = vpop.eup %5671  ;;  %v7605_v34 = vadd.f32 %v3325_v1, %v7465_v18  ;;  %v2499_v46 = vadd.f32 %v8467_v31, %v8466_v50  ;;  %v8473_v50 = vld [vmem:[#allocation35_spill] sm:$0xff] }
 0x21d   : > { %v3231_v16 = vadd.f32 %v7426_v30, %v3192_v38  ;;  %v2962_v44 = vadd.f32 %v2897_v4, %v2715_v62  ;;  %v3195_v0 = vadd.f32 %v5515_v60, %v2964_v45  ;;  %v3141_v32 = vpop.f32.mrf.mxu0  ;;  %5685 = vtanh.f32 %v3267_v22  ;;  %v8471_v45 = vld [vmem:[#allocation12_spill] sm:$0xff]  ;;  %v7641_v22 = vpop.permute.xlu0 %3444 }
 0x21e   : > { %v3272_v7 = vmul.f32 %v7433_v24, %v3233_v29  ;;  %v5480_v49 = vpop.f32.mrf.mxu1  ;;  %v3328_v54 = vmul.f32 %v5672_v11, %v7433_v24  ;;  %3624 = vrot.lane.b32.xlu1 %v7605_v34, %s5857_s25  ;;  %v2719_v8 = vadd.f32 %v8468_v63, %v2494_v28  ;;  %v7622_v60 = vadd.f32 %v3323_v19, %v7465_v18 }
 0x21f   : > { %v5674_v58 = vpop.eup %5673  ;;  %v3270_v48 = vmul.f32 %v7433_v24, %v3231_v16  ;;  %v3234_v62 = vadd.f32 %v7426_v30, %v3195_v0  ;;  %v2967_v23 = vadd.f32 %v5480_v49, %v2720_v53  ;;  %v5519_v20 = vpop.f32.mrf.mxu0  ;;  %3618 = vrot.lane.b32.xlu0 %v7610_v3, %s5857_s25  ;;  %v3193_v9 = vadd.f32 %v3128_v17, %v2962_v44  ;;  %v8469_v53 = vld [vmem:[#allocation29_spill] sm:$0xff] }
 0x220   : > { %v5676_v10 = vpop.eup %5675  ;;  %5687 = vtanh.f32 %v3272_v7  ;;  %v2910_v12 = vpop.f32.mrf.mxu1  ;;  %v3326_v40 = vmul.f32 %v5674_v58, %v7433_v24  ;;  %v7629_v42 = vadd.f32 %v3328_v54, %v7465_v18  ;;  %v2724_v52 = vadd.f32 %v8470_v43, %v2499_v46  ;;  %v8472_v58 = vld [vmem:[#allocation14_spill] sm:$0xff] }
 0x221   : > { %v3273_v47 = vmul.f32 %v7433_v24, %v3234_v62  ;;  %v2965_v25 = vadd.f32 %v2910_v12, %v8469_v53  ;;  %v3144_v41 = vpop.f32.mrf.mxu0  ;;  %5689 = vtanh.f32 %v3270_v48  ;;  %v3232_v61 = vadd.f32 %v7426_v30, %v3193_v9 }
 0x222   : > { %v3198_v1 = vadd.f32 %v5518_v51, %v2967_v23  ;;  %v5481_v27 = vpop.f32.mrf.mxu1  ;;  %v3329_v17 = vmul.f32 %v5676_v10, %v7433_v24  ;;  %v5678_v36 = vpop.eup %5677  ;;  %3620 = vrot.lane.b32.xlu1 %v7622_v60, %s5857_s25  ;;  %v2500_v38 = vadd.f32 %v7405_v37, %v8471_v45  ;;  %v7653_v0 = vadd.f32 %v3326_v40, %v7465_v18  ;;  %v8474_v23 = vld [vmem:[#allocation32_spill] sm:$0xff] }
 0x223   : > { %5691 = vtanh.f32 %v3273_v47  ;;  %v2968_v5 = vadd.f32 %v5481_v27, %v2721_v33  ;;  %v3196_v55 = vadd.f32 %v3141_v32, %v2965_v25  ;;  %v5522_v57 = vpop.f32.mrf.mxu0  ;;  %v3271_v51 = vmul.f32 %v7433_v24, %v3232_v61  ;;  %3630 = vrot.lane.b32.xlu0 %v7629_v42, %s5857_s25  ;;  %v7664_v10 = vpop.permute.xlu1 %3448  ;;  %v8475_v25 = vld [vmem:[#allocation34_spill] sm:$0xff] }
 0x224   : > { %v5680_v28 = vpop.eup %5679  ;;  %v3327_v19 = vmul.f32 %v5678_v36, %v7433_v24  ;;  %v3237_v29 = vadd.f32 %v7426_v30, %v3198_v1  ;;  %v2913_v4 = vpop.f32.mrf.mxu1  ;;  %v7650_v11 = vadd.f32 %v3329_v17, %v7465_v18  ;;  %v2498_v31 = vadd.f32 %v8473_v50, %v8472_v58 }
 0x225   : > { %v3235_v33 = vadd.f32 %v7426_v30, %v3196_v55  ;;  %v2966_v16 = vadd.f32 %v2913_v4, %v2719_v8  ;;  %v3199_v44 = vadd.f32 %v5519_v20, %v2968_v5  ;;  %v3157_v37 = vpop.f32.mrf.mxu0  ;;  %5693 = vtanh.f32 %v3271_v51  ;;  %v7677_v27 = vpop.permute.xlu0 %3450  ;;  %v8476_v5 = vld [vmem:[#allocation33_spill] sm:$0xff] }
 0x226   : > { %v3276_v32 = vmul.f32 %v7433_v24, %v3237_v29  ;;  %v5484_v7 = vpop.f32.mrf.mxu1  ;;  %v3332_v49 = vmul.f32 %v5680_v28, %v7433_v24  ;;  %3632 = vrot.lane.b32.xlu1 %v7650_v11, %s5857_s25  ;;  %v2725_v20 = vadd.f32 %v8474_v23, %v2500_v38  ;;  %v7667_v63 = vadd.f32 %v3327_v19, %v7465_v18 }
 0x227   : > { %v5682_v54 = vpop.eup %5681  ;;  %v3274_v46 = vmul.f32 %v7433_v24, %v3235_v33  ;;  %v3238_v48 = vadd.f32 %v7426_v30, %v3199_v44  ;;  %v2971_v62 = vadd.f32 %v5484_v7, %v2724_v52  ;;  %3626 = vrot.lane.b32.xlu0 %v7653_v0, %s5857_s25  ;;  %v3197_v8 = vadd.f32 %v3144_v41, %v2966_v16  ;;  %v5523_v1 = vpop.f32.mrf.mxu0 }
 0x228   : > { %5695 = vtanh.f32 %v3276_v32  ;;  %v2926_v9 = vpop.f32.mrf.mxu1  ;;  %v3330_v40 = vmul.f32 %v5682_v54, %v7433_v24  ;;  %v7674_v53 = vadd.f32 %v3332_v49, %v7465_v18  ;;  %v2723_v55 = vadd.f32 %v8476_v5, %v2498_v31 }
 0x229   : > { %v5684_v12 = vpop.eup %5683  ;;  %v3277_v47 = vmul.f32 %v7433_v24, %v3238_v48  ;;  %v2969_v61 = vadd.f32 %v2926_v9, %v8475_v25  ;;  %5697 = vtanh.f32 %v3274_v46  ;;  %v3236_v17 = vadd.f32 %v7426_v30, %v3197_v8  ;;  %v3160_v32 = vpop.f32.mrf.mxu0 }
 0x22a   : > { %v3202_v36 = vadd.f32 %v5522_v57, %v2971_v62  ;;  %v5485_v43 = vpop.f32.mrf.mxu1  ;;  %v3333_v41 = vmul.f32 %v5684_v12, %v7433_v24  ;;  %v5686_v52 = vpop.eup %5685  ;;  %3628 = vrot.lane.b32.xlu1 %v7667_v63, %s5857_s25  ;;  %v7696_v7 = vadd.f32 %v3330_v40, %v7465_v18 }
 0x22b   : > { %5699 = vtanh.f32 %v3277_v47  ;;  %v2972_v28 = vadd.f32 %v5485_v43, %v2725_v20  ;;  %v3200_v45 = vadd.f32 %v3157_v37, %v2969_v61  ;;  %v3275_v38 = vmul.f32 %v7433_v24, %v3236_v17  ;;  %3638 = vrot.lane.b32.xlu0 %v7674_v53, %s5857_s25  ;;  %v7693_v37 = vpop.permute.xlu1 %3452  ;;  %v7704_v48 = vpop.permute.xlu0 %3454 }
 0x22c   : > { %v3331_v51 = vmul.f32 %v5686_v52, %v7433_v24  ;;  %v3241_v19 = vadd.f32 %v7426_v30, %v3202_v36  ;;  %v2929_v57 = vpop.f32.mrf.mxu1  ;;  %v7691_v33 = vadd.f32 %v3333_v41, %v7465_v18 }
 0x22d   : > { %v5688_v29 = vpop.eup %5687  ;;  %v3239_v4 = vadd.f32 %v7426_v30, %v3200_v45  ;;  %v2970_v16 = vadd.f32 %v2929_v57, %v2723_v55  ;;  %v3203_v44 = vadd.f32 %v5523_v1, %v2972_v28  ;;  %5701 = vtanh.f32 %v3275_v38 }
 0x22e   : > { %v3280_v49 = vmul.f32 %v7433_v24, %v3241_v19  ;;  %v3336_v54 = vmul.f32 %v5688_v29, %v7433_v24  ;;  %v5690_v58 = vpop.eup %5689  ;;  %3640 = vrot.lane.b32.xlu1 %v7691_v33, %s5857_s25  ;;  %v7712_v20 = vadd.f32 %v3331_v51, %v7465_v18 }
 0x22f   : > { %v3278_v50 = vmul.f32 %v7433_v24, %v3239_v4  ;;  %v3242_v31 = vadd.f32 %v7426_v30, %v3203_v44  ;;  %3634 = vrot.lane.b32.xlu0 %v7696_v7, %s5857_s25  ;;  %v3201_v62 = vadd.f32 %v3160_v32, %v2970_v16  ;;  %v3334_v12 = vmul.f32 %v5690_v58, %v7433_v24  ;;  %v7723_v61 = vpop.permute.xlu1 %3456  ;;  %v7729_v43 = vpop.permute.xlu0 %3458 }
 0x230   : > { %v5692_v46 = vpop.eup %5691  ;;  %5703 = vtanh.f32 %v3280_v49  ;;  %v7709_v23 = vadd.f32 %v3336_v54, %v7465_v18 }
 0x231   : > { %v3281_v8 = vmul.f32 %v7433_v24, %v3242_v31  ;;  %v3337_v9 = vmul.f32 %v5692_v46, %v7433_v24  ;;  %5705 = vtanh.f32 %v3278_v50  ;;  %v3240_v40 = vadd.f32 %v7426_v30, %v3201_v62 }
 0x232   : > { %v5694_v47 = vpop.eup %5693  ;;  %3636 = vrot.lane.b32.xlu1 %v7712_v20, %s5857_s25  ;;  %v7732_v30 = vadd.f32 %v3334_v12, %v7465_v18 }
 0x233   : > { %5707 = vtanh.f32 %v3281_v8  ;;  %v7721_v25 = vadd.f32 %v3337_v9, %v7465_v18  ;;  %v3279_v1 = vmul.f32 %v7433_v24, %v3240_v40  ;;  %3646 = vrot.lane.b32.xlu0 %v7709_v23, %s5857_s25  ;;  %v3335_v36 = vmul.f32 %v5694_v47, %v7433_v24  ;;  %v7746_v38 = vpop.permute.xlu1 %3460  ;;  %v7754_v29 = vpop.permute.xlu0 %3462 }
 0x235   : > { %v5696_v17 = vpop.eup %5695  ;;  %5709 = vtanh.f32 %v3279_v1  ;;  %v7743_v28 = vadd.f32 %v3335_v36, %v7465_v18 }
 0x236   : > { %v3340_v41 = vmul.f32 %v5696_v17, %v7433_v24  ;;  %v5698_v52 = vpop.eup %5697  ;;  %3648 = vrot.lane.b32.xlu1 %v7721_v25, %s5857_s25 }
 0x237   : > { %3642 = vrot.lane.b32.xlu0 %v7732_v30, %s5857_s25  ;;  %v3338_v51 = vmul.f32 %v5698_v52, %v7433_v24  ;;  %v7765_v58 = vpop.permute.xlu1 %3464  ;;  %v7776_v62 = vpop.permute.xlu0 %3466 }
 0x238   : > { %v5700_v5 = vpop.eup %5699  ;;  %v7740_v55 = vadd.f32 %v3340_v41, %v7465_v18 }
 0x239   : > { %v3341_v45 = vmul.f32 %v5700_v5, %v7433_v24  ;;  %v7760_v44 = vadd.f32 %v3338_v51, %v7465_v18 }
 0x23a   : > { %v5702_v19 = vpop.eup %5701  ;;  %3644 = vrot.lane.b32.xlu1 %v7743_v28, %s5857_s25 }
 0x23b   : > { %v7752_v57 = vadd.f32 %v3341_v45, %v7465_v18  ;;  %3654 = vrot.lane.b32.xlu0 %v7740_v55, %s5857_s25  ;;  %v3339_v16 = vmul.f32 %v5702_v19, %v7433_v24  ;;  %v7787_v47 = vpop.permute.xlu1 %3468  ;;  %v7797_v36 = vpop.permute.xlu0 %3470 }
 0x23d   : > { %v5704_v4 = vpop.eup %5703  ;;  %v7773_v31 = vadd.f32 %v3339_v16, %v7465_v18 }
 0x23e   : > { %v3344_v32 = vmul.f32 %v5704_v4, %v7433_v24  ;;  %v5706_v49 = vpop.eup %5705  ;;  %3656 = vrot.lane.b32.xlu1 %v7752_v57, %s5857_s25 }
 0x23f   : > { %3650 = vrot.lane.b32.xlu0 %v7760_v44, %s5857_s25  ;;  %v3342_v8 = vmul.f32 %v5706_v49, %v7433_v24  ;;  %v7805_v41 = vpop.permute.xlu0 %3474 }
 0x240   : > { %v5708_v54 = vpop.eup %5707  ;;  %v7770_v50 = vadd.f32 %v3344_v32, %v7465_v18 }
 0x241   : > { %v3345_v46 = vmul.f32 %v5708_v54, %v7433_v24  ;;  %v7790_v1 = vadd.f32 %v3342_v8, %v7465_v18 }
 0x242   : > { %v5710_v9 = vpop.eup %5709  ;;  %3652 = vrot.lane.b32.xlu1 %v7773_v31, %s5857_s25 }
 0x243   : > { %v7782_v12 = vadd.f32 %v3345_v46, %v7465_v18  ;;  %v3343_v40 = vmul.f32 %v5710_v9, %v7433_v24  ;;  %3662 = vrot.lane.b32.xlu0 %v7770_v50, %s5857_s25  ;;  %v7803_v24 = vpop.permute.xlu1 %3472  ;;  %v7809_v5 = vpop.permute.xlu0 %3478 }
 0x245   : > { %v7793_v17 = vadd.f32 %v3343_v40, %v7465_v18 }
 0x246   : > { %3664 = vrot.lane.b32.xlu1 %v7782_v12, %s5857_s25 }
 0x247   : > { %3658 = vrot.lane.b32.xlu0 %v7790_v1, %s5857_s25  ;;  %v7807_v52 = vpop.permute.xlu1 %3476  ;;  %v7813_v45 = vpop.permute.xlu0 %3482 }
 0x248   : > { %8477 = vst [vmem:[#allocation11_spill] sm:$0xff] %v7813_v45 }
 0x24a   : > { %3660 = vrot.lane.b32.xlu1 %v7793_v17, %s5857_s25 }
 0x24b   : > { %v7811_v18 = vpop.permute.xlu1 %3480  ;;  %v7817_v19 = vpop.permute.xlu0 %3486 }
 0x24f   : > { %v7815_v51 = vpop.permute.xlu1 %3484  ;;  %v7821_v16 = vpop.permute.xlu0 %3490 }
 0x250   : > { %8478 = vst [vmem:[#allocation5_spill] sm:$0xff] %v7815_v51  ;;  %8480 = vst [vmem:[#allocation18_spill] sm:$0xff] %v7821_v16 }
 0x253   : > { %v7819_v4 = vpop.permute.xlu1 %3488  ;;  %v7825_v49 = vpop.permute.xlu0 %3494 }
 0x254   : > { %8479 = vst [vmem:[#allocation10_spill] sm:$0xff] %v7819_v4  ;;  %8482 = vst [vmem:[#allocation13_spill] sm:$0xff] %v7825_v49 }
 0x257   : > { %v7823_v32 = vpop.permute.xlu1 %3492  ;;  %v7829_v46 = vpop.permute.xlu0 %3498 }
 0x258   : > { %8481 = vst [vmem:[#allocation16_spill] sm:$0xff] %v7823_v32  ;;  %8483 = vst [vmem:[#allocation21_spill] sm:$0xff] %v7829_v46 }
 0x25b   : > { %v7827_v54 = vpop.permute.xlu1 %3496  ;;  %v7833_v9 = vpop.permute.xlu0 %3502 }
 0x25c   : > { %8485 = vst [vmem:[#allocation17_spill] sm:$0xff] %v7833_v9 }
 0x25f   : > { %v7831_v8 = vpop.permute.xlu1 %3500 }
 0x260   : > { %8484 = vst [vmem:[#allocation28_spill] sm:$0xff] %v7831_v8 }
 0x263   : > { %v7835_v40 = vpop.permute.xlu1 %3504 }
 0x264   : > { %8486 = vst [vmem:[#allocation15_spill] sm:$0xff] %v7835_v40 }
 0x27c   : > { %v3607_v51 = vpop.permute.xlu0 %3606 }
 0x27d   : > { %v3700_v45 = vmul.f32 %v3607_v51, %v7501_v2 }
 0x27f   : > { %3766 = vrot.lane.b32.xlu0 %v3700_v45, %s5855_s17 }
 0x280   : > { %v3603_v16 = vpop.permute.xlu0 %3602  ;;  %v3609_v4 = vpop.permute.xlu1 %3608 }
 0x281   : > { %v3698_v32 = vmul.f32 %v3603_v16, %v7514_v13  ;;  %v3701_v49 = vmul.f32 %v3609_v4, %v7520_v35 }
 0x283   : > { %3762 = vrot.lane.b32.xlu0 %v3698_v32, %s5855_s17  ;;  %3768 = vrot.lane.b32.xlu1 %v3701_v49, %s5855_s17 }
 0x284   : > { %v3605_v8 = vpop.permute.xlu1 %3604  ;;  %v3615_v9 = vpop.permute.xlu0 %3614 }
 0x285   : > { %v3699_v46 = vmul.f32 %v3605_v8, %v7538_v6  ;;  %v3704_v40 = vmul.f32 %v3615_v9, %v7548_v26 }
 0x287   : > { %3764 = vrot.lane.b32.xlu1 %v3699_v46, %s5855_s17  ;;  %3774 = vrot.lane.b32.xlu0 %v3704_v40, %s5855_s17 }
 0x288   : > { %v3617_v45 = vpop.permute.xlu1 %3616 }
 0x289   : > { %v3611_v51 = vpop.permute.xlu0 %3610  ;;  %v3705_v16 = vmul.f32 %v3617_v45, %v7567_v15 }
 0x28a   : > { %v3702_v4 = vmul.f32 %v3611_v51, %v7563_v21 }
 0x28b   : > { %3776 = vrot.lane.b32.xlu1 %v3705_v16, %s5855_s17 }
 0x28c   : > { %3770 = vrot.lane.b32.xlu0 %v3702_v4, %s5855_s17  ;;  %v3613_v32 = vpop.permute.xlu1 %3612 }
 0x28d   : > { %v3703_v49 = vmul.f32 %v3613_v32, %v7575_v59  ;;  %v3623_v8 = vpop.permute.xlu0 %3622 }
 0x28e   : > { %v3708_v9 = vmul.f32 %v3623_v8, %v7586_v39 }
 0x28f   : > { %3772 = vrot.lane.b32.xlu1 %v3703_v49, %s5855_s17 }
 0x290   : > { %3782 = vrot.lane.b32.xlu0 %v3708_v9, %s5855_s17  ;;  %v3625_v46 = vpop.permute.xlu1 %3624 }
 0x291   : > { %v3619_v40 = vpop.permute.xlu0 %3618  ;;  %v3709_v45 = vmul.f32 %v3625_v46, %v7605_v34 }
 0x292   : > { %v3706_v51 = vmul.f32 %v3619_v40, %v7610_v3 }
 0x293   : > { %3784 = vrot.lane.b32.xlu1 %v3709_v45, %s5855_s17 }
 0x294   : > { %3778 = vrot.lane.b32.xlu0 %v3706_v51, %s5855_s17  ;;  %v3621_v16 = vpop.permute.xlu1 %3620 }
 0x295   : > { %v3707_v4 = vmul.f32 %v3621_v16, %v7622_v60  ;;  %v3631_v32 = vpop.permute.xlu0 %3630 }
 0x296   : > { %v3712_v8 = vmul.f32 %v3631_v32, %v7629_v42 }
 0x297   : > { %3780 = vrot.lane.b32.xlu1 %v3707_v4, %s5855_s17 }
 0x298   : > { %3790 = vrot.lane.b32.xlu0 %v3712_v8, %s5855_s17  ;;  %v3633_v49 = vpop.permute.xlu1 %3632 }
 0x299   : > { %v3627_v9 = vpop.permute.xlu0 %3626  ;;  %v3713_v46 = vmul.f32 %v3633_v49, %v7650_v11 }
 0x29a   : > { %v3710_v40 = vmul.f32 %v3627_v9, %v7653_v0 }
 0x29b   : > { %3792 = vrot.lane.b32.xlu1 %v3713_v46, %s5855_s17 }
 0x29c   : > { %3786 = vrot.lane.b32.xlu0 %v3710_v40, %s5855_s17  ;;  %v3629_v45 = vpop.permute.xlu1 %3628 }
 0x29d   : > { %v3639_v51 = vpop.permute.xlu0 %3638  ;;  %v3711_v16 = vmul.f32 %v3629_v45, %v7667_v63 }
 0x29e   : > { %v3716_v32 = vmul.f32 %v3639_v51, %v7674_v53 }
 0x29f   : > { %3788 = vrot.lane.b32.xlu1 %v3711_v16, %s5855_s17 }
 0x2a0   : > { %3798 = vrot.lane.b32.xlu0 %v3716_v32, %s5855_s17  ;;  %v3641_v4 = vpop.permute.xlu1 %3640 }
 0x2a1   : > { %v3635_v8 = vpop.permute.xlu0 %3634  ;;  %v3717_v49 = vmul.f32 %v3641_v4, %v7691_v33 }
 0x2a2   : > { %v3714_v9 = vmul.f32 %v3635_v8, %v7696_v7 }
 0x2a3   : > { %3800 = vrot.lane.b32.xlu1 %v3717_v49, %s5855_s17 }
 0x2a4   : > { %3794 = vrot.lane.b32.xlu0 %v3714_v9, %s5855_s17  ;;  %v3637_v46 = vpop.permute.xlu1 %3636 }
 0x2a5   : > { %v3647_v40 = vpop.permute.xlu0 %3646  ;;  %v3715_v45 = vmul.f32 %v3637_v46, %v7712_v20 }
 0x2a6   : > { %v3720_v51 = vmul.f32 %v3647_v40, %v7709_v23 }
 0x2a7   : > { %3796 = vrot.lane.b32.xlu1 %v3715_v45, %s5855_s17 }
 0x2a8   : > { %3806 = vrot.lane.b32.xlu0 %v3720_v51, %s5855_s17  ;;  %v3649_v16 = vpop.permute.xlu1 %3648 }
 0x2a9   : > { %v3643_v32 = vpop.permute.xlu0 %3642  ;;  %v3721_v4 = vmul.f32 %v3649_v16, %v7721_v25 }
 0x2aa   : > { %v3718_v8 = vmul.f32 %v3643_v32, %v7732_v30 }
 0x2ab   : > { %3808 = vrot.lane.b32.xlu1 %v3721_v4, %s5855_s17 }
 0x2ac   : > { %3802 = vrot.lane.b32.xlu0 %v3718_v8, %s5855_s17  ;;  %v3645_v49 = vpop.permute.xlu1 %3644 }
 0x2ad   : > { %v3655_v9 = vpop.permute.xlu0 %3654  ;;  %v3719_v46 = vmul.f32 %v3645_v49, %v7743_v28 }
 0x2ae   : > { %v3724_v40 = vmul.f32 %v3655_v9, %v7740_v55 }
 0x2af   : > { %3804 = vrot.lane.b32.xlu1 %v3719_v46, %s5855_s17 }
 0x2b0   : > { %3814 = vrot.lane.b32.xlu0 %v3724_v40, %s5855_s17  ;;  %v3657_v45 = vpop.permute.xlu1 %3656 }
 0x2b1   : > { %v3651_v51 = vpop.permute.xlu0 %3650  ;;  %v3725_v16 = vmul.f32 %v3657_v45, %v7752_v57 }
 0x2b2   : > { %v3722_v32 = vmul.f32 %v3651_v51, %v7760_v44 }
 0x2b3   : > { %3816 = vrot.lane.b32.xlu1 %v3725_v16, %s5855_s17 }
 0x2b4   : > { %3810 = vrot.lane.b32.xlu0 %v3722_v32, %s5855_s17  ;;  %v3653_v4 = vpop.permute.xlu1 %3652 }
 0x2b5   : > { %v3663_v8 = vpop.permute.xlu0 %3662  ;;  %v3723_v49 = vmul.f32 %v3653_v4, %v7773_v31  ;;  %v3540_v4 = vmul.f32 %v7632_v56, %v7501_v2 }
 0x2b6   : > { %v3728_v9 = vmul.f32 %v3663_v8, %v7770_v50 }
 0x2b7   : > { %3812 = vrot.lane.b32.xlu1 %v3723_v49, %s5855_s17 }
 0x2b8   : > { %3822 = vrot.lane.b32.xlu0 %v3728_v9, %s5855_s17  ;;  %v3665_v46 = vpop.permute.xlu1 %3664  ;;  %v3538_v9 = vmul.f32 %v7607_v14, %v7514_v13  ;;  %v3544_v14 = vmul.f32 %v7704_v48, %v7548_v26 }
 0x2b9   : > { %v3659_v40 = vpop.permute.xlu0 %3658  ;;  %v3729_v45 = vmul.f32 %v3665_v46, %v7782_v12  ;;  %v3541_v46 = vmul.f32 %v7664_v10, %v7520_v35 }
 0x2ba   : > { %v3726_v51 = vmul.f32 %v3659_v40, %v7790_v1 }
 0x2bb   : > { %3824 = vrot.lane.b32.xlu1 %v3729_v45, %s5855_s17 }
 0x2bc   : > { %3818 = vrot.lane.b32.xlu0 %v3726_v51, %s5855_s17  ;;  %v3661_v16 = vpop.permute.xlu1 %3660 }
 0x2bd   : > { %v3727_v32 = vmul.f32 %v3661_v16, %v7793_v17 }
 0x2bf   : > { %3820 = vrot.lane.b32.xlu1 %v3727_v32, %s5855_s17  ;;  %v3539_v32 = vmul.f32 %v7641_v22, %v7538_v6  ;;  %v3542_v22 = vmul.f32 %v7677_v27, %v7563_v21 }
 0x2f1   : > { %v3767_v8 = vpop.permute.xlu0 %3766 }
 0x2f2   : > { %v3860_v49 = vadd.f32 %v3767_v8, %v3540_v4 }
 0x2f4   : > { %4118 = vrot.lane.b32.xlu0 %v3860_v49, %s5858_s27  ;;  %5711 = vtanh.f32 %v3860_v49 }
 0x2f5   : > { %v3763_v40 = vpop.permute.xlu0 %3762  ;;  %v3769_v45 = vpop.permute.xlu1 %3768 }
 0x2f6   : > { %v3858_v51 = vadd.f32 %v3763_v40, %v3538_v9  ;;  %v3861_v16 = vadd.f32 %v3769_v45, %v3541_v46  ;;  %v3545_v9 = vmul.f32 %v7723_v61, %v7567_v15  ;;  %v3543_v45 = vmul.f32 %v7693_v37, %v7575_v59 }
 0x2f7   : > { %v3548_v37 = vmul.f32 %v7754_v29, %v7586_v39 }
 0x2f8   : > { %4114 = vrot.lane.b32.xlu0 %v3858_v51, %s5858_s27  ;;  %4120 = vrot.lane.b32.xlu1 %v3861_v16, %s5858_s27  ;;  %5713 = vtanh.f32 %v3861_v16 }
 0x2f9   : > { %v3765_v56 = vpop.permute.xlu1 %3764  ;;  %v3775_v4 = vpop.permute.xlu0 %3774  ;;  %5715 = vtanh.f32 %v3858_v51 }
 0x2fa   : > { %v3859_v10 = vadd.f32 %v3765_v56, %v3539_v32  ;;  %v3864_v8 = vadd.f32 %v3775_v4, %v3544_v14 }
 0x2fc   : > { %4116 = vrot.lane.b32.xlu1 %v3859_v10, %s5858_s27  ;;  %4126 = vrot.lane.b32.xlu0 %v3864_v8, %s5858_s27  ;;  %5717 = vtanh.f32 %v3859_v10 }
 0x2fd   : > { %v3777_v49 = vpop.permute.xlu1 %3776  ;;  %5719 = vtanh.f32 %v3864_v8  ;;  %v3546_v8 = vmul.f32 %v7729_v43, %v7610_v3 }
 0x2fe   : > { %v3771_v46 = vpop.permute.xlu0 %3770  ;;  %v3865_v40 = vadd.f32 %v3777_v49, %v3545_v9  ;;  %v3549_v9 = vmul.f32 %v7765_v58, %v7605_v34 }
 0x2ff   : > { %v3862_v48 = vadd.f32 %v3771_v46, %v3542_v22 }
 0x300   : > { %4128 = vrot.lane.b32.xlu1 %v3865_v40, %s5858_s27  ;;  %5721 = vtanh.f32 %v3865_v40  ;;  %v3547_v40 = vmul.f32 %v7746_v38, %v7622_v60 }
 0x301   : > { %4122 = vrot.lane.b32.xlu0 %v3862_v48, %s5858_s27  ;;  %v3773_v51 = vpop.permute.xlu1 %3772  ;;  %v5712_v61 = vpop.eup %5711  ;;  %5723 = vtanh.f32 %v3862_v48 }
 0x302   : > { %v3863_v16 = vadd.f32 %v3773_v51, %v3543_v45  ;;  %v3783_v27 = vpop.permute.xlu0 %3782 }
 0x303   : > { %v3868_v4 = vadd.f32 %v3783_v27, %v3548_v37  ;;  %v3550_v37 = vmul.f32 %v7776_v62, %v7653_v0 }
 0x304   : > { %4124 = vrot.lane.b32.xlu1 %v3863_v16, %s5858_s27  ;;  %5725 = vtanh.f32 %v3863_v16  ;;  %v3552_v16 = vmul.f32 %v7797_v36, %v7629_v42 }
 0x305   : > { %3958 = vrot.lane.b32.xlu0 %v5712_v61, %s5857_s25  ;;  %v5714_v32 = vpop.eup %5713  ;;  %v3785_v14 = vpop.permute.xlu1 %3784  ;;  %5727 = vtanh.f32 %v3868_v4 }
 0x306   : > { %v5716_v56 = vpop.eup %5715  ;;  %v3779_v22 = vpop.permute.xlu0 %3778  ;;  %v3869_v29 = vadd.f32 %v3785_v14, %v3549_v9 }
 0x307   : > { %v3866_v49 = vadd.f32 %v3779_v22, %v3546_v8 }
 0x308   : > { %3960 = vrot.lane.b32.xlu1 %v5714_v32, %s5857_s25  ;;  %5729 = vtanh.f32 %v3869_v29  ;;  %v3553_v32 = vmul.f32 %v7803_v24, %v7650_v11 }
 0x309   : > { %3954 = vrot.lane.b32.xlu0 %v5716_v56, %s5857_s25  ;;  %v5718_v10 = vpop.eup %5717  ;;  %v3781_v46 = vpop.permute.xlu1 %3780  ;;  %5731 = vtanh.f32 %v3866_v49 }
 0x30a   : > { %v3867_v58 = vadd.f32 %v3781_v46, %v3547_v40  ;;  %v5720_v48 = vpop.eup %5719  ;;  %v3791_v43 = vpop.permute.xlu0 %3790  ;;  %v3557_v40 = vmul.f32 %v7811_v18, %v7691_v33 }
 0x30b   : > { %v3872_v27 = vadd.f32 %v3791_v43, %v3552_v16 }
 0x30c   : > { %3956 = vrot.lane.b32.xlu1 %v5718_v10, %s5857_s25  ;;  %5733 = vtanh.f32 %v3867_v58 }
 0x30d   : > { %4134 = vrot.lane.b32.xlu0 %v3868_v4, %s5858_s27  ;;  %v5722_v45 = vpop.eup %5721  ;;  %v3793_v38 = vpop.permute.xlu1 %3792  ;;  %v3551_v4 = vmul.f32 %v7787_v47, %v7667_v63  ;;  %5735 = vtanh.f32 %v3872_v27 }
 0x30e   : > { %v5724_v51 = vpop.eup %5723  ;;  %v3787_v56 = vpop.permute.xlu0 %3786  ;;  %v3873_v36 = vadd.f32 %v3793_v38, %v3553_v32 }
 0x30f   : > { %v3870_v14 = vadd.f32 %v3787_v56, %v3550_v37  ;;  %v8487_v37 = vld [vmem:[#allocation10_spill] sm:$0xff] }
 0x310   : > { %4136 = vrot.lane.b32.xlu1 %v3869_v29, %s5858_s27  ;;  %v3556_v29 = vmul.f32 %v7809_v5, %v7674_v53  ;;  %5737 = vtanh.f32 %v3873_v36 }
 0x311   : > { %4130 = vrot.lane.b32.xlu0 %v3866_v49, %s5858_s27  ;;  %v5726_v61 = vpop.eup %5725  ;;  %v3789_v10 = vpop.permute.xlu1 %3788  ;;  %5739 = vtanh.f32 %v3870_v14 }
 0x312   : > { %v3871_v24 = vadd.f32 %v3789_v10, %v3551_v4  ;;  %v5728_v9 = vpop.eup %5727  ;;  %v3799_v62 = vpop.permute.xlu0 %3798  ;;  %v8488_v10 = vld [vmem:[#allocation11_spill] sm:$0xff] }
 0x313   : > { %v3876_v46 = vadd.f32 %v3799_v62, %v3556_v29  ;;  %v3558_v4 = vmul.f32 %v8488_v10, %v7732_v30  ;;  %v8489_v62 = vld [vmem:[#allocation5_spill] sm:$0xff] }
 0x314   : > { %4132 = vrot.lane.b32.xlu1 %v3867_v58, %s5858_s27  ;;  %5741 = vtanh.f32 %v3871_v24 }
 0x315   : > { %3966 = vrot.lane.b32.xlu0 %v5720_v48, %s5857_s25  ;;  %v5730_v22 = vpop.eup %5729  ;;  %v3801_v47 = vpop.permute.xlu1 %3800  ;;  %v3554_v48 = vmul.f32 %v7805_v41, %v7696_v7  ;;  %5743 = vtanh.f32 %v3876_v46 }
 0x316   : > { %v5732_v8 = vpop.eup %5731  ;;  %v3795_v58 = vpop.permute.xlu0 %3794  ;;  %v3877_v5 = vadd.f32 %v3801_v47, %v3557_v40  ;;  %v8490_v40 = vld [vmem:[#allocation13_spill] sm:$0xff] }
 0x317   : > { %v3874_v43 = vadd.f32 %v3795_v58, %v3554_v48  ;;  %v3564_v58 = vmul.f32 %v8490_v40, %v7740_v55  ;;  %v8496_v40 = vld [vmem:[#allocation28_spill] sm:$0xff] }
 0x318   : > { %3968 = vrot.lane.b32.xlu1 %v5722_v45, %s5857_s25  ;;  %5745 = vtanh.f32 %v3877_v5 }
 0x319   : > { %3962 = vrot.lane.b32.xlu0 %v5724_v51, %s5857_s25  ;;  %v5734_v49 = vpop.eup %5733  ;;  %v3797_v45 = vpop.permute.xlu1 %3796  ;;  %v3555_v51 = vmul.f32 %v7807_v52, %v7712_v20  ;;  %5747 = vtanh.f32 %v3874_v43 }
 0x31a   : > { %v5736_v16 = vpop.eup %5735  ;;  %v3807_v41 = vpop.permute.xlu0 %3806 }
 0x31b   : > { %v3875_v18 = vadd.f32 %v3797_v45, %v3555_v51  ;;  %v3565_v45 = vmul.f32 %v7827_v54, %v7752_v57 }
 0x31c   : > { %3964 = vrot.lane.b32.xlu1 %v5726_v61, %s5857_s25 }
 0x31d   : > { %4142 = vrot.lane.b32.xlu0 %v3872_v27, %s5858_s27  ;;  %v5738_v38 = vpop.eup %5737  ;;  %v3560_v27 = vmul.f32 %v7817_v19, %v7709_v23  ;;  %v3809_v52 = vpop.permute.xlu1 %3808  ;;  %5749 = vtanh.f32 %v3875_v18 }
 0x31e   : > { %v5740_v61 = vpop.eup %5739 }
 0x31f   : > { %v3880_v56 = vadd.f32 %v3807_v41, %v3560_v27  ;;  %v8492_v27 = vld [vmem:[#allocation16_spill] sm:$0xff] }
 0x320   : > { %4144 = vrot.lane.b32.xlu1 %v3873_v36, %s5858_s27  ;;  %v3561_v36 = vmul.f32 %v8487_v37, %v7721_v25 }
 0x321   : > { %4138 = vrot.lane.b32.xlu0 %v3870_v14, %s5858_s27  ;;  %v5742_v32 = vpop.eup %5741  ;;  %v3803_v14 = vpop.permute.xlu0 %3802  ;;  %5751 = vtanh.f32 %v3880_v56 }
 0x322   : > { %v3881_v19 = vadd.f32 %v3809_v52, %v3561_v36  ;;  %v5744_v29 = vpop.eup %5743  ;;  %v3563_v52 = vmul.f32 %v8492_v27, %v7773_v31 }
 0x324   : > { %4140 = vrot.lane.b32.xlu1 %v3871_v24, %s5858_s27  ;;  %v3878_v24 = vadd.f32 %v3803_v14, %v3558_v4  ;;  %5753 = vtanh.f32 %v3881_v19  ;;  %v8493_v14 = vld [vmem:[#allocation17_spill] sm:$0xff] }
 0x325   : > { %3974 = vrot.lane.b32.xlu0 %v5728_v9, %s5857_s25  ;;  %v3805_v9 = vpop.permute.xlu1 %3804  ;;  %v3815_v47 = vpop.permute.xlu0 %3814  ;;  %v3568_v10 = vmul.f32 %v8493_v14, %v7770_v50 }
 0x326   : > { %5755 = vtanh.f32 %v3878_v24 }
 0x328   : > { %3976 = vrot.lane.b32.xlu1 %v5730_v22, %s5857_s25  ;;  %v3559_v22 = vmul.f32 %v8489_v62, %v7743_v28 }
 0x329   : > { %3970 = vrot.lane.b32.xlu0 %v5732_v8, %s5857_s25  ;;  %v3817_v48 = vpop.permute.xlu1 %3816  ;;  %v3811_v51 = vpop.permute.xlu0 %3810 }
 0x32a   : > { %v3879_v8 = vadd.f32 %v3805_v9, %v3559_v22  ;;  %v3885_v41 = vadd.f32 %v3817_v48, %v3565_v45  ;;  %v8494_v9 = vld [vmem:[#allocation15_spill] sm:$0xff] }
 0x32b   : > { %v3569_v62 = vmul.f32 %v8494_v9, %v7782_v12 }
 0x32c   : > { %3972 = vrot.lane.b32.xlu1 %v5734_v49, %s5857_s25  ;;  %v5746_v49 = vpop.eup %5745  ;;  %5757 = vtanh.f32 %v3879_v8 }
 0x32d   : > { %4150 = vrot.lane.b32.xlu0 %v3876_v46, %s5858_s27  ;;  %v5748_v46 = vpop.eup %5747 }
 0x330   : > { %4152 = vrot.lane.b32.xlu1 %v3877_v5, %s5858_s27  ;;  %v5750_v5 = vpop.eup %5749 }
 0x331   : > { %4146 = vrot.lane.b32.xlu0 %v3874_v43, %s5858_s27  ;;  %v3884_v43 = vadd.f32 %v3815_v47, %v3564_v58  ;;  %v3567_v58 = vmul.f32 %v8496_v40, %v7793_v17 }
 0x333   : > { %5759 = vtanh.f32 %v3884_v43 }
 0x334   : > { %4148 = vrot.lane.b32.xlu1 %v3875_v18, %s5858_s27  ;;  %v8491_v18 = vld [vmem:[#allocation18_spill] sm:$0xff]  ;;  %5761 = vtanh.f32 %v3885_v41 }
 0x335   : > { %3982 = vrot.lane.b32.xlu0 %v5736_v16, %s5857_s25  ;;  %v3562_v16 = vmul.f32 %v8491_v18, %v7760_v44 }
 0x338   : > { %3984 = vrot.lane.b32.xlu1 %v5738_v38, %s5857_s25  ;;  %v3882_v38 = vadd.f32 %v3811_v51, %v3562_v16 }
 0x339   : > { %3978 = vrot.lane.b32.xlu0 %v5740_v61, %s5857_s25  ;;  %v3813_v61 = vpop.permute.xlu1 %3812 }
 0x33a   : > { %v3883_v54 = vadd.f32 %v3813_v61, %v3563_v52  ;;  %5763 = vtanh.f32 %v3882_v38 }
 0x33c   : > { %3980 = vrot.lane.b32.xlu1 %v5742_v32, %s5857_s25  ;;  %v5752_v32 = vpop.eup %5751  ;;  %5765 = vtanh.f32 %v3883_v54 }
 0x33d   : > { %4158 = vrot.lane.b32.xlu0 %v3880_v56, %s5858_s27  ;;  %v3823_v56 = vpop.permute.xlu0 %3822  ;;  %v5754_v37 = vpop.eup %5753 }
 0x33e   : > { %v5756_v36 = vpop.eup %5755  ;;  %v3825_v4 = vpop.permute.xlu1 %3824 }
 0x33f   : > { %v3889_v47 = vadd.f32 %v3825_v4, %v3569_v62 }
 0x340   : > { %4160 = vrot.lane.b32.xlu1 %v3881_v19, %s5858_s27  ;;  %v5758_v19 = vpop.eup %5757 }
 0x341   : > { %4154 = vrot.lane.b32.xlu0 %v3878_v24, %s5858_s27  ;;  %v3888_v24 = vadd.f32 %v3823_v56, %v3568_v10  ;;  %v3819_v22 = vpop.permute.xlu0 %3818 }
 0x343   : > { %5767 = vtanh.f32 %v3888_v24 }
 0x344   : > { %4156 = vrot.lane.b32.xlu1 %v3879_v8, %s5858_s27  ;;  %v8495_v8 = vld [vmem:[#allocation21_spill] sm:$0xff]  ;;  %5769 = vtanh.f32 %v3889_v47 }
 0x345   : > { %3990 = vrot.lane.b32.xlu0 %v5744_v29, %s5857_s25  ;;  %v3566_v29 = vmul.f32 %v8495_v8, %v7790_v1 }
 0x348   : > { %3992 = vrot.lane.b32.xlu1 %v5746_v49, %s5857_s25  ;;  %v3886_v49 = vadd.f32 %v3819_v22, %v3566_v29 }
 0x349   : > { %3986 = vrot.lane.b32.xlu0 %v5748_v46, %s5857_s25  ;;  %v3821_v46 = vpop.permute.xlu1 %3820 }
 0x34a   : > { %v3887_v48 = vadd.f32 %v3821_v46, %v3567_v58  ;;  %5771 = vtanh.f32 %v3886_v49 }
 0x34c   : > { %3988 = vrot.lane.b32.xlu1 %v5750_v5, %s5857_s25  ;;  %v5760_v5 = vpop.eup %5759  ;;  %5773 = vtanh.f32 %v3887_v48 }
 0x34d   : > { %4166 = vrot.lane.b32.xlu0 %v3884_v43, %s5858_s27  ;;  %v5762_v45 = vpop.eup %5761 }
 0x34e   : > { %v5764_v51 = vpop.eup %5763 }
 0x350   : > { %4168 = vrot.lane.b32.xlu1 %v3885_v41, %s5858_s27  ;;  %v5766_v41 = vpop.eup %5765 }
 0x351   : > { %4162 = vrot.lane.b32.xlu0 %v3882_v38, %s5858_s27  ;;  %v5768_v38 = vpop.eup %5767 }
 0x352   : > { %v5770_v27 = vpop.eup %5769 }
 0x354   : > { %4164 = vrot.lane.b32.xlu1 %v3883_v54, %s5858_s27 }
 0x355   : > { %3998 = vrot.lane.b32.xlu0 %v5752_v32, %s5857_s25 }
 0x357   : > { %v5772_v54 = vpop.eup %5771 }
 0x358   : > { %4000 = vrot.lane.b32.xlu1 %v5754_v37, %s5857_s25 }
 0x359   : > { %3994 = vrot.lane.b32.xlu0 %v5756_v36, %s5857_s25  ;;  %v5774_v56 = vpop.eup %5773 }
 0x35c   : > { %3996 = vrot.lane.b32.xlu1 %v5758_v19, %s5857_s25 }
 0x35d   : > { %4174 = vrot.lane.b32.xlu0 %v3888_v24, %s5858_s27 }
 0x360   : > { %4176 = vrot.lane.b32.xlu1 %v3889_v47, %s5858_s27 }
 0x361   : > { %4170 = vrot.lane.b32.xlu0 %v3886_v49, %s5858_s27 }
 0x364   : > { %4172 = vrot.lane.b32.xlu1 %v3887_v48, %s5858_s27 }
 0x365   : > { %4006 = vrot.lane.b32.xlu0 %v5760_v5, %s5857_s25 }
 0x366   : > { %v4119_v43 = vpop.permute.xlu0 %4118 }
 0x367   : > { %4213 = vst.msk [vmem:[%s8025_s9 + $0x10] sm:$0xff] %vm4210_vm11, %v4119_v43 }
 0x368   : > { %4008 = vrot.lane.b32.xlu1 %v5762_v45, %s5857_s25 }
 0x369   : > { %4002 = vrot.lane.b32.xlu0 %v5764_v51, %s5857_s25 }
 0x36a   : > { %v4115_v18 = vpop.permute.xlu0 %4114  ;;  %v4121_v16 = vpop.permute.xlu1 %4120 }
 0x36b   : > { %4211 = vst.msk [vmem:[%s8025_s9] sm:$0xff] %vm4210_vm11, %v4115_v18  ;;  %4214 = vst.msk [vmem:[%s8025_s9 + $0x18] sm:$0xff] %vm4210_vm11, %v4121_v16 }
 0x36c   : > { %4004 = vrot.lane.b32.xlu1 %v5766_v41, %s5857_s25 }
 0x36d   : > { %4014 = vrot.lane.b32.xlu0 %v5768_v38, %s5857_s25 }
 0x36e   : > { %v4117_v61 = vpop.permute.xlu1 %4116  ;;  %v4127_v52 = vpop.permute.xlu0 %4126 }
 0x36f   : > { %4212 = vst.msk [vmem:[%s8025_s9 + $0x8] sm:$0xff] %vm4210_vm11, %v4117_v61  ;;  %4217 = vst.msk [vmem:[%s8025_s9 + $0x30] sm:$0xff] %vm4210_vm11, %v4127_v52 }
 0x370   : > { %4016 = vrot.lane.b32.xlu1 %v5770_v27, %s5857_s25 }
 0x371   : > { %4010 = vrot.lane.b32.xlu0 %v5772_v54, %s5857_s25 }
 0x372   : > { %v4129_v32 = vpop.permute.xlu1 %4128 }
 0x373   : > { %v4123_v37 = vpop.permute.xlu0 %4122  ;;  %4218 = vst.msk [vmem:[%s8025_s9 + $0x38] sm:$0xff] %vm4210_vm11, %v4129_v32 }
 0x374   : > { %4215 = vst.msk [vmem:[%s8025_s9 + $0x20] sm:$0xff] %vm4210_vm11, %v4123_v37  ;;  %4012 = vrot.lane.b32.xlu1 %v5774_v56, %s5857_s25  ;;  %s5783_s25 = scalar_lea.vmem %s5782_s24, 8192 }
 0x375   : > { %p5785_p2 = scmp.lt.s32.totalorder %s5783_s25, %s5777_s21 }
 0x376   : > { %v4125_v36 = vpop.permute.xlu1 %4124 }
 0x377   : > { %v3959_v14 = vpop.permute.xlu0 %3958  ;;  %4216 = vst.msk [vmem:[%s8025_s9 + $0x28] sm:$0xff] %vm4210_vm11, %v4125_v36  ;;  %p5786_p3 = por %p5785_p2, %p5784_p1 }
 0x378   : > { %v4052_v10 = vmul.f32 %v3959_v14, %v7501_v2 }
 0x379   : > { %p5787_p5 = pnand %p5786_p3, %p5780_p0 }
 0x37a   : > { %v4980_v4 = vpack.c.bf16 %v4052_v10, %v4052_v10  ;;  %v3961_v19 = vpop.permute.xlu1 %3960 }
 0x37b   : > { %v3955_v24 = vpop.permute.xlu0 %3954  ;;  %v4053_v9 = vmul.f32 %v3961_v19, %v7520_v35 }
 0x37c   : > { %v4050_v62 = vmul.f32 %v3955_v24, %v7514_v13  ;;  %4343 = vrot.lane.b32.xlu0 %v4980_v4, %s5855_s17 }
 0x37d   : > { %v4981_v22 = vpack.c.bf16 %v4053_v9, %v4053_v9 }
 0x37e   : > { %v4978_v8 = vpack.c.bf16 %v4050_v62, %v4050_v62  ;;  %v3957_v29 = vpop.permute.xlu1 %3956 }
 0x37f   : > { %v4135_v47 = vpop.permute.xlu0 %4134  ;;  %v4051_v49 = vmul.f32 %v3957_v29, %v7538_v6  ;;  %4345 = vrot.lane.b32.xlu1 %v4981_v22, %s5855_s17 }
 0x380   : > { %4221 = vst.msk [vmem:[%s8025_s9 + $0x50] sm:$0xff] %vm4210_vm11, %v4135_v47  ;;  %4339 = vrot.lane.b32.xlu0 %v4978_v8, %s5855_s17 }
 0x381   : > { %v4979_v2 = vpack.c.bf16 %v4051_v49, %v4051_v49 }
 0x382   : > { %v4137_v35 = vpop.permute.xlu1 %4136 }
 0x383   : > { %v4131_v46 = vpop.permute.xlu0 %4130  ;;  %4222 = vst.msk [vmem:[%s8025_s9 + $0x58] sm:$0xff] %vm4210_vm11, %v4137_v35  ;;  %4341 = vrot.lane.b32.xlu1 %v4979_v2, %s5855_s17 }
 0x384   : > { %4219 = vst.msk [vmem:[%s8025_s9 + $0x40] sm:$0xff] %vm4210_vm11, %v4131_v46 }
 0x386   : > { %v4133_v13 = vpop.permute.xlu1 %4132 }
 0x387   : > { %v3967_v40 = vpop.permute.xlu0 %3966  ;;  %4220 = vst.msk [vmem:[%s8025_s9 + $0x48] sm:$0xff] %vm4210_vm11, %v4133_v13 }
 0x388   : > { %v4056_v6 = vmul.f32 %v3967_v40, %v7548_v26 }
 0x38a   : > { %v4984_v58 = vpack.c.bf16 %v4056_v6, %v4056_v6  ;;  %v3969_v48 = vpop.permute.xlu1 %3968 }
 0x38b   : > { %v3963_v5 = vpop.permute.xlu0 %3962  ;;  %v4057_v43 = vmul.f32 %v3969_v48, %v7567_v15 }
 0x38c   : > { %v4054_v45 = vmul.f32 %v3963_v5, %v7563_v21  ;;  %4351 = vrot.lane.b32.xlu0 %v4984_v58, %s5855_s17 }
 0x38d   : > { %v4985_v51 = vpack.c.bf16 %v4057_v43, %v4057_v43 }
 0x38e   : > { %v4982_v18 = vpack.c.bf16 %v4054_v45, %v4054_v45  ;;  %v3965_v16 = vpop.permute.xlu1 %3964 }
 0x38f   : > { %v4143_v41 = vpop.permute.xlu0 %4142  ;;  %v4055_v38 = vmul.f32 %v3965_v16, %v7575_v59  ;;  %4353 = vrot.lane.b32.xlu1 %v4985_v51, %s5855_s17 }
 0x390   : > { %4225 = vst.msk [vmem:[%s8025_s9 + $0x70] sm:$0xff] %vm4210_vm11, %v4143_v41  ;;  %4347 = vrot.lane.b32.xlu0 %v4982_v18, %s5855_s17 }
 0x391   : > { %v4983_v26 = vpack.c.bf16 %v4055_v38, %v4055_v38 }
 0x392   : > { %v4145_v15 = vpop.permute.xlu1 %4144 }
 0x393   : > { %v4139_v61 = vpop.permute.xlu0 %4138  ;;  %4226 = vst.msk [vmem:[%s8025_s9 + $0x78] sm:$0xff] %vm4210_vm11, %v4145_v15  ;;  %4349 = vrot.lane.b32.xlu1 %v4983_v26, %s5855_s17 }
 0x394   : > { %4223 = vst.msk [vmem:[%s8025_s9 + $0x60] sm:$0xff] %vm4210_vm11, %v4139_v61 }
 0x396   : > { %v4141_v21 = vpop.permute.xlu1 %4140 }
 0x397   : > { %v3975_v27 = vpop.permute.xlu0 %3974  ;;  %4224 = vst.msk [vmem:[%s8025_s9 + $0x68] sm:$0xff] %vm4210_vm11, %v4141_v21 }
 0x398   : > { %v4060_v59 = vmul.f32 %v3975_v27, %v7586_v39 }
 0x39a   : > { %v4988_v52 = vpack.c.bf16 %v4060_v59, %v4060_v59  ;;  %v3977_v54 = vpop.permute.xlu1 %3976 }
 0x39b   : > { %v3971_v32 = vpop.permute.xlu0 %3970  ;;  %v4061_v56 = vmul.f32 %v3977_v54, %v7605_v34 }
 0x39c   : > { %v4058_v37 = vmul.f32 %v3971_v32, %v7610_v3  ;;  %4359 = vrot.lane.b32.xlu0 %v4988_v52, %s5855_s17 }
 0x39d   : > { %v4989_v36 = vpack.c.bf16 %v4061_v56, %v4061_v56 }
 0x39e   : > { %v4986_v14 = vpack.c.bf16 %v4058_v37, %v4058_v37  ;;  %v3973_v10 = vpop.permute.xlu1 %3972 }
 0x39f   : > { %v4151_v4 = vpop.permute.xlu0 %4150  ;;  %v4059_v19 = vmul.f32 %v3973_v10, %v7622_v60  ;;  %4361 = vrot.lane.b32.xlu1 %v4989_v36, %s5855_s17 }
 0x3a0   : > { %4229 = vst.msk [vmem:[%s8025_s9 + $0x90] sm:$0xff] %vm4210_vm11, %v4151_v4  ;;  %4355 = vrot.lane.b32.xlu0 %v4986_v14, %s5855_s17 }
 0x3a1   : > { %v4987_v39 = vpack.c.bf16 %v4059_v19, %v4059_v19 }
 0x3a2   : > { %v4153_v34 = vpop.permute.xlu1 %4152 }
 0x3a3   : > { %v4147_v24 = vpop.permute.xlu0 %4146  ;;  %4230 = vst.msk [vmem:[%s8025_s9 + $0x98] sm:$0xff] %vm4210_vm11, %v4153_v34  ;;  %4357 = vrot.lane.b32.xlu1 %v4987_v39, %s5855_s17 }
 0x3a4   : > { %4227 = vst.msk [vmem:[%s8025_s9 + $0x80] sm:$0xff] %vm4210_vm11, %v4147_v24 }
 0x3a6   : > { %v4149_v3 = vpop.permute.xlu1 %4148 }
 0x3a7   : > { %v3983_v9 = vpop.permute.xlu0 %3982  ;;  %4228 = vst.msk [vmem:[%s8025_s9 + $0x88] sm:$0xff] %vm4210_vm11, %v4149_v3 }
 0x3a8   : > { %v4064_v60 = vmul.f32 %v3983_v9, %v7629_v42 }
 0x3aa   : > { %v4992_v62 = vpack.c.bf16 %v4064_v60, %v4064_v60  ;;  %v3985_v22 = vpop.permute.xlu1 %3984 }
 0x3ab   : > { %v3979_v8 = vpop.permute.xlu0 %3978  ;;  %v4065_v29 = vmul.f32 %v3985_v22, %v7650_v11 }
 0x3ac   : > { %v4062_v47 = vmul.f32 %v3979_v8, %v7653_v0  ;;  %4367 = vrot.lane.b32.xlu0 %v4992_v62, %s5855_s17 }
 0x3ad   : > { %v4993_v49 = vpack.c.bf16 %v4065_v29, %v4065_v29 }
 0x3ae   : > { %v4990_v2 = vpack.c.bf16 %v4062_v47, %v4062_v47  ;;  %v3981_v35 = vpop.permute.xlu1 %3980 }
 0x3af   : > { %v4159_v46 = vpop.permute.xlu0 %4158  ;;  %v4063_v13 = vmul.f32 %v3981_v35, %v7667_v63  ;;  %4369 = vrot.lane.b32.xlu1 %v4993_v49, %s5855_s17 }
 0x3b0   : > { %4233 = vst.msk [vmem:[%s8025_s9 + $0xb0] sm:$0xff] %vm4210_vm11, %v4159_v46  ;;  %4363 = vrot.lane.b32.xlu0 %v4990_v2, %s5855_s17 }
 0x3b1   : > { %v4991_v42 = vpack.c.bf16 %v4063_v13, %v4063_v13 }
 0x3b2   : > { %v4161_v11 = vpop.permute.xlu1 %4160 }
 0x3b3   : > { %v4155_v40 = vpop.permute.xlu0 %4154  ;;  %4234 = vst.msk [vmem:[%s8025_s9 + $0xb8] sm:$0xff] %vm4210_vm11, %v4161_v11  ;;  %4365 = vrot.lane.b32.xlu1 %v4991_v42, %s5855_s17 }
 0x3b4   : > { %4231 = vst.msk [vmem:[%s8025_s9 + $0xa0] sm:$0xff] %vm4210_vm11, %v4155_v40 }
 0x3b6   : > { %v4157_v0 = vpop.permute.xlu1 %4156 }
 0x3b7   : > { %v3991_v6 = vpop.permute.xlu0 %3990  ;;  %4232 = vst.msk [vmem:[%s8025_s9 + $0xa8] sm:$0xff] %vm4210_vm11, %v4157_v0 }
 0x3b8   : > { %v4068_v63 = vmul.f32 %v3991_v6, %v7674_v53 }
 0x3ba   : > { %v4996_v58 = vpack.c.bf16 %v4068_v63, %v4068_v63  ;;  %v3993_v48 = vpop.permute.xlu1 %3992 }
 0x3bb   : > { %v3987_v5 = vpop.permute.xlu0 %3986  ;;  %v4069_v43 = vmul.f32 %v3993_v48, %v7691_v33 }
 0x3bc   : > { %v4066_v45 = vmul.f32 %v3987_v5, %v7696_v7  ;;  %4375 = vrot.lane.b32.xlu0 %v4996_v58, %s5855_s17 }
 0x3bd   : > { %v4997_v51 = vpack.c.bf16 %v4069_v43, %v4069_v43 }
 0x3be   : > { %v4994_v18 = vpack.c.bf16 %v4066_v45, %v4066_v45  ;;  %v3989_v16 = vpop.permute.xlu1 %3988 }
 0x3bf   : > { %v4167_v41 = vpop.permute.xlu0 %4166  ;;  %v4067_v38 = vmul.f32 %v3989_v16, %v7712_v20  ;;  %4377 = vrot.lane.b32.xlu1 %v4997_v51, %s5855_s17 }
 0x3c0   : > { %4237 = vst.msk [vmem:[%s8025_s9 + $0xd0] sm:$0xff] %vm4210_vm11, %v4167_v41  ;;  %4371 = vrot.lane.b32.xlu0 %v4994_v18, %s5855_s17 }
 0x3c1   : > { %v4995_v53 = vpack.c.bf16 %v4067_v38, %v4067_v38 }
 0x3c2   : > { %v4169_v33 = vpop.permute.xlu1 %4168 }
 0x3c3   : > { %v4163_v26 = vpop.permute.xlu0 %4162  ;;  %4238 = vst.msk [vmem:[%s8025_s9 + $0xd8] sm:$0xff] %vm4210_vm11, %v4169_v33  ;;  %4373 = vrot.lane.b32.xlu1 %v4995_v53, %s5855_s17 }
 0x3c4   : > { %4235 = vst.msk [vmem:[%s8025_s9 + $0xc0] sm:$0xff] %vm4210_vm11, %v4163_v26 }
 0x3c6   : > { %v4165_v7 = vpop.permute.xlu1 %4164 }
 0x3c7   : > { %v3999_v15 = vpop.permute.xlu0 %3998  ;;  %4236 = vst.msk [vmem:[%s8025_s9 + $0xc8] sm:$0xff] %vm4210_vm11, %v4165_v7 }
 0x3c8   : > { %v4072_v20 = vmul.f32 %v3999_v15, %v7709_v23 }
 0x3ca   : > { %v5000_v61 = vpack.c.bf16 %v4072_v20, %v4072_v20  ;;  %v4001_v21 = vpop.permute.xlu1 %4000 }
 0x3cb   : > { %v3995_v27 = vpop.permute.xlu0 %3994  ;;  %v4073_v59 = vmul.f32 %v4001_v21, %v7721_v25 }
 0x3cc   : > { %v4070_v52 = vmul.f32 %v3995_v27, %v7732_v30  ;;  %4383 = vrot.lane.b32.xlu0 %v5000_v61, %s5855_s17 }
 0x3cd   : > { %v5001_v54 = vpack.c.bf16 %v4073_v59, %v4073_v59 }
 0x3ce   : > { %v4998_v32 = vpack.c.bf16 %v4070_v52, %v4070_v52  ;;  %v3997_v56 = vpop.permute.xlu1 %3996 }
 0x3cf   : > { %v4175_v37 = vpop.permute.xlu0 %4174  ;;  %v4071_v36 = vmul.f32 %v3997_v56, %v7743_v28  ;;  %4385 = vrot.lane.b32.xlu1 %v5001_v54, %s5855_s17 }
 0x3d0   : > { %4241 = vst.msk [vmem:[%s8025_s9 + $0xf0] sm:$0xff] %vm4210_vm11, %v4175_v37  ;;  %4379 = vrot.lane.b32.xlu0 %v4998_v32, %s5855_s17 }
 0x3d1   : > { %v4999_v23 = vpack.c.bf16 %v4071_v36, %v4071_v36 }
 0x3d2   : > { %v4177_v25 = vpop.permute.xlu1 %4176 }
 0x3d3   : > { %v4171_v14 = vpop.permute.xlu0 %4170  ;;  %4242 = vst.msk [vmem:[%s8025_s9 + $0xf8] sm:$0xff] %vm4210_vm11, %v4177_v25  ;;  %4381 = vrot.lane.b32.xlu1 %v4999_v23, %s5855_s17 }
 0x3d4   : > { %4239 = vst.msk [vmem:[%s8025_s9 + $0xe0] sm:$0xff] %vm4210_vm11, %v4171_v14 }
 0x3d6   : > { %v4173_v30 = vpop.permute.xlu1 %4172 }
 0x3d7   : > { %v4007_v10 = vpop.permute.xlu0 %4006  ;;  %4240 = vst.msk [vmem:[%s8025_s9 + $0xe8] sm:$0xff] %vm4210_vm11, %v4173_v30 }
 0x3d8   : > { %v4076_v28 = vmul.f32 %v4007_v10, %v7740_v55 }
 0x3da   : > { %v5004_v4 = vpack.c.bf16 %v4076_v28, %v4076_v28  ;;  %v4009_v19 = vpop.permute.xlu1 %4008 }
 0x3db   : > { %v4003_v39 = vpop.permute.xlu0 %4002  ;;  %v4077_v34 = vmul.f32 %v4009_v19, %v7752_v57 }
 0x3dc   : > { %v4074_v24 = vmul.f32 %v4003_v39, %v7760_v44  ;;  %4391 = vrot.lane.b32.xlu0 %v5004_v4, %s5855_s17 }
 0x3dd   : > { %v5005_v3 = vpack.c.bf16 %v4077_v34, %v4077_v34 }
 0x3de   : > { %v5002_v9 = vpack.c.bf16 %v4074_v24, %v4074_v24  ;;  %v4005_v60 = vpop.permute.xlu1 %4004 }
 0x3df   : > { %v4015_v62 = vpop.permute.xlu0 %4014  ;;  %v4075_v22 = vmul.f32 %v4005_v60, %v7773_v31  ;;  %4393 = vrot.lane.b32.xlu1 %v5005_v3, %s5855_s17 }
 0x3e0   : > { %4387 = vrot.lane.b32.xlu0 %v5002_v9, %s5855_s17 }
 0x3e1   : > { %v5003_v55 = vpack.c.bf16 %v4075_v22, %v4075_v22 }
 0x3e2   : > { %v4017_v57 = vpop.permute.xlu1 %4016 }
 0x3e3   : > { %v4011_v44 = vpop.permute.xlu0 %4010  ;;  %4389 = vrot.lane.b32.xlu1 %v5003_v55, %s5855_s17 }
 0x3e4   : > { %v4078_v31 = vmul.f32 %v4011_v44, %v7790_v1 }
 0x3e5   : > { %5790 = shalt.err (!%p5787_p5)
}
 0x3e6   : > { %s5791_s27 = scalar_lea.hbm %s8158_s15, 4096  ;;  %s5795_s9 = scalar_lea.hbm %s8293_s5, 8192 }
 0x3e7   : > { %p5792_p6 = scmp.ne.s32.totalorder %s8158_s15, %s5791_s27  ;;  %p5796_p10 = scmp.lt.s32.totalorder %s8158_s15, %s8293_s5 }
 0x3e8   : > { %p5797_p11 = scmp.lt.s32.totalorder %s5795_s9, %s5791_s27 }
 0x3e9   : > { %p5793_p7 = pnand %p5792_p6, %p5932_p4 }
 0x3ea   : > { %p5798_p12 = por %p5797_p11, %p5796_p10 }
 0x3eb   : > { %p5794_p9 = pneg %p5793_p7 }
 0x3ed   : > { %p5799_p13 = pnand %p5798_p12, %p5794_p9 }
 0x3ef   : > { %5802 = shalt.err (!%p5799_p13)
}
 0x3f0   : > { %s5860_s14 = smov 128   ;;  %s5861_s21 = smov 8   ;;  %v4080_v1 = vmul.f32 %v4015_v62, %v7770_v50  ;;  %v5006_v8 = vpack.c.bf16 %v4078_v31, %v4078_v31  ;;  %v4013_v29 = vpop.permute.xlu1 %4012  ;;  %v4081_v49 = vmul.f32 %v4017_v57, %v7782_v12  ;;  %vm4435_vm12 = vcmask 257024   ;;  %v4344_v12 = vpop.permute.xlu0 %4343 }
 0x3f1   : > { %5541 = dma.vmem_to_hbm [thread:$0]  (%p5932_p4), %s8161_s12, 4096, %s8158_s15, %s8166_s16, %s5860_s14, %s5860_s14, %s5861_s21   ;;  %v4079_v47 = vmul.f32 %v4013_v29, %v7793_v17 }
 0x3f2   : > { %4395 = vrot.lane.b32.xlu0 %v5006_v8, %s5855_s17  ;;  %s4977_s29 = sshll.u32 %s5958_s11, 7  ;;  %v5008_v35 = vpack.c.bf16 %v4080_v1, %v4080_v1  ;;  %v5009_v50 = vpack.c.bf16 %v4081_v49, %v4081_v49 }
 0x3f3   : > { %v5007_v2 = vpack.c.bf16 %v4079_v47, %v4079_v47  ;;  %s8199_s12 = scalar_lea.vmem %s8292_s4, %s4977_s29 }
 0x3f4   : > { %4438 = vst.msk [vmem:[%s8199_s12 + $0x8] sm:$0xf] %vm4435_vm12, %v4344_v12  ;;  %v4346_v17 = vpop.permute.xlu1 %4345  ;;  %v4340_v46 = vpop.permute.xlu0 %4339 }
 0x3f5   : > { %4397 = vrot.lane.b32.xlu1 %v5007_v2, %s5855_s17  ;;  %4439 = vst.msk [vmem:[%s8199_s12 + $0xc] sm:$0xf] %vm4435_vm12, %v4346_v17  ;;  %4436 = vst.msk [vmem:[%s8199_s12] sm:$0xf] %vm4435_vm12, %v4340_v46 }
 0x3f6   : > { %4399 = vrot.lane.b32.xlu0 %v5008_v35, %s5855_s17 }
 0x3f8   : > { %v4342_v13 = vpop.permute.xlu1 %4341 }
 0x3f9   : > { %4401 = vrot.lane.b32.xlu1 %v5009_v50, %s5855_s17  ;;  %4437 = vst.msk [vmem:[%s8199_s12 + $0x4] sm:$0xf] %vm4435_vm12, %v4342_v13 }
 0x3fe   : > { %v4352_v42 = vpop.permute.xlu0 %4351 }
 0x3ff   : > { %4442 = vst.msk [vmem:[%s8199_s12 + $0x18] sm:$0xf] %vm4435_vm12, %v4352_v42 }
 0x401   : > { %v4354_v11 = vpop.permute.xlu1 %4353 }
 0x402   : > { %v4348_v40 = vpop.permute.xlu0 %4347  ;;  %4443 = vst.msk [vmem:[%s8199_s12 + $0x1c] sm:$0xf] %vm4435_vm12, %v4354_v11 }
 0x403   : > { %4440 = vst.msk [vmem:[%s8199_s12 + $0x10] sm:$0xf] %vm4435_vm12, %v4348_v40 }
 0x405   : > { %v4350_v0 = vpop.permute.xlu1 %4349 }
 0x406   : > { %4441 = vst.msk [vmem:[%s8199_s12 + $0x14] sm:$0xf] %vm4435_vm12, %v4350_v0 }
 0x40e   : > { %v4360_v6 = vpop.permute.xlu0 %4359 }
 0x40f   : > { %4446 = vst.msk [vmem:[%s8199_s12 + $0x28] sm:$0xf] %vm4435_vm12, %v4360_v6 }
 0x411   : > { %v4362_v63 = vpop.permute.xlu1 %4361 }
 0x412   : > { %v4356_v58 = vpop.permute.xlu0 %4355  ;;  %4447 = vst.msk [vmem:[%s8199_s12 + $0x2c] sm:$0xf] %vm4435_vm12, %v4362_v63 }
 0x413   : > { %4444 = vst.msk [vmem:[%s8199_s12 + $0x20] sm:$0xf] %vm4435_vm12, %v4356_v58 }
 0x415   : > { %v4358_v48 = vpop.permute.xlu1 %4357 }
 0x416   : > { %4445 = vst.msk [vmem:[%s8199_s12 + $0x24] sm:$0xf] %vm4435_vm12, %v4358_v48 }
 0x41e   : > { %v4368_v5 = vpop.permute.xlu0 %4367 }
 0x41f   : > { %4450 = vst.msk [vmem:[%s8199_s12 + $0x38] sm:$0xf] %vm4435_vm12, %v4368_v5 }
 0x421   : > { %v4370_v43 = vpop.permute.xlu1 %4369 }
 0x422   : > { %v4364_v45 = vpop.permute.xlu0 %4363  ;;  %4451 = vst.msk [vmem:[%s8199_s12 + $0x3c] sm:$0xf] %vm4435_vm12, %v4370_v43 }
 0x423   : > { %4448 = vst.msk [vmem:[%s8199_s12 + $0x30] sm:$0xf] %vm4435_vm12, %v4364_v45 }
 0x425   : > { %v4366_v51 = vpop.permute.xlu1 %4365 }
 0x426   : > { %4449 = vst.msk [vmem:[%s8199_s12 + $0x34] sm:$0xf] %vm4435_vm12, %v4366_v51 }
 0x42e   : > { %v4376_v18 = vpop.permute.xlu0 %4375 }
 0x42f   : > { %4454 = vst.msk [vmem:[%s8199_s12 + $0x48] sm:$0xf] %vm4435_vm12, %v4376_v18 }
 0x431   : > { %v4378_v16 = vpop.permute.xlu1 %4377 }
 0x432   : > { %v4372_v41 = vpop.permute.xlu0 %4371  ;;  %4455 = vst.msk [vmem:[%s8199_s12 + $0x4c] sm:$0xf] %vm4435_vm12, %v4378_v16 }
 0x433   : > { %4452 = vst.msk [vmem:[%s8199_s12 + $0x40] sm:$0xf] %vm4435_vm12, %v4372_v41 }
 0x435   : > { %v4374_v38 = vpop.permute.xlu1 %4373 }
 0x436   : > { %4453 = vst.msk [vmem:[%s8199_s12 + $0x44] sm:$0xf] %vm4435_vm12, %v4374_v38 }
 0x43e   : > { %v4384_v53 = vpop.permute.xlu0 %4383 }
 0x43f   : > { %4458 = vst.msk [vmem:[%s8199_s12 + $0x58] sm:$0xf] %vm4435_vm12, %v4384_v53 }
 0x441   : > { %v4386_v33 = vpop.permute.xlu1 %4385 }
 0x442   : > { %v4380_v26 = vpop.permute.xlu0 %4379  ;;  %4459 = vst.msk [vmem:[%s8199_s12 + $0x5c] sm:$0xf] %vm4435_vm12, %v4386_v33 }
 0x443   : > { %4456 = vst.msk [vmem:[%s8199_s12 + $0x50] sm:$0xf] %vm4435_vm12, %v4380_v26 }
 0x445   : > { %v4382_v7 = vpop.permute.xlu1 %4381 }
 0x446   : > { %4457 = vst.msk [vmem:[%s8199_s12 + $0x54] sm:$0xf] %vm4435_vm12, %v4382_v7 }
 0x44e   : > { %v4392_v15 = vpop.permute.xlu0 %4391 }
 0x44f   : > { %4462 = vst.msk [vmem:[%s8199_s12 + $0x68] sm:$0xf] %vm4435_vm12, %v4392_v15 }
 0x451   : > { %v4394_v20 = vpop.permute.xlu1 %4393 }
 0x452   : > { %v4388_v61 = vpop.permute.xlu0 %4387  ;;  %4463 = vst.msk [vmem:[%s8199_s12 + $0x6c] sm:$0xf] %vm4435_vm12, %v4394_v20 }
 0x453   : > { %4460 = vst.msk [vmem:[%s8199_s12 + $0x60] sm:$0xf] %vm4435_vm12, %v4388_v61 }
 0x455   : > { %v4390_v21 = vpop.permute.xlu1 %4389 }
 0x456   : > { %4461 = vst.msk [vmem:[%s8199_s12 + $0x64] sm:$0xf] %vm4435_vm12, %v4390_v21 }
 0x464   : > { %v4396_v27 = vpop.permute.xlu0 %4395 }
 0x465   : > { %4464 = vst.msk [vmem:[%s8199_s12 + $0x70] sm:$0xf] %vm4435_vm12, %v4396_v27 }
 0x467   : > { %v4398_v59 = vpop.permute.xlu1 %4397 }
 0x468   : > { %v4400_v52 = vpop.permute.xlu0 %4399  ;;  %4465 = vst.msk [vmem:[%s8199_s12 + $0x74] sm:$0xf] %vm4435_vm12, %v4398_v59 }
 0x469   : > { %4466 = vst.msk [vmem:[%s8199_s12 + $0x78] sm:$0xf] %vm4435_vm12, %v4400_v52 }
 0x46b   : > { %v4402_v54 = vpop.permute.xlu1 %4401 }
 0x46c   : > { %4467 = vst.msk [vmem:[%s8199_s12 + $0x7c] sm:$0xf] %vm4435_vm12, %v4402_v54 }
 0x46d PF: > { %p5547_p4 = scmp.ge.s32.totalorder %s5853_s23, 2  ;;  %s4527_s11 = sand.u32 1, %s5833_s18  }
 0x46e   : > { %s4528_s17 = scalar_lea.sflag [#allocation3], %s4527_s11 }
 0x46f   : > { %p5544_p0 = pnand %p5547_p4, %p5939_p8 }
 0x471   : > { %p5545_p1 = pneg %p5544_p0 }
 0x473   : > { %5828 = dma.done.wait (%p5545_p1), %s4528_s17, 4096  }
 0x474   : > { %5830 = vsyncadd (%p5545_p1), %s4528_s17, 4294963200  ;;  %s19_s23 = sadd.s32 1, %s5853_s23   ;;  %s8497_s18 = smov %s5837_s19 }
 0x475   : > { %p16_p2 = scmp.ge.s32.totalorder %s19_s23, 4   ;;  %s8498_s19 = smov %s5841_s20 }
 0x476   : > { %s8499_s20 = smov %s5945_s6  ;;  %s8500_s21 = smov %s5849_s22 }
 0x477   : > { %s8501_s22 = smov %s8503_s26  ;;  %18 = sbr.rel (!%p16_p2) target bundleno = 4 (0x4), region = 94 }
 0x47c   :  { %4533 = vsyncpa [#allocation3], 1 }
 0x47d   :  { %4535 = vsyncpa [#allocation3 + $0x1], 1 }

</bundles_post_ra>
